<compile_context>
chip_gen: v6e
topology: v6e:2x2x1
jax: 0.10.0
libtpu: 0.0.40
codegen_flags: <defaults>
</compile_context>

<pallas_src>
import functools

import jax
import jax.numpy as jnp
from jax.experimental import pallas as pl
from jax.experimental.pallas import tpu as pltpu

LANE = 128                      # feat / num_c padded to full lane width for dense stores
NB = 8                          # images per output block -> unmasked (8,128) stores
VMEM_LIMIT = 40 * 1024 * 1024   # scoped-VMEM budget (v7x-safe: 64 MiB physical)
TARGET_PIXELS = 16 * 1024       # pixels per grid step (~12 MiB f32 conv2 activations)


def _round_up(x, m):
    return (x + m - 1) // m * m


def _choose_row_band(h, w):
    """Image rows processed per grid step. Whole image if it fits; otherwise the
    largest divisor of H near the VMEM-limited row count (falls back to a
    non-divisor + in-kernel tail masking)."""
    max_rows = max(8, TARGET_PIXELS // max(w, 1))
    if h <= max_rows:
        return h
    div = 1
    for t in range(max_rows, 0, -1):
        if h % t == 0:
            div = t
            break
    return div if div >= max_rows // 2 else max_rows


# ----------------------------------------------------------------------------
# Fused backbone kernel: conv1 -> conv2 -> global mean pool -> (optional) fc
# ----------------------------------------------------------------------------
def _fused_backbone_kernel(x_ref, w1_ref, b1_ref, w2_ref, b2_ref, fcw_ref, fcb_ref,
                           o_ref, acc_ref, *, tr, h_img, w_img, cin, c_mid,
                           inv_hw, use_fc):
    """Grid = (image_block, image_in_block, row_band).  One grid step processes one
    row band (tr rows) of one image entirely in VMEM; acc_ref (8,128) carries the
    per-image pooled means; finalize applies fc_final and writes one (8,128) block."""
    b = pl.program_id(1)          # image within the 8-image output block
    j = pl.program_id(2)          # row band (sequential reduction axis)

    @pl.when(jnp.logical_and(b == 0, j == 0))
    def _init():
        acc_ref[...] = jnp.zeros_like(acc_ref)

    r1 = tr + 2                   # h1 rows needed for this band (+-1 halo)
    c1 = w_img + 2                # h1 cols (+-1 halo)
    xb = x_ref[...]               # (tr+4, w+4, cin) bf16, zero-padded at image borders

    # ---- conv1: 3x3 SAME, cin -> c_mid (in-VMEM im2col + one MXU matmul, K=9*cin) ----
    taps = [xb[kh:kh + r1, kw:kw + c1, :] for kh in range(3) for kw in range(3)]
    p1 = jnp.concatenate(taps, axis=-1).reshape(r1 * c1, 9 * cin)
    h1 = jnp.dot(p1, w1_ref[...], preferred_element_type=jnp.float32)
    h1 = jnp.maximum(h1 + b1_ref[...], 0.0).reshape(r1, c1, c_mid)

    # Zero the halo ring that lies outside the image so conv2 sees exact SAME
    # zero-padding of h1 (relu(b1) at padded positions would otherwise leak in).
    gr = jax.lax.broadcasted_iota(jnp.int32, (r1, 1, 1), 0) + (j * tr - 1)
    gc = jax.lax.broadcasted_iota(jnp.int32, (1, c1, 1), 1) - 1
    valid = (gr >= 0) & (gr < h_img) & (gc >= 0) & (gc < w_img)
    h1 = jnp.where(valid, h1, 0.0).astype(jnp.bfloat16)

    # ---- conv2: 3x3 SAME, c_mid -> 128(feat padded), bias + ReLU (K=9*c_mid) ----
    taps = [h1[kh:kh + tr, kw:kw + w_img, :] for kh in range(3) for kw in range(3)]
    p2 = jnp.concatenate(taps, axis=-1).reshape(tr * w_img, 9 * c_mid)
    h2 = jnp.dot(p2, w2_ref[...], preferred_element_type=jnp.float32)
    h2 = jnp.maximum(h2 + b2_ref[...], 0.0)               # (tr*w, 128) f32

    # ---- masked global-average-pool partial sum (sublane reduce on the XLU) ----
    if h_img % tr != 0:   # tail band only: rows past H must not pollute the mean
        limit = jnp.minimum(h_img - j * tr, tr) * w_img
        rowi = jax.lax.broadcasted_iota(jnp.int32, (tr * w_img, 1), 0)
        h2 = jnp.where(rowi < limit, h2, 0.0)
    psum = inv_hw * jnp.sum(h2, axis=0, keepdims=True)    # (1, 128) f32

    sel = (jax.lax.broadcasted_iota(jnp.int32, (NB, 1), 0) == b).astype(jnp.float32)
    acc_ref[...] += sel * psum                             # accumulate row b of acc

    @pl.when(jnp.logical_and(b == NB - 1, j == pl.num_programs(2) - 1))
    def _finalize():
        feats = acc_ref[...]                               # (8, 128) pooled means, f32
        if use_fc:
            out = jnp.dot(feats, fcw_ref[...],
                          preferred_element_type=jnp.float32) + fcb_ref[...]
        else:
            out = feats
        o_ref[...] = out


def _fused_forward(x_bands, p, *, n_img_pad, n_bands, tr, h_img, w_img, use_fc):
    cin, c_mid = p["c_in"], p["c_mid"]
    kernel = functools.partial(
        _fused_backbone_kernel, tr=tr, h_img=h_img, w_img=w_img,
        cin=cin, c_mid=c_mid, inv_hw=1.0 / (h_img * w_img), use_fc=use_fc)
    pix = n_img_pad * h_img * w_img
    cost = pl.CostEstimate(
        flops=2 * pix * (9 * cin * c_mid + 9 * c_mid * LANE) + 2 * n_img_pad * LANE * LANE,
        transcendentals=0,
        bytes_accessed=(x_bands.size * 2 + n_img_pad * LANE * 4
                        + (p["w1p"].size + p["w2p"].size) * 2
                        + (p["fcwp"].size + p["fcbp"].size + p["b1p"].size + p["b2p"].size) * 4))
    return pl.pallas_call(
        kernel,
        out_shape=jax.ShapeDtypeStruct((n_img_pad, LANE), jnp.float32),
        grid=(n_img_pad // NB, NB, n_bands),               # reduction (band) axis last
        in_specs=[
            pl.BlockSpec((None, tr + 4, w_img + 4, cin),
                         lambda i, b, j: ((i * NB + b) * n_bands + j, 0, 0, 0)),
            pl.BlockSpec((9 * cin, c_mid), lambda i, b, j: (0, 0)),     # w1 (27, 8)
            pl.BlockSpec((1, c_mid), lambda i, b, j: (0, 0)),           # b1
            pl.BlockSpec((9 * c_mid, LANE), lambda i, b, j: (0, 0)),    # w2 (72, 128)
            pl.BlockSpec((1, LANE), lambda i, b, j: (0, 0)),            # b2
            pl.BlockSpec((LANE, LANE), lambda i, b, j: (0, 0)),         # fc W^T (f32)
            pl.BlockSpec((1, LANE), lambda i, b, j: (0, 0)),            # fc bias
        ],
        out_specs=pl.BlockSpec((NB, LANE), lambda i, b, j: (i, 0)),
        scratch_shapes=[pltpu.VMEM((NB, LANE), jnp.float32)],
        compiler_params=pltpu.CompilerParams(
            dimension_semantics=("parallel", "arbitrary", "arbitrary"),
            vmem_limit_bytes=VMEM_LIMIT),
        cost_estimate=cost,
    )(x_bands, p["w1p"], p["b1p"], p["w2p"], p["b2p"], p["fcwp"], p["fcbp"])


# ----------------------------------------------------------------------------
# Parameters (stand-in backbone) and host-side glue
# ----------------------------------------------------------------------------
def init_params(key, c_in=3, c_mid=8, feat=32, num_c=10):
    k1, k2, k3, k4 = jax.random.split(key, 4)
    return {
        # conv weights stored HWIO (kh, kw, cin, cout)
        "w1": 0.1 * jax.random.normal(k1, (3, 3, c_in, c_mid), jnp.float32),
        "b1": jnp.zeros((c_mid,), jnp.float32),
        "w2": 0.1 * jax.random.normal(k2, (3, 3, c_mid, feat), jnp.float32),
        "b2": jnp.zeros((feat,), jnp.float32),
        # fc_final: PyTorch Linear weight is (num_c, feat)
        "fc_w": 0.1 * jax.random.normal(k3, (num_c, feat), jnp.float32),
        "fc_b": 0.01 * jax.random.normal(k4, (num_c,), jnp.float32),
    }


def prepare_params(params):
    """Pack conv weights tap-major (narrow K — no 128-lane padding of c_mid),
    pad only the FINAL feature/class dims to 128 lanes, pre-transpose fc (kept f32)."""
    c_in, c_mid = params["w1"].shape[2], params["w1"].shape[3]
    feat = params["w2"].shape[3]
    num_c = params["fc_w"].shape[0]

    w1p = params["w1"].reshape(9 * c_in, c_mid).astype(jnp.bfloat16)        # (27, 8)
    b1p = params["b1"].reshape(1, c_mid).astype(jnp.float32)                # (1, 8)

    w2p = jnp.zeros((9 * c_mid, LANE), jnp.float32)
    w2p = w2p.at[:, :feat].set(params["w2"].reshape(9 * c_mid, feat))       # (72, 128)
    b2p = jnp.zeros((1, LANE), jnp.float32).at[0, :feat].set(params["b2"])

    fcwp = jnp.zeros((LANE, LANE), jnp.float32)
    fcwp = fcwp.at[:feat, :num_c].set(params["fc_w"].T)                     # f32 fc
    fcbp = jnp.zeros((1, LANE), jnp.float32).at[0, :num_c].set(params["fc_b"])

    return {
        "w1p": w1p, "b1p": b1p,
        "w2p": w2p.astype(jnp.bfloat16), "b2p": b2p,
        "fcwp": fcwp, "fcbp": fcbp,
        "c_in": c_in, "c_mid": c_mid, "feat": feat, "num_c": num_c,
    }


def my_feature_extractor_forward(x_nchw, p, use_fc=True):
    """Equivalent of MyFeatureExtractor.forward: x = backbone(x); if use_fc: fc_final(x)."""
    x = jnp.transpose(x_nchw, (0, 2, 3, 1)).astype(jnp.bfloat16)   # NCHW -> NHWC, bf16
    n, h, w, cin = x.shape
    assert cin == p["c_in"]

    n_pad = _round_up(n, NB)
    tr = _choose_row_band(h, w)
    n_bands = pl.cdiv(h, tr)
    hb = n_bands * tr

    # Zero-pad (2-px spatial halo for the two stacked 3x3 convs, batch up to 8n, band
    # tail) and cut into per-image row bands of tr+4 rows — the only HBM-resident
    # intermediate the kernel reads (~x-sized; h1/p1/p2 never leave VMEM).
    xp = jnp.pad(x, ((0, n_pad - n), (2, hb - h + 2), (2, 2), (0, 0)))
    x_bands = jnp.stack([xp[:, j * tr: j * tr + tr + 4] for j in range(n_bands)], axis=1)
    x_bands = x_bands.reshape(n_pad * n_bands, tr + 4, w + 4, cin)

    out = _fused_forward(x_bands, p, n_img_pad=n_pad, n_bands=n_bands,
                         tr=tr, h_img=h, w_img=w, use_fc=use_fc)    # (n_pad, 128) f32
    out = out[:n]
    return out[:, :p["num_c"]] if use_fc else out[:, :p["feat"]]


# Pure-JAX f32 reference for correctness checking
def _reference_forward(x_nchw, params, use_fc=True):
    x = jnp.transpose(x_nchw, (0, 2, 3, 1)).astype(jnp.float32)
    dn = ("NHWC", "HWIO", "NHWC")
    h1 = jax.lax.conv_general_dilated(x, params["w1"], (1, 1), "SAME",
                                      dimension_numbers=dn) + params["b1"]
    h1 = jnp.maximum(h1, 0.0)
    h2 = jax.lax.conv_general_dilated(h1, params["w2"], (1, 1), "SAME",
                                      dimension_numbers=dn) + params["b2"]
    h2 = jnp.maximum(h2, 0.0)
    feats = jnp.mean(h2, axis=(1, 2))
    if use_fc:
        feats = feats @ params["fc_w"].T + params["fc_b"]
    return feats


if __name__ == "__main__":
    key = jax.random.PRNGKey(0)
    kx, kp = jax.random.split(key)

    # Small shapes consistent with the module (3-channel images, NCHW like PyTorch).
    x = jax.random.normal(kx, (2, 3, 16, 16), jnp.float32)
    raw_params = init_params(kp, c_in=3, c_mid=8, feat=32, num_c=10)
    params = prepare_params(raw_params)

    out = jax.block_until_ready(my_feature_extractor_forward(x, params, use_fc=True))
    ref = jax.block_until_ready(_reference_forward(x, raw_params, use_fc=True))
    assert out.shape == (2, 10), out.shape
    err = float(jnp.max(jnp.abs(out - ref)))
    assert err < 2e-2, f"mismatch vs reference (use_fc=True): {err}"

    feats = jax.block_until_ready(my_feature_extractor_forward(x, params, use_fc=False))
    ref_f = jax.block_until_ready(_reference_forward(x, raw_params, use_fc=False))
    assert feats.shape == (2, 32), feats.shape
    err_f = float(jnp.max(jnp.abs(feats - ref_f)))
    assert err_f < 2e-2, f"mismatch vs reference (use_fc=False): {err_f}"

    # TODO(synk): the real timm backbone (resnet/vit variants, pretrained weights) is not
    # reproducible here; a deterministic small CNN backbone stands in for backbone(x).
    print("KERNEL_OK")
</pallas_src>

<mosaic_0001>
module attributes {stable_mosaic.version = 11 : i64} {
  func.func @_fused_backbone_kernel(%arg0: i32, %arg1: i32, %arg2: i32, %arg3: memref<1x20x20x3xbf16, #tpu.memory_space<vmem>>, %arg4: memref<27x8xbf16, #tpu.memory_space<vmem>>, %arg5: memref<1x8xf32, #tpu.memory_space<vmem>>, %arg6: memref<72x128xbf16, #tpu.memory_space<vmem>>, %arg7: memref<1x128xf32, #tpu.memory_space<vmem>>, %arg8: memref<128x128xf32, #tpu.memory_space<vmem>>, %arg9: memref<1x128xf32, #tpu.memory_space<vmem>>, %arg10: memref<8x128xf32, #tpu.memory_space<vmem>>, %arg11: memref<8x128xf32, #tpu.memory_space<vmem>>) attributes {dimension_semantics = [#tpu.dimension_semantics<parallel>, #tpu.dimension_semantics<arbitrary>, #tpu.dimension_semantics<arbitrary>], iteration_bounds = array<i64: 1, 8, 1>, scalar_prefetch = 0 : i64, scratch_operands = 1 : i64, tpu.core_type = #tpu.core_type<tc>, window_params = [{transform_indices = @transform_0, window_bounds = array<i64: 1, 20, 20, 3>}, {pipeline_mode = #tpu.pipeline_mode<synchronous>, transform_indices = @transform_1, window_bounds = array<i64: 27, 8>}, {pipeline_mode = #tpu.pipeline_mode<synchronous>, transform_indices = @transform_2, window_bounds = array<i64: 1, 8>}, {pipeline_mode = #tpu.pipeline_mode<synchronous>, transform_indices = @transform_3, window_bounds = array<i64: 72, 128>}, {pipeline_mode = #tpu.pipeline_mode<synchronous>, transform_indices = @transform_4, window_bounds = array<i64: 1, 128>}, {pipeline_mode = #tpu.pipeline_mode<synchronous>, transform_indices = @transform_5, window_bounds = array<i64: 128, 128>}, {pipeline_mode = #tpu.pipeline_mode<synchronous>, transform_indices = @transform_6, window_bounds = array<i64: 1, 128>}, {transform_indices = @transform_7, window_bounds = array<i64: 8, 128>}]} {
    %c0_i32 = arith.constant 0 : i32
    %0 = arith.cmpi eq, %arg1, %c0_i32 : i32
    %c0_i32_0 = arith.constant 0 : i32
    %1 = arith.cmpi eq, %arg2, %c0_i32_0 : i32
    %2 = arith.andi %0, %1 : i1
    %3 = arith.extui %2 : i1 to i32
    %c0_i32_1 = arith.constant 0 : i32
    %4 = arith.cmpi ne, %3, %c0_i32_1 : i32
    scf.if %4 {
      %cst_30 = arith.constant 0.000000e+00 : f32
      %91 = vector.broadcast %cst_30 : f32 to vector<8x128xf32>
      %c0_31 = arith.constant 0 : index
      %c0_32 = arith.constant 0 : index
      %92 = vector.load %arg11[%c0_31, %c0_32] : memref<8x128xf32, #tpu.memory_space<vmem>>, vector<8x128xf32>
      tpu.vector_store %arg11[%c0_31, %c0_32], %91 {strides = array<i32>} : memref<8x128xf32, #tpu.memory_space<vmem>>, vector<8x128xf32>,
    } else {
    }
    %c0 = arith.constant 0 : index
    %c0_2 = arith.constant 0 : index
    %c0_3 = arith.constant 0 : index
    %c0_4 = arith.constant 0 : index
    %5 = vector.load %arg3[%c0, %c0_2, %c0_3, %c0_4] : memref<1x20x20x3xbf16, #tpu.memory_space<vmem>>, vector<1x20x20x3xbf16>
    %6 = vector.shape_cast %5 : vector<1x20x20x3xbf16> to vector<20x20x3xbf16>
    %7 = vector.extract_strided_slice %6 {offsets = [0, 0, 0], sizes = [18, 18, 3], strides = [1, 1, 1]} : vector<20x20x3xbf16> to vector<18x18x3xbf16>
    %8 = vector.extract_strided_slice %6 {offsets = [0, 1, 0], sizes = [18, 18, 3], strides = [1, 1, 1]} : vector<20x20x3xbf16> to vector<18x18x3xbf16>
    %9 = vector.extract_strided_slice %6 {offsets = [0, 2, 0], sizes = [18, 18, 3], strides = [1, 1, 1]} : vector<20x20x3xbf16> to vector<18x18x3xbf16>
    %10 = vector.extract_strided_slice %6 {offsets = [1, 0, 0], sizes = [18, 18, 3], strides = [1, 1, 1]} : vector<20x20x3xbf16> to vector<18x18x3xbf16>
    %11 = vector.extract_strided_slice %6 {offsets = [1, 1, 0], sizes = [18, 18, 3], strides = [1, 1, 1]} : vector<20x20x3xbf16> to vector<18x18x3xbf16>
    %12 = vector.extract_strided_slice %6 {offsets = [1, 2, 0], sizes = [18, 18, 3], strides = [1, 1, 1]} : vector<20x20x3xbf16> to vector<18x18x3xbf16>
    %13 = vector.extract_strided_slice %6 {offsets = [2, 0, 0], sizes = [18, 18, 3], strides = [1, 1, 1]} : vector<20x20x3xbf16> to vector<18x18x3xbf16>
    %14 = vector.extract_strided_slice %6 {offsets = [2, 1, 0], sizes = [18, 18, 3], strides = [1, 1, 1]} : vector<20x20x3xbf16> to vector<18x18x3xbf16>
    %15 = vector.extract_strided_slice %6 {offsets = [2, 2, 0], sizes = [18, 18, 3], strides = [1, 1, 1]} : vector<20x20x3xbf16> to vector<18x18x3xbf16>
    %16 = tpu.concatenate %7, %8, %9, %10, %11, %12, %13, %14, %15 in 2 : vector<18x18x3xbf16>, vector<18x18x3xbf16>, vector<18x18x3xbf16>, vector<18x18x3xbf16>, vector<18x18x3xbf16>, vector<18x18x3xbf16>, vector<18x18x3xbf16>, vector<18x18x3xbf16>, vector<18x18x3xbf16> -> vector<18x18x27xbf16>
    %17 = vector.shape_cast %16 : vector<18x18x27xbf16> to vector<324x27xbf16>
    %c0_5 = arith.constant 0 : index
    %c0_6 = arith.constant 0 : index
    %18 = vector.load %arg4[%c0_5, %c0_6] : memref<27x8xbf16, #tpu.memory_space<vmem>>, vector<27x8xbf16>
    %cst = arith.constant dense<0.000000e+00> : vector<324x8xf32>
    %19 = tpu.matmul %17, %18, %cst {dimension_numbers = #tpu.dot_dimension_numbers<[1], [0], [0], [1], [0, 0, 1, 1], [], []>} : vector<324x27xbf16>, vector<27x8xbf16>, vector<324x8xf32> -> vector<324x8xf32>
    %c0_7 = arith.constant 0 : index
    %c0_8 = arith.constant 0 : index
    %20 = vector.load %arg5[%c0_7, %c0_8] : memref<1x8xf32, #tpu.memory_space<vmem>>, vector<1x8xf32>
    %21 = vector.broadcast %20 : vector<1x8xf32> to vector<324x8xf32>
    %22 = arith.addf %19, %21 : vector<324x8xf32>
    %cst_9 = arith.constant 0.000000e+00 : f32
    %23 = vector.broadcast %cst_9 : f32 to vector<324x8xf32>
    %24 = arith.maximumf %22, %23 : vector<324x8xf32>
    %25 = vector.shape_cast %24 : vector<324x8xf32> to vector<18x18x8xf32>
    %26 = tpu.iota {dimensions = array<i32: 0>} : vector<18x1x1xi32>
    %c16_i32 = arith.constant 16 : i32
    %27 = arith.muli %arg2, %c16_i32 : i32
    %c1_i32 = arith.constant 1 : i32
    %28 = arith.subi %27, %c1_i32 : i32
    %29 = vector.broadcast %28 : i32 to vector<18x1x1xi32>
    %30 = arith.addi %26, %29 : vector<18x1x1xi32>
    %31 = tpu.iota {dimensions = array<i32: 1>} : vector<1x18x1xi32>
    %c1_i32_10 = arith.constant 1 : i32
    %32 = vector.broadcast %c1_i32_10 : i32 to vector<1x18x1xi32>
    %33 = arith.subi %31, %32 : vector<1x18x1xi32>
    %c0_i32_11 = arith.constant 0 : i32
    %34 = vector.broadcast %c0_i32_11 : i32 to vector<18x1x1xi32>
    %35 = arith.cmpi sge, %30, %34 : vector<18x1x1xi32>
    %c16_i32_12 = arith.constant 16 : i32
    %36 = vector.broadcast %c16_i32_12 : i32 to vector<18x1x1xi32>
    %37 = arith.cmpi slt, %30, %36 : vector<18x1x1xi32>
    %38 = arith.andi %35, %37 : vector<18x1x1xi1>
    %c0_i32_13 = arith.constant 0 : i32
    %39 = vector.broadcast %c0_i32_13 : i32 to vector<1x18x1xi32>
    %40 = arith.cmpi sge, %33, %39 : vector<1x18x1xi32>
    %41 = vector.broadcast %38 : vector<18x1x1xi1> to vector<18x18x1xi1>
    %42 = vector.broadcast %40 : vector<1x18x1xi1> to vector<18x18x1xi1>
    %43 = arith.andi %41, %42 : vector<18x18x1xi1>
    %c16_i32_14 = arith.constant 16 : i32
    %44 = vector.broadcast %c16_i32_14 : i32 to vector<1x18x1xi32>
    %45 = arith.cmpi slt, %33, %44 : vector<1x18x1xi32>
    %46 = vector.broadcast %45 : vector<1x18x1xi1> to vector<18x18x1xi1>
    %47 = arith.andi %43, %46 : vector<18x18x1xi1>
    %cst_15 = arith.constant 0.000000e+00 : f32
    %48 = vector.shape_cast %47 : vector<18x18x1xi1> to vector<18x18x1xi1>
    %49 = vector.broadcast %48 : vector<18x18x1xi1> to vector<18x18x8xi1>
    %50 = vector.broadcast %cst_15 : f32 to vector<18x18x8xf32>
    %51 = arith.select %49, %25, %50 : vector<18x18x8xi1>, vector<18x18x8xf32>
    %52 = arith.truncf %51 : vector<18x18x8xf32> to vector<18x18x8xbf16>
    %53 = vector.extract_strided_slice %52 {offsets = [0, 0, 0], sizes = [16, 16, 8], strides = [1, 1, 1]} : vector<18x18x8xbf16> to vector<16x16x8xbf16>
    %54 = vector.extract_strided_slice %52 {offsets = [0, 1, 0], sizes = [16, 16, 8], strides = [1, 1, 1]} : vector<18x18x8xbf16> to vector<16x16x8xbf16>
    %55 = vector.extract_strided_slice %52 {offsets = [0, 2, 0], sizes = [16, 16, 8], strides = [1, 1, 1]} : vector<18x18x8xbf16> to vector<16x16x8xbf16>
    %56 = vector.extract_strided_slice %52 {offsets = [1, 0, 0], sizes = [16, 16, 8], strides = [1, 1, 1]} : vector<18x18x8xbf16> to vector<16x16x8xbf16>
    %57 = vector.extract_strided_slice %52 {offsets = [1, 1, 0], sizes = [16, 16, 8], strides = [1, 1, 1]} : vector<18x18x8xbf16> to vector<16x16x8xbf16>
    %58 = vector.extract_strided_slice %52 {offsets = [1, 2, 0], sizes = [16, 16, 8], strides = [1, 1, 1]} : vector<18x18x8xbf16> to vector<16x16x8xbf16>
    %59 = vector.extract_strided_slice %52 {offsets = [2, 0, 0], sizes = [16, 16, 8], strides = [1, 1, 1]} : vector<18x18x8xbf16> to vector<16x16x8xbf16>
    %60 = vector.extract_strided_slice %52 {offsets = [2, 1, 0], sizes = [16, 16, 8], strides = [1, 1, 1]} : vector<18x18x8xbf16> to vector<16x16x8xbf16>
    %61 = vector.extract_strided_slice %52 {offsets = [2, 2, 0], sizes = [16, 16, 8], strides = [1, 1, 1]} : vector<18x18x8xbf16> to vector<16x16x8xbf16>
    %62 = tpu.concatenate %53, %54, %55, %56, %57, %58, %59, %60, %61 in 2 : vector<16x16x8xbf16>, vector<16x16x8xbf16>, vector<16x16x8xbf16>, vector<16x16x8xbf16>, vector<16x16x8xbf16>, vector<16x16x8xbf16>, vector<16x16x8xbf16>, vector<16x16x8xbf16>, vector<16x16x8xbf16> -> vector<16x16x72xbf16>
    %63 = vector.shape_cast %62 : vector<16x16x72xbf16> to vector<256x72xbf16>
    %c0_16 = arith.constant 0 : index
    %c0_17 = arith.constant 0 : index
    %64 = vector.load %arg6[%c0_16, %c0_17] : memref<72x128xbf16, #tpu.memory_space<vmem>>, vector<72x128xbf16>
    %cst_18 = arith.constant dense<0.000000e+00> : vector<256x128xf32>
    %65 = tpu.matmul %63, %64, %cst_18 {dimension_numbers = #tpu.dot_dimension_numbers<[1], [0], [0], [1], [0, 0, 1, 1], [], []>} : vector<256x72xbf16>, vector<72x128xbf16>, vector<256x128xf32> -> vector<256x128xf32>
    %c0_19 = arith.constant 0 : index
    %c0_20 = arith.constant 0 : index
    %66 = vector.load %arg7[%c0_19, %c0_20] : memref<1x128xf32, #tpu.memory_space<vmem>>, vector<1x128xf32>
    %67 = vector.broadcast %66 : vector<1x128xf32> to vector<256x128xf32>
    %68 = arith.addf %65, %67 : vector<256x128xf32>
    %cst_21 = arith.constant 0.000000e+00 : f32
    %69 = vector.broadcast %cst_21 : f32 to vector<256x128xf32>
    %70 = arith.maximumf %68, %69 : vector<256x128xf32>
    %cst_22 = arith.constant dense<0.000000e+00> : vector<128xf32>
    %71 = vector.multi_reduction <add>, %70, %cst_22 [0] : vector<256x128xf32> to vector<128xf32>
    %72 = vector.shape_cast %71 : vector<128xf32> to vector<1x128xf32>
    %cst_23 = arith.constant 3.906250e-03 : f32
    %73 = vector.broadcast %cst_23 : f32 to vector<1x128xf32>
    %74 = arith.mulf %73, %72 : vector<1x128xf32>
    %75 = tpu.iota {dimensions = array<i32: 0>} : vector<8x1xi32>
    %76 = vector.broadcast %arg1 : i32 to vector<8x1xi32>
    %77 = arith.cmpi eq, %75, %76 : vector<8x1xi32>
    %78 = arith.extui %77 : vector<8x1xi1> to vector<8x1xi32>
    %79 = arith.sitofp %78 : vector<8x1xi32> to vector<8x1xf32>
    %c0_24 = arith.constant 0 : index
    %c0_25 = arith.constant 0 : index
    %80 = vector.load %arg11[%c0_24, %c0_25] : memref<8x128xf32, #tpu.memory_space<vmem>>, vector<8x128xf32>
    %81 = vector.broadcast %79 : vector<8x1xf32> to vector<8x128xf32>
    %82 = vector.broadcast %74 : vector<1x128xf32> to vector<8x128xf32>
    %83 = arith.mulf %81, %82 : vector<8x128xf32>
    %84 = arith.addf %80, %83 : vector<8x128xf32>
    %c0_26 = arith.constant 0 : index
    %c0_27 = arith.constant 0 : index
    %85 = vector.load %arg11[%c0_26, %c0_27] : memref<8x128xf32, #tpu.memory_space<vmem>>, vector<8x128xf32>
    tpu.vector_store %arg11[%c0_26, %c0_27], %84 {strides = array<i32>} : memref<8x128xf32, #tpu.memory_space<vmem>>, vector<8x128xf32>,
    %c7_i32 = arith.constant 7 : i32
    %86 = arith.cmpi eq, %arg1, %c7_i32 : i32
    %c0_i32_28 = arith.constant 0 : i32
    %87 = arith.cmpi eq, %arg2, %c0_i32_28 : i32
    %88 = arith.andi %86, %87 : i1
    %89 = arith.extui %88 : i1 to i32
    %c0_i32_29 = arith.constant 0 : i32
    %90 = arith.cmpi ne, %89, %c0_i32_29 : i32
    scf.if %90 {
      %c0_30 = arith.constant 0 : index
      %c0_31 = arith.constant 0 : index
      %91 = vector.load %arg11[%c0_30, %c0_31] : memref<8x128xf32, #tpu.memory_space<vmem>>, vector<8x128xf32>
      %c0_32 = arith.constant 0 : index
      %c0_33 = arith.constant 0 : index
      %92 = vector.load %arg8[%c0_32, %c0_33] : memref<128x128xf32, #tpu.memory_space<vmem>>, vector<128x128xf32>
      %cst_34 = arith.constant dense<0.000000e+00> : vector<8x128xf32>
      %93 = tpu.matmul %91, %92, %cst_34 {dimension_numbers = #tpu.dot_dimension_numbers<[1], [0], [0], [1], [0, 0, 1, 1], [], []>} : vector<8x128xf32>, vector<128x128xf32>, vector<8x128xf32> -> vector<8x128xf32>
      %c0_35 = arith.constant 0 : index
      %c0_36 = arith.constant 0 : index
      %94 = vector.load %arg9[%c0_35, %c0_36] : memref<1x128xf32, #tpu.memory_space<vmem>>, vector<1x128xf32>
      %95 = vector.broadcast %94 : vector<1x128xf32> to vector<8x128xf32>
      %96 = arith.addf %93, %95 : vector<8x128xf32>
      %c0_37 = arith.constant 0 : index
      %c0_38 = arith.constant 0 : index
      %97 = vector.load %arg10[%c0_37, %c0_38] : memref<8x128xf32, #tpu.memory_space<vmem>>, vector<8x128xf32>
      tpu.vector_store %arg10[%c0_37, %c0_38], %96 {strides = array<i32>} : memref<8x128xf32, #tpu.memory_space<vmem>>, vector<8x128xf32>,
    } else {
    }
    return
  }
  func.func @transform_0(%arg0: i32, %arg1: i32, %arg2: i32) -> (i32, i32, i32, i32) {
    %c8_i32 = arith.constant 8 : i32
    %0 = arith.muli %arg0, %c8_i32 : i32
    %1 = arith.addi %0, %arg1 : i32
    %c1_i32 = arith.constant 1 : i32
    %2 = arith.muli %1, %c1_i32 : i32
    %3 = arith.addi %2, %arg2 : i32
    %c0_i32 = arith.constant 0 : i32
    %c0_i32_0 = arith.constant 0 : i32
    %c0_i32_1 = arith.constant 0 : i32
    %c0_i32_2 = arith.constant 0 : i32
    return %3, %c0_i32, %c0_i32_0, %c0_i32_1 : i32, i32, i32, i32
  }
  func.func @transform_1(%arg0: i32, %arg1: i32, %arg2: i32) -> (i32, i32) {
    %c0_i32 = arith.constant 0 : i32
    %c0_i32_0 = arith.constant 0 : i32
    %c0_i32_1 = arith.constant 0 : i32
    return %c0_i32, %c0_i32_0 : i32, i32
  }
  func.func @transform_2(%arg0: i32, %arg1: i32, %arg2: i32) -> (i32, i32) {
    %c0_i32 = arith.constant 0 : i32
    %c0_i32_0 = arith.constant 0 : i32
    %c0_i32_1 = arith.constant 0 : i32
    return %c0_i32, %c0_i32_0 : i32, i32
  }
  func.func @transform_3(%arg0: i32, %arg1: i32, %arg2: i32) -> (i32, i32) {
    %c0_i32 = arith.constant 0 : i32
    %c0_i32_0 = arith.constant 0 : i32
    %c0_i32_1 = arith.constant 0 : i32
    return %c0_i32, %c0_i32_0 : i32, i32
  }
  func.func @transform_4(%arg0: i32, %arg1: i32, %arg2: i32) -> (i32, i32) {
    %c0_i32 = arith.constant 0 : i32
    %c0_i32_0 = arith.constant 0 : i32
    %c0_i32_1 = arith.constant 0 : i32
    return %c0_i32, %c0_i32_0 : i32, i32
  }
  func.func @transform_5(%arg0: i32, %arg1: i32, %arg2: i32) -> (i32, i32) {
    %c0_i32 = arith.constant 0 : i32
    %c0_i32_0 = arith.constant 0 : i32
    %c0_i32_1 = arith.constant 0 : i32
    return %c0_i32, %c0_i32_0 : i32, i32
  }
  func.func @transform_6(%arg0: i32, %arg1: i32, %arg2: i32) -> (i32, i32) {
    %c0_i32 = arith.constant 0 : i32
    %c0_i32_0 = arith.constant 0 : i32
    %c0_i32_1 = arith.constant 0 : i32
    return %c0_i32, %c0_i32_0 : i32, i32
  }
  func.func @transform_7(%arg0: i32, %arg1: i32, %arg2: i32) -> (i32, i32) {
    %c0_i32 = arith.constant 0 : i32
    %c0_i32_0 = arith.constant 0 : i32
    return %arg0, %c0_i32 : i32, i32
  }
}

</mosaic_0001>

<bundles_post_ra>
// kernel: tpu_custom_call.1
= control target key start
LH: loop header
LB: loop body
LE: loop exit
PB: predicated region body
PF: predicated region fallthrough
CT: control target
= control target key end

     0   :  { %12 = vsyncpa [#allocation4], 0  ;;  %s8454_s24 = smov 0   ;;  %s8456_s25 = smov 0   ;;  %s11745_s0 = inlined_call_operand.vmem [shape: bf16[8,20,20,3], index: 0, kind: input, shape index: {}]   ;;  %s11746_s1 = inlined_call_operand.vmem [shape: bf16[27,8], index: 1, kind: input, shape index: {}]   ;;  %s11747_s2 = inlined_call_operand.vmem [shape: f32[1,8], index: 2, kind: input, shape index: {}]   ;;  %s11748_s3 = inlined_call_operand.vmem [shape: bf16[72,128], index: 3, kind: input, shape index: {}]   ;;  %s11749_s4 = inlined_call_operand.vmem [shape: f32[1,128], index: 4, kind: input, shape index: {}]   ;;  %s11750_s5 = inlined_call_operand.vmem [shape: f32[128,128], index: 5, kind: input, shape index: {}]   ;;  %s11751_s6 = inlined_call_operand.vmem [shape: f32[1,128], index: 6, kind: input, shape index: {}]   ;;  %s11752_s7 = inlined_call_operand.hbm [shape: f32[8,128], index: 7, kind: output, shape index: {}]  }
   0x1   :  { %s8458_s26 = smov 0  }
   0x2 LB: > { %s7827_s27 = sadd.s32 4294967295, %s8386_s26   ;;  %s33_s28 = sadd.s32 1, %s8382_s25  ;;  %s8386_s26 = sphi %s8458_s26, %s18_s26   ;;  %s8382_s25 = sphi %s8456_s25, %s11891_s25   ;;  %s8378_s24 = sphi %s8454_s24, %s11890_s24  }
   0x3   : > { %p35_p0 = scmp.ge.s32.totalorder %s33_s28, 8  ;;  %p7830_p1 = scmp.ge.s32.totalorder %s8386_s26, 1 }
   0x4   : > { %p269_p2 = scmp.lt.s32.totalorder %s8386_s26, 9 }
   0x5   : > { %s11893_s28 = smov (%p35_p0, %s33_s28), 0 }
   0x6   : > { %p270_p3 = pnand %p7830_p1, %p269_p2 }
   0x8   : > { %273 = sbr.rel (%p270_p3) target bundleno = 1527 (0x5f7), region = 48 }
   0xd   : > { %p302_p4 = scmp.lt.s32.totalorder %s8378_s24, 7  ;;  %p311_p5 = scmp.eq.s32.totalorder %s8378_s24, 0 }
   0xe   : > { %v8388_v0 = vmov (%p311_p5), 0.0  }
   0xf   : > { %s303_s29 = scalar_select %p302_p4, %s8378_s24, 7  ;;  %317 = vst [vmem:[#allocation2] sm:$0xff] (%p311_p5), %v8388_v0 }
  0x10   : > { %316 = sbr.rel (!%p311_p5) target bundleno = 21 (0x15), region = 52 }
  0x11   : > { %s8180_s30 = smul.u32 240, %s303_s29 }
  0x13   : > { %s8481_s10 = scalar_lea.vmem %s11745_s0, %s8180_s30 }
  0x15 PF: > { %v8484_v1 = vld [vmem:[%s8481_s10 + $0x14] ss:$0 sps:$4 sm:$0x33]   ;;  %v8487_v2 = vld [vmem:[%s8481_s10 + $0x8] ss:$0 sps:$4 sm:$0x33]  }
  0x16   : > { %v8490_v3 = vld [vmem:[%s8481_s10] sm:$0xff]   ;;  %v546_v4 = vshll.u32 %v8484_v1, 16  ;;  %v550_v5 = vshrl.u32 %v8484_v1, 16  ;;  %v531_v6 = vshll.u32 %v8487_v2, 16  ;;  %v535_v7 = vshrl.u32 %v8487_v2, 16  ;;  %v8504_v15 = vld [vmem:[%s8481_s10 + $0xc] sm:$0xff]  }
  0x17   : > { %v8497_v8 = vld [vmem:[%s8481_s10 + $0x20] ss:$0 sps:$4 sm:$0x33]   ;;  %v524_v9 = vshrl.u32 %v8490_v3, 16  ;;  %vm522_vm0 = vsmask.f32 7424 }
  0x18   : > { %v548_v10 = vrot.slane %v546_v4, 1  ;;  %v526_v11 = vshll.u32 %v8490_v3, 16  ;;  %v533_v12 = vrot.slane %v531_v6, 1  ;;  %v561_v13 = vshll.u32 %v8497_v8, 16  ;;  %v8509_v18 = vld [vmem:[%s8481_s10 + $0x18] sm:$0xff]   ;;  %v8514_v23 = vld [vmem:[%s8481_s10 + $0x24] sm:$0xff]  }
  0x19   : > { %v565_v14 = vshrl.u32 %v8497_v8, 16  ;;  %v539_v21 = vshrl.u32 %v8504_v15, 16  ;;  %v541_v22 = vshll.u32 %v8504_v15, 16  ;;  %s8389_s11 = smov 3   ;;  %v554_v25 = vshrl.u32 %v8509_v18, 16  ;;  %v8530_v34 = vld [vmem:[%s8481_s10 + $0x30] sm:$0xff]  }
  0x1a   : > { %v8506_v16 = vor.u32 %v550_v5, %v548_v10  ;;  %v528_v17 = vrot.slane %v526_v11, 1  ;;  %v537_v19 = vor.u32 %v535_v7, %v533_v12  ;;  %v563_v20 = vrot.slane %v561_v13, 1  ;;  %v8524_v29 = vld [vmem:[%s8481_s10 + $0x2c] ss:$0 sps:$4 sm:$0x33]   ;;  %v8537_v38 = vld [vmem:[%s8481_s10 + $0x3c] sm:$0xff]  }
  0x1b   : > { %v556_v26 = vshll.u32 %v8509_v18, 16  ;;  %v543_v28 = vrot.slane %v541_v22, 1  ;;  %v569_v32 = vshrl.u32 %v8514_v23, 16  ;;  %v571_v33 = vshll.u32 %v8514_v23, 16  ;;  %v8549_v46 = vld [vmem:[%s8481_s10 + $0x48] sm:$0xff]   ;;  %v8576_v63 = vld [vmem:[%s8481_s10 + $0x54] sm:$0xff]  }
  0x1c   : > { %799 = vrot.lane.b32.xlu1 %v8506_v16, %s8389_s11  ;;  %v529_v24 = vor.u32 %v528_v17, %v524_v9  ;;  %795 = vrot.lane.b32.xlu0 %v537_v19, %s8389_s11  ;;  %v8521_v27 = vor.u32 %v565_v14, %v563_v20  ;;  %v576_v36 = vshll.u32 %v8524_v29, 16  ;;  %v8534_v37 = vld [vmem:[%s8481_s10 + $0x38] ss:$0 sps:$4 sm:$0x33]   ;;  %v580_v40 = vshrl.u32 %v8524_v29, 16  ;;  %s8390_s12 = smov 6  }
  0x1d   : > { %v558_v31 = vrot.slane %v556_v26, 1  ;;  %v544_v35 = vor.u32 %v543_v28, %v539_v21  ;;  %v573_v41 = vrot.slane %v571_v33, 1  ;;  %v591_v44 = vshll.u32 %v8534_v37, 16  ;;  %v8556_v50 = vld [vmem:[%s8481_s10 + $0x44] ss:$0 sps:$4 sm:$0x33]  }
  0x1e   : > { %v534_v30 = vsel %vm522_vm0, %v529_v24, %v533_v12  ;;  %v578_v43 = vrot.slane %v576_v36, 1  ;;  %v584_v45 = vshrl.u32 %v8530_v34, 16  ;;  %v586_v49 = vshll.u32 %v8530_v34, 16  ;;  %v8569_v58 = vld [vmem:[%s8481_s10 + $0x50] ss:$0 sps:$4 sm:$0x33]  }
  0x1f   : > { %v559_v39 = vor.u32 %v558_v31, %v554_v25  ;;  %v8544_v42 = vsel %vm522_vm0, %v544_v35, %v548_v10  ;;  %v574_v48 = vor.u32 %v573_v41, %v569_v32  ;;  %v595_v51 = vshrl.u32 %v8534_v37, 16  ;;  %v8585_v7 = vld [vmem:[%s8481_s10 + $0x5c] ss:$0 sps:$4 sm:$0x33]   ;;  %v8591_v10 = vld [vmem:[%s8481_s10 + $0x60] sm:$0xff]   ;;  %v8610_v25 = vld [vmem:[%s8481_s10 + $0x6c] sm:$0xff]  }
  0x20   : > { %803 = vrot.lane.b32.xlu1 %v8521_v27, %s8389_s11  ;;  %793 = vrot.lane.b32.xlu0 %v534_v30, %s8389_s11  ;;  %v601_v52 = vshll.u32 %v8537_v38, 16  ;;  %v8562_v53 = vor.u32 %v580_v40, %v578_v43  ;;  %v593_v54 = vrot.slane %v591_v44, 1  ;;  %v588_v55 = vrot.slane %v586_v49, 1  ;;  %v8598_v17 = vld [vmem:[%s8481_s10 + $0x68] ss:$0 sps:$4 sm:$0x33]  }
  0x21   : > { %v8552_v47 = vsel %vm522_vm0, %v559_v39, %v563_v20  ;;  %v606_v56 = vshll.u32 %v8556_v50, 16  ;;  %v599_v57 = vshrl.u32 %v8537_v38, 16  ;;  %v8572_v59 = vsel %vm522_vm0, %v574_v48, %v578_v43  ;;  %v8623_v39 = vld [vmem:[%s8481_s10 + $0x74] ss:$0 sps:$4 sm:$0x33]   ;;  %v8258_v48 = vld [vmem:[%s8481_s10 + $0x78] sm:$0xff]  }
  0x22   : > { %v589_v60 = vor.u32 %v588_v55, %v584_v45  ;;  %v603_v61 = vrot.slane %v601_v52, 1  ;;  %v616_v62 = vshll.u32 %v8549_v46, 16  ;;  %v610_v4 = vshrl.u32 %v8556_v50, 16  ;;  %v8257_v55 = vld [vmem:[%s8481_s10 + $0x80] ss:$0 sps:$4 sm:$0x33]  }
  0x23   : > { %v608_v0 = vrot.slane %v606_v56, 1  ;;  %v8581_v5 = vor.u32 %v595_v51, %v593_v54  ;;  %v621_v6 = vshll.u32 %v8569_v58, 16  ;;  %v614_v9 = vshrl.u32 %v8549_v46, 16  ;;  %s8391_s13 = smov 12   ;;  %s8392_s14 = smov 9  }
  0x24   : > { %797 = vrot.lane.b32.xlu1 %v8544_v42, %s8389_s11  ;;  %801 = vrot.lane.b32.xlu0 %v8552_v47, %s8389_s11  ;;  %v8594_v11 = vsel %vm522_vm0, %v589_v60, %v593_v54  ;;  %v604_v12 = vor.u32 %v603_v61, %v599_v57  ;;  %v618_v13 = vrot.slane %v616_v62, 1  ;;  %v631_v14 = vshll.u32 %v8576_v63, 16  ;;  %v8260_v61 = vld [vmem:[%s8481_s10 + $0x84] sm:$0xff]   ;;  %s8393_s15 = smov 18   ;;  %s8394_s16 = smov 15  }
  0x25   : > { %v8602_v19 = vor.u32 %v610_v4, %v608_v0  ;;  %v623_v20 = vrot.slane %v621_v6, 1  ;;  %v625_v21 = vshrl.u32 %v8569_v58, 16  ;;  %v636_v22 = vshll.u32 %v8585_v7, 16  ;;  %v8259_v4 = vld [vmem:[%s8481_s10 + $0x8c] ss:$0 sps:$4 sm:$0x33]  }
  0x26   : > { %v646_v24 = vshll.u32 %v8591_v10, 16  ;;  %v8613_v26 = vsel %vm522_vm0, %v604_v12, %v608_v0  ;;  %v619_v28 = vor.u32 %v618_v13, %v614_v9  ;;  %v629_v30 = vshrl.u32 %v8576_v63, 16  ;;  %s8396_s19 = smov 24   ;;  %s8398_s20 = smov 21  }
  0x27   : > { %v633_v31 = vrot.slane %v631_v14, 1  ;;  %v640_v32 = vshrl.u32 %v8585_v7, 16  ;;  %v651_v33 = vshll.u32 %v8598_v17, 16  ;;  %v8620_v35 = vor.u32 %v625_v21, %v623_v20  ;;  %s8404_s30 = smov 8   ;;  %s8405_s8 = smov 16  }
  0x28   : > { %807 = vrot.lane.b32.xlu1 %v8562_v53, %s8389_s11  ;;  %805 = vrot.lane.b32.xlu0 %v8572_v59, %s8389_s11  ;;  %v638_v36 = vrot.slane %v636_v22, 1  ;;  %v644_v40 = vshrl.u32 %v8591_v10, 16  ;;  %v648_v41 = vrot.slane %v646_v24, 1  ;;  %v661_v43 = vshll.u32 %v8610_v25, 16  ;;  %s8408_s18 = smov 48   ;;  %s8409_s22 = smov 56  }
  0x29   : > { %v8630_v44 = vsel %vm522_vm0, %v619_v28, %v623_v20  ;;  %v634_v45 = vor.u32 %v633_v31, %v629_v30  ;;  %v653_v49 = vrot.slane %v651_v33, 1  ;;  %v655_v51 = vshrl.u32 %v8598_v17, 16  ;;  %v8262_v28 = vld [vmem:[%s8481_s10 + $0x90] sm:$0xff]   ;;  %s8410_s9 = smov 64   ;;  %p7665_p6 = scmp.eq.s32.totalorder %s8378_s24, 7 }
  0x2a   : > { %v8636_v52 = vor.u32 %v640_v32, %v638_v36  ;;  %v666_v54 = vshll.u32 %v8623_v39, 16  ;;  %v649_v56 = vor.u32 %v648_v41, %v644_v40  ;;  %v659_v57 = vshrl.u32 %v8610_v25, 16 }
  0x2b   : > { %v663_v60 = vrot.slane %v661_v43, 1  ;;  %v8645_v62 = vsel %vm522_vm0, %v634_v45, %v638_v36  ;;  %v676_v0 = vshll.u32 %v8258_v48, 16  ;;  %v8650_v6 = vor.u32 %v655_v51, %v653_v49  ;;  %v8261_v36 = vld [vmem:[%s8481_s10 + $0x98] ss:$0 sps:$4 sm:$0x33]  }
  0x2c   : > { %811 = vrot.lane.b32.xlu1 %v8581_v5, %s8389_s11  ;;  %809 = vrot.lane.b32.xlu0 %v8594_v11, %s8389_s11  ;;  %v668_v9 = vrot.slane %v666_v54, 1  ;;  %v670_v12 = vshrl.u32 %v8623_v39, 16  ;;  %v681_v13 = vshll.u32 %v8257_v55, 16  ;;  %v8656_v14 = vsel %vm522_vm0, %v649_v56, %v653_v49  ;;  %v8264_v49 = vld [vmem:[%s8481_s10 + $0x9c] sm:$0xff]  }
  0x2d   : > { %v664_v20 = vor.u32 %v663_v60, %v659_v57  ;;  %v674_v21 = vshrl.u32 %v8258_v48, 16  ;;  %v678_v22 = vrot.slane %v676_v0, 1  ;;  %v691_v24 = vshll.u32 %v8260_v61, 16  ;;  %v8263_v57 = vld [vmem:[%s8481_s10 + $0xa4] ss:$0 sps:$4 sm:$0x33]  }
  0x2e   : > { %v685_v30 = vshrl.u32 %v8257_v55, 16  ;;  %v696_v31 = vshll.u32 %v8259_v4, 16  ;;  %v8661_v32 = vor.u32 %v670_v12, %v668_v9  ;;  %v683_v33 = vrot.slane %v681_v13, 1 }
  0x2f   : > { %v689_v40 = vshrl.u32 %v8260_v61, 16  ;;  %v8667_v41 = vsel %vm522_vm0, %v664_v20, %v668_v9  ;;  %v679_v43 = vor.u32 %v678_v22, %v674_v21  ;;  %v693_v45 = vrot.slane %v691_v24, 1  ;;  %v8266_v61 = vld [vmem:[%s8481_s10 + $0xa8] sm:$0xff]   ;;  %v8265_v24 = vld [vmem:[%s8481_s10 + $0xb0] ss:$0 sps:$4 sm:$0x33]  }
  0x30   : > { %815 = vrot.lane.b32.xlu1 %v8602_v19, %s8389_s11  ;;  %813 = vrot.lane.b32.xlu0 %v8613_v26, %s8389_s11  ;;  %v706_v48 = vshll.u32 %v8262_v28, 16  ;;  %v698_v51 = vrot.slane %v696_v31, 1  ;;  %v700_v54 = vshrl.u32 %v8259_v4, 16  ;;  %v8672_v55 = vor.u32 %v685_v30, %v683_v33  ;;  %v8268_v31 = vld [vmem:[%s8481_s10 + $0xb4] sm:$0xff]  }
  0x31   : > { %v711_v56 = vshll.u32 %v8261_v36, 16  ;;  %v704_v60 = vshrl.u32 %v8262_v28, 16  ;;  %v8679_v0 = vsel %vm522_vm0, %v679_v43, %v683_v33  ;;  %v694_v9 = vor.u32 %v693_v45, %v689_v40  ;;  %v8267_v45 = vld [vmem:[%s8481_s10 + $0xbc] ss:$0 sps:$4 sm:$0x33]  }
  0x32   : > { %11785 = vst [vmem:[#allocation6_spill] sm:$0xff] %v8672_v55  ;;  %v708_v4 = vrot.slane %v706_v48, 1  ;;  %v721_v12 = vshll.u32 %v8264_v49, 16  ;;  %v8683_v13 = vor.u32 %v700_v54, %v698_v51  ;;  %v715_v21 = vshrl.u32 %v8261_v36, 16 }
  0x33   : > { %v713_v20 = vrot.slane %v711_v56, 1  ;;  %v726_v22 = vshll.u32 %v8263_v57, 16  ;;  %v719_v28 = vshrl.u32 %v8264_v49, 16  ;;  %v736_v30 = vshll.u32 %v8266_v61, 16 }
  0x34   : > { %819 = vrot.lane.b32.xlu1 %v8620_v35, %s8389_s11  ;;  %817 = vrot.lane.b32.xlu0 %v8630_v44, %s8389_s11  ;;  %11786 = vst [vmem:[#allocation7_spill] sm:$0xff] %v8683_v13  ;;  %v8690_v33 = vsel %vm522_vm0, %v694_v9, %v698_v51  ;;  %v709_v40 = vor.u32 %v708_v4, %v704_v60  ;;  %v723_v43 = vrot.slane %v721_v12, 1  ;;  %v730_v48 = vshrl.u32 %v8263_v57, 16  ;;  %v8270_v57 = vld [vmem:[%s8481_s10 + $0xc0] sm:$0xff]  }
  0x35   : > { %11787 = vst [vmem:[#allocation8_spill] sm:$0xff] %v8690_v33  ;;  %v8695_v36 = vor.u32 %v715_v21, %v713_v20  ;;  %v728_v54 = vrot.slane %v726_v22, 1  ;;  %v741_v56 = vshll.u32 %v8265_v24, 16  ;;  %v734_v49 = vshrl.u32 %v8266_v61, 16 }
  0x36   : > { %v8700_v51 = vsel %vm522_vm0, %v709_v40, %v713_v20  ;;  %v724_v60 = vor.u32 %v723_v43, %v719_v28  ;;  %v751_v9 = vshll.u32 %v8268_v31, 16  ;;  %v745_v4 = vshrl.u32 %v8265_v24, 16  ;;  %v8269_v12 = vld [vmem:[%s8481_s10 + $0xc8] ss:$0 sps:$4 sm:$0x33]   ;;  %v8272_v40 = vld [vmem:[%s8481_s10 + $0xcc] sm:$0xff]  }
  0x37   : > { %11788 = vst [vmem:[#allocation9_spill] sm:$0xff] %v8695_v36  ;;  %v8706_v21 = vor.u32 %v730_v48, %v728_v54  ;;  %v743_v22 = vrot.slane %v741_v56, 1  ;;  %v749_v20 = vshrl.u32 %v8268_v31, 16  ;;  %v766_v24 = vshll.u32 %v8270_v57, 16 }
  0x38   : > { %823 = vrot.lane.b32.xlu1 %v8636_v52, %s8389_s11  ;;  %821 = vrot.lane.b32.xlu0 %v8645_v62, %s8389_s11  ;;  %v8712_v28 = vsel %vm522_vm0, %v724_v60, %v728_v54  ;;  %v753_v43 = vrot.slane %v751_v9, 1  ;;  %vm865_vm1 = vcmask 1046528   ;;  %vm4311_vm2 = vcmask 1044480  }
  0x39   : > { %11789 = vst [vmem:[#allocation10_spill] sm:$0xff] %v8706_v21  ;;  %v8717_v48 = vor.u32 %v745_v4, %v743_v22  ;;  %v768_v54 = vrot.slane %v766_v24, 1  ;;  %v775_v4 = vshrl.u32 %v8269_v12, 16  ;;  %vm4312_vm3 = vcmask 1045504  }
  0x3a   : > { %v754_v31 = vor.u32 %v753_v43, %v749_v20  ;;  %vm8399_vm4 = vmmov 0   ;;  %vm1549_vm5 = vcmask 48128   ;;  %vm1476_vm6 = vcmask 23552  }
  0x3b   : > { %11790 = vst [vmem:[#allocation11_spill] sm:$0xff] %v8717_v48  ;;  %vm1622_vm7 = vcmask 72704   ;;  %vm1695_vm8 = vcmask 97280   ;;  %vm1768_vm9 = vcmask 121856   ;;  %vm1841_vm10 = vcmask 146432  }
  0x3c   : > { %827 = vrot.lane.b32.xlu1 %v8650_v6, %s8389_s11  ;;  %825 = vrot.lane.b32.xlu0 %v8656_v14, %s8389_s11  ;;  %vm1914_vm11 = vcmask 171008   ;;  %vm1987_vm12 = vcmask 195584   ;;  %vm4247_vm13 = vcmask 220160  }
  0x40   : > { %831 = vrot.lane.b32.xlu1 %v8661_v32, %s8389_s11  ;;  %829 = vrot.lane.b32.xlu0 %v8667_v41, %s8389_s11 }
  0x44   : > { %835 = vrot.lane.b32.xlu1 %v8672_v55, %s8389_s11  ;;  %833 = vrot.lane.b32.xlu0 %v8679_v0, %s8389_s11  ;;  %v738_v55 = vrot.slane %v736_v30, 1  ;;  %v760_v30 = vshrl.u32 %v8267_v45, 16 }
  0x46   : > { %v739_v61 = vor.u32 %v738_v55, %v734_v49  ;;  %v781_v49 = vshll.u32 %v8272_v40, 16 }
  0x48   : > { %839 = vrot.lane.b32.xlu1 %v8683_v13, %s8389_s11  ;;  %837 = vrot.lane.b32.xlu0 %v8690_v33, %s8389_s11  ;;  %v756_v13 = vshll.u32 %v8267_v45, 16  ;;  %v8271_v33 = vld [vmem:[%s8481_s10 + $0xd4] ss:$0 sps:$4 sm:$0x33]   ;;  %v8722_v55 = vsel %vm522_vm0, %v739_v61, %v743_v22  ;;  %v764_v45 = vshrl.u32 %v8270_v57, 16  ;;  %v779_v61 = vshrl.u32 %v8272_v40, 16 }
  0x49   : > { %11791 = vst [vmem:[#allocation12_spill] sm:$0xff] %v8722_v55  ;;  %v783_v20 = vrot.slane %v781_v49, 1  ;;  %v872_v49 = vrot.slane %v8509_v18, 1 }
  0x4a   : > { %v758_v56 = vrot.slane %v756_v13, 1  ;;  %v769_v22 = vor.u32 %v768_v54, %v764_v45  ;;  %v869_v45 = vrot.slane %v8504_v15, 1  ;;  %v8767_v54 = vrot.slane %v8497_v8, 1 }
  0x4c   : > { %843 = vrot.lane.b32.xlu1 %v8695_v36, %s8389_s11  ;;  %841 = vrot.lane.b32.xlu0 %v8700_v51, %s8389_s11  ;;  %v771_v36 = vshll.u32 %v8269_v12, 16  ;;  %v8726_v60 = vor.u32 %v760_v30, %v758_v56  ;;  %v8731_v13 = vsel %vm522_vm0, %v754_v31, %v758_v56  ;;  %v790_v30 = vshrl.u32 %v8271_v33, 16 }
  0x4d   : > { %11793 = vst [vmem:[#allocation14_spill] sm:$0xff] %v8731_v13  ;;  %v784_v12 = vor.u32 %v783_v20, %v779_v61  ;;  %v8759_v31 = vrot.slane %v8484_v1, 1  ;;  %v8790_v20 = vrot.slane %v8534_v37, 1 }
  0x4e   : > { %11792 = vst [vmem:[#allocation13_spill] sm:$0xff] %v8726_v60  ;;  %v773_v9 = vrot.slane %v771_v36, 1 }
  0x50   : > { %847 = vrot.lane.b32.xlu1 %v8706_v21, %s8389_s11  ;;  %845 = vrot.lane.b32.xlu0 %v8712_v28, %s8389_s11  ;;  %v786_v21 = vshll.u32 %v8271_v33, 16  ;;  %v8735_v57 = vor.u32 %v775_v4, %v773_v9  ;;  %v8740_v36 = vsel %vm522_vm0, %v769_v22, %v773_v9  ;;  %v867_v33 = vrot.slane %v8487_v2, 1 }
  0x51   : > { %11795 = vst [vmem:[#allocation16_spill] sm:$0xff] %v8740_v36  ;;  %v871_v2 = vsel %vm865_vm1, %v869_v45, %v8759_v31  ;;  %v8775_v9 = vsel %vm865_vm1, %v872_v49, %v8767_v54  ;;  %v8778_v4 = vrot.slane %v8524_v29, 1  ;;  %v875_v22 = vrot.slane %v8514_v23, 1 }
  0x52   : > { %11794 = vst [vmem:[#allocation15_spill] sm:$0xff] %v8735_v57  ;;  %v788_v43 = vrot.slane %v786_v21, 1  ;;  %v866_v21 = vrot.slane %v8490_v3, 1  ;;  %v884_v45 = vrot.slane %v8549_v46, 1 }
  0x53   : > { %v8787_v61 = vsel %vm865_vm1, %v875_v22, %v8778_v4  ;;  %v8826_v22 = vrot.slane %v8585_v7, 1 }
  0x54   : > { %851 = vrot.lane.b32.xlu1 %v8717_v48, %s8389_s11  ;;  %849 = vrot.lane.b32.xlu0 %v8722_v55, %s8389_s11  ;;  %v8744_v24 = vor.u32 %v790_v30, %v788_v43  ;;  %v8749_v40 = vsel %vm522_vm0, %v784_v12, %v788_v43  ;;  %v868_v56 = vsel %vm865_vm1, %v866_v21, %v867_v33  ;;  %v878_v43 = vrot.slane %v8530_v34, 1 }
  0x55   : > { %11797 = vst [vmem:[#allocation18_spill] sm:$0xff] %v8749_v40  ;;  %v8802_v12 = vrot.slane %v8556_v50, 1 }
  0x56   : > { %11796 = vst [vmem:[#allocation17_spill] sm:$0xff] %v8744_v24  ;;  %v8799_v30 = vsel %vm865_vm1, %v878_v43, %v8790_v20  ;;  %v887_v43 = vrot.slane %v8576_v63, 1 }
  0x58   : > { %855 = vrot.lane.b32.xlu1 %v8726_v60, %s8389_s11  ;;  %853 = vrot.lane.b32.xlu0 %v8731_v13, %s8389_s11  ;;  %v11777_v13 = vmov 0.0  }
  0x59   : > { %8010 = vmatprep.subr.bf16.mxu0 %v11777_v13  ;;  %8175 = vmatprep.subr.bf16.mxu1 %v11777_v13 }
  0x5a   : > { %8014 = vmatprep.mubr.msk.bf16.mxu0 %vm8399_vm4, %v11777_v13  ;;  %8074 = vmatprep.mubr.msk.bf16.mxu1 %vm8399_vm4, %v11777_v13 }
  0x5c   : > { %859 = vrot.lane.b32.xlu1 %v8735_v57, %s8389_s11  ;;  %857 = vrot.lane.b32.xlu0 %v8740_v36, %s8389_s11 }
  0x60   : > { %863 = vrot.lane.b32.xlu1 %v8744_v24, %s8389_s11  ;;  %861 = vrot.lane.b32.xlu0 %v8749_v40, %s8389_s11  ;;  %v8838_v24 = vrot.slane %v8598_v17, 1  ;;  %v8850_v40 = vrot.slane %v8623_v39, 1 }
  0x64   : > { %922 = vrot.lane.b32.xlu1 %v867_v33, %s8390_s12  ;;  %920 = vrot.lane.b32.xlu0 %v868_v56, %s8390_s12  ;;  %v881_v33 = vrot.slane %v8537_v38, 1  ;;  %v8814_v56 = vrot.slane %v8569_v58, 1 }
  0x66   : > { %v8811_v21 = vsel %vm865_vm1, %v881_v33, %v8802_v12  ;;  %v8823_v49 = vsel %vm865_vm1, %v884_v45, %v8814_v56  ;;  %v8835_v33 = vsel %vm865_vm1, %v887_v43, %v8826_v22  ;;  %v890_v45 = vrot.slane %v8591_v10, 1 }
  0x67   : > { %v893_v43 = vrot.slane %v8610_v25, 1 }
  0x68   : > { %926 = vrot.lane.b32.xlu1 %v8759_v31, %s8390_s12  ;;  %924 = vrot.lane.b32.xlu0 %v871_v2, %s8390_s12  ;;  %v8847_v57 = vsel %vm865_vm1, %v890_v45, %v8838_v24  ;;  %v8395_v45 = vmov 65535  }
  0x69   : > { %v8859_v17 = vsel %vm865_vm1, %v893_v43, %v8850_v40  ;;  %v4313_v43 = vsel %vm4311_vm2, 4294967295, %v8395_v45  ;;  %vm7422_vm2 = vcmask 1043456  }
  0x6a   : > { %v4314_v60 = vsel %vm4312_vm3, %v4313_v43, 0  ;;  %vm7083_vm3 = vcmask 64512  }
  0x6c   : > { %930 = vrot.lane.b32.xlu1 %v8767_v54, %s8390_s12  ;;  %928 = vrot.lane.b32.xlu0 %v8775_v9, %s8390_s12 }
  0x70   : > { %934 = vrot.lane.b32.xlu1 %v8778_v4, %s8390_s12  ;;  %932 = vrot.lane.b32.xlu0 %v8787_v61, %s8390_s12 }
  0x74   : > { %938 = vrot.lane.b32.xlu1 %v8790_v20, %s8390_s12  ;;  %936 = vrot.lane.b32.xlu0 %v8799_v30, %s8390_s12 }
  0x78   : > { %942 = vrot.lane.b32.xlu1 %v8802_v12, %s8390_s12  ;;  %940 = vrot.lane.b32.xlu0 %v8811_v21, %s8390_s12 }
  0x7c   : > { %946 = vrot.lane.b32.xlu1 %v8814_v56, %s8390_s12  ;;  %944 = vrot.lane.b32.xlu0 %v8823_v49, %s8390_s12 }
  0x80   : > { %950 = vrot.lane.b32.xlu1 %v8826_v22, %s8390_s12  ;;  %948 = vrot.lane.b32.xlu0 %v8835_v33, %s8390_s12 }
  0x84   : > { %954 = vrot.lane.b32.xlu1 %v8838_v24, %s8390_s12  ;;  %952 = vrot.lane.b32.xlu0 %v8847_v57, %s8390_s12 }
  0x88   : > { %958 = vrot.lane.b32.xlu1 %v8850_v40, %s8390_s12  ;;  %956 = vrot.lane.b32.xlu0 %v8859_v17, %s8390_s12 }
  0x8c   : > { %1087 = vrot.lane.b32.xlu1 %v8544_v42, %s8391_s13  ;;  %1000 = vrot.lane.b32.xlu0 %v8504_v15, %s8392_s14  ;;  %v8273_v42 = vld [vmem:[%s11746_s1 + $0x8] sm:$0x3f]  }
  0x8d   : > { %v4316_v48 = vand.u32 %v8273_v42, %v4314_v60  ;;  %v8274_v60 = vld [vmem:[%s11746_s1] sm:$0xff]  }
  0x8e   : > { %v8869_v25 = vpop.permute.xlu1 %799  ;;  %v8871_v39 = vpop.permute.xlu0 %795 }
  0x8f   : > { %8011 = vmatpush3.bf16.msra.mxu0 %v4316_v48  ;;  %8177 = vmatpush3.bf16.msra.mxu1 %v4316_v48 }
  0x90   : > { %1242 = vrot.lane.b32.xlu1 %v8509_v18, %s8393_s15  ;;  %1162 = vrot.lane.b32.xlu0 %v871_v2, %s8394_s16 }
  0x91   : > { %8012 = vmatprep.subr.bf16.mxu0 %v11777_v13  ;;  %8176 = vmatprep.subr.bf16.mxu1 %v11777_v13 }
  0x92   : > { %v8879_v15 = vpop.permute.xlu1 %803  ;;  %v8881_v36 = vpop.permute.xlu0 %793 }
  0x93   : > { %8013 = vmatpush3.bf16.msra.mxu0 %v8274_v60  ;;  %8178 = vmatpush3.bf16.msra.mxu1 %v8274_v60 }
  0x94   : > { %1404 = vrot.lane.b32.xlu1 %v8775_v9, %s8396_s19  ;;  %1329 = vrot.lane.b32.xlu0 %v8552_v47, %s8398_s20 }
  0x96   : > { %v8888_v2 = vpop.permute.xlu1 %797  ;;  %v8892_v45 = vpop.permute.xlu0 %801 }
  0x98   : > { %1091 = vrot.lane.b32.xlu1 %v8552_v47, %s8391_s13  ;;  %1004 = vrot.lane.b32.xlu0 %v8509_v18, %s8392_s14 }
  0x9a   : > { %v8902_v42 = vpop.permute.xlu1 %807  ;;  %v8904_v43 = vpop.permute.xlu0 %805 }
  0x9c   : > { %1246 = vrot.lane.b32.xlu1 %v8514_v23, %s8393_s15  ;;  %1166 = vrot.lane.b32.xlu0 %v8775_v9, %s8394_s16 }
  0x9e   : > { %v8914_v18 = vpop.permute.xlu1 %811  ;;  %v8916_v47 = vpop.permute.xlu0 %809 }
  0xa0   : > { %1333 = vrot.lane.b32.xlu1 %v8572_v59, %s8398_s20  ;;  %1002 = vrot.lane.b32.xlu0 %v8484_v1, %s8392_s14 }
  0xa2   : > { %v8922_v48 = vpop.permute.xlu1 %815  ;;  %v8924_v60 = vpop.permute.xlu0 %813 }
  0xa4   : > { %1408 = vrot.lane.b32.xlu1 %v8787_v61, %s8396_s19  ;;  %1089 = vrot.lane.b32.xlu0 %v8506_v16, %s8391_s13 }
  0xa6   : > { %v8930_v9 = vpop.permute.xlu1 %819  ;;  %v8932_v13 = vpop.permute.xlu0 %817 }
  0xa7   : > { %11798 = vst [vmem:[#allocation19_spill] sm:$0xff] %v8930_v9 }
  0xa8   : > { %1244 = vrot.lane.b32.xlu1 %v8497_v8, %s8393_s15  ;;  %1164 = vrot.lane.b32.xlu0 %v8759_v31, %s8394_s16 }
  0xaa   : > { %v8938_v1 = vpop.permute.xlu1 %823  ;;  %v8940_v55 = vpop.permute.xlu0 %821 }
  0xab   : > { %11799 = vst [vmem:[#allocation20_spill] sm:$0xff] %v8938_v1 }
  0xac   : > { %1331 = vrot.lane.b32.xlu1 %v8521_v27, %s8398_s20  ;;  %1008 = vrot.lane.b32.xlu0 %v8514_v23, %s8392_s14 }
  0xae   : > { %v8946_v16 = vpop.permute.xlu1 %827  ;;  %v8948_v9 = vpop.permute.xlu0 %825 }
  0xaf   : > { %11800 = vst [vmem:[#allocation21_spill] sm:$0xff] %v8946_v16  ;;  %11801 = vst [vmem:[#allocation22_spill] sm:$0xff] %v8948_v9 }
  0xb0   : > { %1406 = vrot.lane.b32.xlu1 %v8767_v54, %s8396_s19  ;;  %1095 = vrot.lane.b32.xlu0 %v8572_v59, %s8391_s13 }
  0xb2   : > { %v8954_v31 = vpop.permute.xlu1 %831  ;;  %v8956_v1 = vpop.permute.xlu0 %829 }
  0xb3   : > { %11802 = vst [vmem:[#allocation23_spill] sm:$0xff] %v8954_v31  ;;  %11803 = vst [vmem:[#allocation24_spill] sm:$0xff] %v8956_v1  ;;  %v8400_v1 = vmov 1966171168  }
  0xb4   : > { %1250 = vrot.lane.b32.xlu1 %v8530_v34, %s8393_s15  ;;  %1170 = vrot.lane.b32.xlu0 %v8787_v61, %s8394_s16 }
  0xb6   : > { %v8962_v23 = vpop.permute.xlu1 %835  ;;  %v8964_v16 = vpop.permute.xlu0 %833 }
  0xb7   : > { %11804 = vst [vmem:[#allocation25_spill] sm:$0xff] %v8962_v23  ;;  %11805 = vst [vmem:[#allocation26_spill] sm:$0xff] %v8964_v16 }
  0xb8   : > { %1337 = vrot.lane.b32.xlu1 %v8594_v11, %s8398_s20  ;;  %1006 = vrot.lane.b32.xlu0 %v8497_v8, %s8392_s14 }
  0xba   : > { %v8970_v59 = vpop.permute.xlu1 %839  ;;  %v8972_v31 = vpop.permute.xlu0 %837 }
  0xbb   : > { %11806 = vst [vmem:[#allocation27_spill] sm:$0xff] %v8970_v59  ;;  %11807 = vst [vmem:[#allocation28_spill] sm:$0xff] %v8972_v31 }
  0xbc   : > { %1412 = vrot.lane.b32.xlu1 %v8799_v30, %s8396_s19  ;;  %1093 = vrot.lane.b32.xlu0 %v8521_v27, %s8391_s13 }
  0xbe   : > { %v8978_v61 = vpop.permute.xlu1 %843  ;;  %v8980_v23 = vpop.permute.xlu0 %841 }
  0xbf   : > { %11808 = vst [vmem:[#allocation29_spill] sm:$0xff] %v8978_v61  ;;  %11809 = vst [vmem:[#allocation30_spill] sm:$0xff] %v8980_v23 }
  0xc0   : > { %1248 = vrot.lane.b32.xlu1 %v8524_v29, %s8393_s15  ;;  %1168 = vrot.lane.b32.xlu0 %v8767_v54, %s8394_s16 }
  0xc2   : > { %v8986_v8 = vpop.permute.xlu1 %847  ;;  %v8988_v59 = vpop.permute.xlu0 %845 }
  0xc3   : > { %11810 = vst [vmem:[#allocation31_spill] sm:$0xff] %v8986_v8  ;;  %11811 = vst [vmem:[#allocation32_spill] sm:$0xff] %v8988_v59 }
  0xc4   : > { %1335 = vrot.lane.b32.xlu1 %v8562_v53, %s8398_s20  ;;  %1012 = vrot.lane.b32.xlu0 %v8530_v34, %s8392_s14 }
  0xc6   : > { %v8994_v27 = vpop.permute.xlu1 %851  ;;  %v8996_v61 = vpop.permute.xlu0 %849 }
  0xc7   : > { %11812 = vst [vmem:[#allocation33_spill] sm:$0xff] %v8994_v27  ;;  %11813 = vst [vmem:[#allocation34_spill] sm:$0xff] %v8996_v61 }
  0xc8   : > { %1410 = vrot.lane.b32.xlu1 %v8778_v4, %s8396_s19  ;;  %1099 = vrot.lane.b32.xlu0 %v8594_v11, %s8391_s13 }
  0xca   : > { %v9002_v54 = vpop.permute.xlu1 %855  ;;  %v9004_v8 = vpop.permute.xlu0 %853 }
  0xcb   : > { %11814 = vst [vmem:[#allocation35_spill] sm:$0xff] %v9002_v54  ;;  %11815 = vst [vmem:[#allocation36_spill] sm:$0xff] %v9004_v8 }
  0xcc   : > { %1254 = vrot.lane.b32.xlu1 %v8537_v38, %s8393_s15  ;;  %1174 = vrot.lane.b32.xlu0 %v8799_v30, %s8394_s16 }
  0xce   : > { %v9010_v34 = vpop.permute.xlu1 %859  ;;  %v9012_v27 = vpop.permute.xlu0 %857 }
  0xcf   : > { %11816 = vst [vmem:[#allocation37_spill] sm:$0xff] %v9010_v34  ;;  %11817 = vst [vmem:[#allocation38_spill] sm:$0xff] %v9012_v27 }
  0xd0   : > { %1341 = vrot.lane.b32.xlu1 %v8613_v26, %s8398_s20  ;;  %1010 = vrot.lane.b32.xlu0 %v8524_v29, %s8392_s14 }
  0xd2   : > { %v9018_v11 = vpop.permute.xlu1 %863  ;;  %v9020_v54 = vpop.permute.xlu0 %861 }
  0xd3   : > { %11818 = vst [vmem:[#allocation39_spill] sm:$0xff] %v9018_v11  ;;  %11819 = vst [vmem:[#allocation40_spill] sm:$0xff] %v9020_v54 }
  0xd4   : > { %1416 = vrot.lane.b32.xlu1 %v8811_v21, %s8396_s19  ;;  %1097 = vrot.lane.b32.xlu0 %v8562_v53, %s8391_s13 }
  0xd6   : > { %v9026_v30 = vpop.permute.xlu1 %922  ;;  %v921_v34 = vpop.permute.xlu0 %920 }
  0xd8   : > { %1252 = vrot.lane.b32.xlu1 %v8534_v37, %s8393_s15  ;;  %1172 = vrot.lane.b32.xlu0 %v8778_v4, %s8394_s16 }
  0xda   : > { %v9032_v29 = vpop.permute.xlu1 %926  ;;  %v9034_v11 = vpop.permute.xlu0 %924 }
  0xdc   : > { %1414 = vrot.lane.b32.xlu1 %v8790_v20, %s8396_s19  ;;  %1339 = vrot.lane.b32.xlu0 %v8581_v5, %s8398_s20 }
  0xde   : > { %v9040_v53 = vpop.permute.xlu1 %930  ;;  %v9042_v54 = vpop.permute.xlu0 %928 }
  0xe0   : > { %1103 = vrot.lane.b32.xlu1 %v8613_v26, %s8391_s13  ;;  %1016 = vrot.lane.b32.xlu0 %v8537_v38, %s8392_s14 }
  0xe2   : > { %v9048_v4 = vpop.permute.xlu1 %934  ;;  %v9050_v27 = vpop.permute.xlu0 %932 }
  0xe4   : > { %1178 = vrot.lane.b32.xlu1 %v8811_v21, %s8394_s16  ;;  %1014 = vrot.lane.b32.xlu0 %v8534_v37, %s8392_s14 }
  0xe6   : > { %v9056_v8 = vpop.permute.xlu1 %938  ;;  %v9058_v61 = vpop.permute.xlu0 %936 }
  0xe8   : > { %1258 = vrot.lane.b32.xlu1 %v8549_v46, %s8393_s15  ;;  %1101 = vrot.lane.b32.xlu0 %v8581_v5, %s8391_s13 }
  0xea   : > { %v9064_v38 = vpop.permute.xlu1 %942  ;;  %v9066_v26 = vpop.permute.xlu0 %940 }
  0xec   : > { %1345 = vrot.lane.b32.xlu1 %v8630_v44, %s8398_s20  ;;  %1176 = vrot.lane.b32.xlu0 %v8790_v20, %s8394_s16 }
  0xee   : > { %v9072_v37 = vpop.permute.xlu1 %946  ;;  %v9074_v21 = vpop.permute.xlu0 %944 }
  0xf0   : > { %1420 = vrot.lane.b32.xlu1 %v8823_v49, %s8396_s19  ;;  %1256 = vrot.lane.b32.xlu0 %v8556_v50, %s8393_s15 }
  0xf2   : > { %v9080_v5 = vpop.permute.xlu1 %950  ;;  %v9082_v59 = vpop.permute.xlu0 %948 }
  0xf3   : > { %11820 = vst [vmem:[#allocation41_spill] sm:$0xff] %v9080_v5 }
  0xf4   : > { %1418 = vrot.lane.b32.xlu1 %v8802_v12, %s8396_s19  ;;  %1343 = vrot.lane.b32.xlu0 %v8602_v19, %s8398_s20 }
  0xf6   : > { %v9088_v20 = vpop.permute.xlu1 %954  ;;  %v9090_v23 = vpop.permute.xlu0 %952 }
  0xf7   : > { %11821 = vst [vmem:[#allocation42_spill] sm:$0xff] %v9088_v20  ;;  %11822 = vst [vmem:[#allocation43_spill] sm:$0xff] %v9090_v23  ;;  %v2100_v23 = vlaneseq }
  0xf8   : > { %1107 = vrot.lane.b32.xlu1 %v8630_v44, %s8391_s13  ;;  %1020 = vrot.lane.b32.xlu0 %v8549_v46, %s8392_s14  ;;  %v1478_v44 = vsel %vm1476_vm6, %v8490_v3, %v8881_v36  ;;  %v2098_v46 = vunpack.c.l.s4 %v8400_v1 }
  0xf9   : > { %v9113_v3 = vshrl.u32 %v2100_v23, 7 }
  0xfa   : > { %v9096_v31 = vpop.permute.xlu1 %958  ;;  %v9098_v16 = vpop.permute.xlu0 %956 }
  0xfb   : > { %11823 = vst [vmem:[#allocation44_spill] sm:$0xff] %v9096_v31  ;;  %11824 = vst [vmem:[#allocation45_spill] sm:$0xff] %v9098_v16  ;;  %v1551_v31 = vsel %vm1549_vm5, %v1478_v44, %v921_v34 }
  0xfc   : > { %1182 = vrot.lane.b32.xlu1 %v8823_v49, %s8394_s16  ;;  %1018 = vrot.lane.b32.xlu0 %v8556_v50, %s8392_s14  ;;  %v2099_v49 = vunpack.c.0.s8 %v2098_v46  ;;  %11825 = vst [vmem:[#allocation46_spill] sm:$0xff] %v9113_v3 }
  0xfe   : > { %v1088_v20 = vpop.permute.xlu1 %1087  ;;  %v1001_v16 = vpop.permute.xlu0 %1000 }
  0xff   : > { %v1624_v9 = vsel %vm1622_vm7, %v1551_v31, %v1001_v16  ;;  %v9122_v16 = vsub.s32 %v2099_v49, %v9113_v3 }
 0x100   : > { %1262 = vrot.lane.b32.xlu1 %v8576_v63, %s8393_s15  ;;  %1105 = vrot.lane.b32.xlu0 %v8602_v19, %s8391_s13  ;;  %v1697_v36 = vsel %vm1695_vm8, %v1624_v9, %v1088_v20 }
 0x102   : > { %v1243_v50 = vpop.permute.xlu1 %1242  ;;  %v1163_v1 = vpop.permute.xlu0 %1162 }
 0x103   : > { %v1770_v34 = vsel %vm1768_vm9, %v1697_v36, %v1163_v1 }
 0x104   : > { %1349 = vrot.lane.b32.xlu1 %v8645_v62, %s8398_s20  ;;  %1180 = vrot.lane.b32.xlu0 %v8802_v12, %s8394_s16  ;;  %v1843_v31 = vsel %vm1841_vm10, %v1770_v34, %v1243_v50  ;;  %v8284_v12 = vld [vmem:[%s8481_s10 + $0xc] sm:$0xff]  }
 0x105   : > { %v1482_v44 = vsel %vm1476_vm6, %v8284_v12, %v8888_v2 }
 0x106   : > { %v1405_v19 = vpop.permute.xlu1 %1404  ;;  %v1330_v9 = vpop.permute.xlu0 %1329  ;;  %v1555_v50 = vsel %vm1549_vm5, %v1482_v44, %v9034_v11 }
 0x107   : > { %v1916_v23 = vsel %vm1914_vm11, %v1843_v31, %v1330_v9 }
 0x108   : > { %1424 = vrot.lane.b32.xlu1 %v8835_v33, %s8396_s19  ;;  %v1989_v20 = vsel %vm1987_vm12, %v1916_v23, %v1405_v19  ;;  %1260 = vrot.lane.b32.xlu0 %v8569_v58, %s8393_s15 }
 0x109   : > { %v2096_v46 = vcombine.high %v1989_v20, %v1989_v20  ;;  %v2103_v49 = vrot.slane %v1989_v20, %v9122_v16 }
 0x10a   : > { %v1092_v36 = vpop.permute.xlu1 %1091  ;;  %v1005_v1 = vpop.permute.xlu0 %1004 }
 0x10b   : > { %v2110_v34 = vrot.slane %v2096_v46, %v9122_v16  ;;  %v2111_v31 = vcombine.high %v2103_v49, %v2103_v49  ;;  %v1628_v19 = vsel %vm1622_vm7, %v1555_v50, %v1005_v1  ;;  %v2119_v9 = vrot.slane %v2103_v49, %v9122_v16 }
 0x10c   : > { %1422 = vrot.lane.b32.xlu1 %v8814_v56, %s8396_s19  ;;  %1347 = vrot.lane.b32.xlu0 %v8620_v35, %s8398_s20  ;;  %v1701_v11 = vsel %vm1695_vm8, %v1628_v19, %v1092_v36 }
 0x10d   : > { %v2112_v2 = vcombine.high %v2110_v34, %v2110_v34  ;;  %v2133_v23 = vrot.slane %v2111_v31, %v9122_v16  ;;  %v2126_v44 = vrot.slane %v2110_v34, %v9122_v16 }
 0x10e   : > { %v1247_v20 = vpop.permute.xlu1 %1246  ;;  %v1167_v12 = vpop.permute.xlu0 %1166 }
 0x10f   : > { %v2140_v46 = vrot.slane %v2112_v2, %v9122_v16  ;;  %v3241_v50 = vcombine.low %v2119_v9, %v2133_v23  ;;  %v7874_v1 = vcombine.high %v2119_v9, %v2133_v23  ;;  %v1774_v3 = vsel %vm1768_vm9, %v1701_v11, %v1167_v12 }
 0x110   : > { %1111 = vrot.lane.b32.xlu1 %v8645_v62, %s8391_s13  ;;  %1024 = vrot.lane.b32.xlu0 %v8576_v63, %s8392_s14  ;;  %v1847_v23 = vsel %vm1841_vm10, %v1774_v3, %v1247_v20 }
 0x111   : > { %v3243_v49 = vcombine.low %v2126_v44, %v2140_v46  ;;  %v7875_v31 = vcombine.high %v2126_v44, %v2140_v46  ;;  %v3251_v5 = vrot.slane %v3241_v50, %v9122_v16  ;;  %v3258_v36 = vrot.slane %v7874_v1, %v9122_v16 }
 0x112   : > { %v1334_v19 = vpop.permute.xlu1 %1333  ;;  %v1003_v34 = vpop.permute.xlu0 %1002 }
 0x113   : > { %v3265_v2 = vrot.slane %v3243_v49, %v9122_v16  ;;  %v3272_v9 = vrot.slane %v7875_v31, %v9122_v16  ;;  %v3273_v62 = vcombine.low %v3251_v5, %v3258_v36  ;;  %v1920_v63 = vsel %vm1914_vm11, %v1847_v23, %v1334_v19 }
 0x114   : > { %1186 = vrot.lane.b32.xlu1 %v8835_v33, %s8394_s16  ;;  %1022 = vrot.lane.b32.xlu0 %v8569_v58, %s8392_s14  ;;  %v8285_v58 = vld [vmem:[%s8481_s10 + $0x8] ss:$0 sps:$4 sm:$0x33]  }
 0x115   : > { %v3274_v12 = vcombine.low %v3265_v2, %v3272_v9  ;;  %v3281_v33 = vrot.slane %v3273_v62, %v9122_v16  ;;  %v1480_v3 = vsel %vm1476_vm6, %v8285_v58, %v8871_v39 }
 0x116   : > { %v1409_v11 = vpop.permute.xlu1 %1408  ;;  %v1090_v46 = vpop.permute.xlu0 %1089 }
 0x117   : > { %v1993_v44 = vsel %vm1987_vm12, %v1920_v63, %v1409_v11  ;;  %v3288_v5 = vrot.slane %v3274_v12, %v9122_v16 }
 0x118   : > { %v2159_v50 = vcombine.high %v1993_v44, %v1993_v44  ;;  %v2166_v1 = vrot.slane %v1993_v44, %v9122_v16  ;;  %1266 = vrot.lane.b32.xlu1 %v8591_v10, %s8393_s15  ;;  %1109 = vrot.lane.b32.xlu0 %v8620_v35, %s8391_s13  ;;  %v1553_v10 = vsel %vm1549_vm5, %v1480_v3, %v9026_v30  ;;  %v11826_v44 = vmov 0.0  }
 0x119   : > { %v3289_v36 = vcombine.low %v3281_v33, %v3288_v5  ;;  %v1626_v2 = vsel %vm1622_vm7, %v1553_v10, %v1003_v34 }
 0x11a   : > { %v2173_v20 = vrot.slane %v2159_v50, %v9122_v16  ;;  %v2174_v49 = vcombine.high %v2166_v1, %v2166_v1  ;;  %v1245_v31 = vpop.permute.xlu1 %1244  ;;  %v1165_v19 = vpop.permute.xlu0 %1164  ;;  %v2182_v39 = vrot.slane %v2166_v1, %v9122_v16  ;;  %v1699_v23 = vsel %vm1695_vm8, %v1626_v2, %v1090_v46 }
 0x11b   : > { %8015 = vmatmul.mubr.msk.bf16.vlgmr.msra.gmra.mxu0 %vm4247_vm13, %v3289_v36  ;;  %v1772_v11 = vsel %vm1768_vm9, %v1699_v23, %v1165_v19 }
 0x11c   : > { %v2175_v9 = vcombine.high %v2173_v20, %v2173_v20  ;;  %v2189_v62 = vrot.slane %v2173_v20, %v9122_v16  ;;  %v2196_v35 = vrot.slane %v2174_v49, %v9122_v16  ;;  %1353 = vrot.lane.b32.xlu1 %v8656_v14, %s8398_s20  ;;  %1184 = vrot.lane.b32.xlu0 %v8814_v56, %s8394_s16 }
 0x11d   : > { %8018 = vmatprep.mubr.msk.bf16.mxu0 %vm8399_vm4, %v11826_v44  ;;  %v1845_v46 = vsel %vm1841_vm10, %v1772_v11, %v1245_v31  ;;  %v2204_v56 = vcombine.high %v2182_v39, %v2182_v39  ;;  %v8286_v31 = vld [vmem:[%s8481_s10 + $0x18] sm:$0xff]   ;;  %v9217_v11 = vld [vmem:[%s8481_s10 + $0x60] sm:$0xff]  }
 0x11e   : > { %v9188_v30 = vrot.slane %v2175_v9, %v9122_v16  ;;  %v2205_v34 = vcombine.high %v2189_v62, %v2189_v62  ;;  %v2206_v63 = vcombine.high %v2196_v35, %v2196_v35  ;;  %v1332_v12 = vpop.permute.xlu1 %1331  ;;  %v1009_v50 = vpop.permute.xlu0 %1008  ;;  %v1486_v36 = vsel %vm1476_vm6, %v8286_v31, %v8892_v45 }
 0x11f   : > { %v1918_v5 = vsel %vm1914_vm11, %v1845_v46, %v1332_v12 }
 0x120   : > { %1428 = vrot.lane.b32.xlu1 %v8847_v57, %s8396_s19  ;;  %1264 = vrot.lane.b32.xlu0 %v8585_v7, %s8393_s15  ;;  %v3292_v1 = vcombine.low %v2206_v63, %v2189_v62  ;;  %v3293_v33 = vcombine.low %v9188_v30, %v2205_v34  ;;  %v3291_v7 = vcombine.low %v2196_v35, %v2204_v56  ;;  %v9222_v35 = vld [vmem:[%s8481_s10 + $0x5c] ss:$0 sps:$4 sm:$0x33]  }
 0x121   : > { %v1559_v62 = vsel %vm1549_vm5, %v1486_v36, %v9042_v54 }
 0x122   : > { %v1407_v58 = vpop.permute.xlu1 %1406  ;;  %v1096_v20 = vpop.permute.xlu0 %1095  ;;  %v3314_v10 = vrot.slane %v3292_v1, %v9122_v16  ;;  %v3321_v19 = vrot.slane %v3293_v33, %v9122_v16  ;;  %v1632_v45 = vsel %vm1622_vm7, %v1559_v62, %v1009_v50  ;;  %v3307_v12 = vrot.slane %v3291_v7, %v9122_v16 }
 0x123   : > { %v1991_v3 = vsel %vm1987_vm12, %v1918_v5, %v1407_v58  ;;  %v1705_v63 = vsel %vm1695_vm8, %v1632_v45, %v1096_v20 }
 0x124   : > { %v2151_v49 = vrot.slane %v1991_v3, %v9122_v16  ;;  %1426 = vrot.lane.b32.xlu1 %v8826_v22, %s8396_s19  ;;  %1351 = vrot.lane.b32.xlu0 %v8636_v52, %s8398_s20 }
 0x126   : > { %v2158_v2 = vrot.slane %v2151_v49, %v9122_v16  ;;  %v1251_v9 = vpop.permute.xlu1 %1250  ;;  %v1171_v23 = vpop.permute.xlu0 %1170 }
 0x127   : > { %v1778_v46 = vsel %vm1768_vm9, %v1705_v63, %v1171_v23 }
 0x128   : > { %v3290_v34 = vcombine.low %v2158_v2, %v2182_v39  ;;  %1028 = vrot.lane.b32.xlu1 %v9217_v11, %s8392_s14  ;;  %1026 = vrot.lane.b32.xlu0 %v9222_v35, %s8392_s14  ;;  %v3323_v39 = vcombine.low %v3314_v10, %v3321_v19  ;;  %v1851_v33 = vsel %vm1841_vm10, %v1778_v46, %v1251_v9 }
 0x12a   : > { %v3300_v54 = vrot.slane %v3290_v34, %v9122_v16  ;;  %v1338_v50 = vpop.permute.xlu1 %1337  ;;  %v1007_v56 = vpop.permute.xlu0 %1006  ;;  %v3337_v20 = vrot.slane %v3323_v39, %v9122_v16  ;;  %v9255_v34 = vld [vmem:[%s8481_s10 + $0x6c] sm:$0xff]  }
 0x12b   : > { %v1924_v5 = vsel %vm1914_vm11, %v1851_v33, %v1338_v50 }
 0x12c   : > { %v3322_v1 = vcombine.low %v3300_v54, %v3307_v12  ;;  %1115 = vrot.lane.b32.xlu1 %v8656_v14, %s8391_s13  ;;  %1113 = vrot.lane.b32.xlu0 %v8636_v52, %s8391_s13  ;;  %v8289_v52 = vld [vmem:[%s8481_s10 + $0x14] ss:$0 sps:$4 sm:$0x33]  }
 0x12d   : > { %v1484_v14 = vsel %vm1476_vm6, %v8289_v52, %v8869_v25  ;;  %v8291_v25 = vld [vmem:[%s8481_s10 + $0x68] ss:$0 sps:$4 sm:$0x33]   ;;  %v2207_v52 = vcombine.high %v9188_v30, %v9188_v30 }
 0x12e   : > { %v1413_v58 = vpop.permute.xlu1 %1412  ;;  %v3330_v3 = vrot.slane %v3322_v1, %v9122_v16  ;;  %v1094_v31 = vpop.permute.xlu0 %1093  ;;  %v1557_v9 = vsel %vm1549_vm5, %v1484_v14, %v9032_v29 }
 0x12f   : > { %v1997_v49 = vsel %vm1987_vm12, %v1924_v5, %v1413_v58 }
 0x130   : > { %v2222_v36 = vcombine.high %v1997_v49, %v1997_v49  ;;  %v2229_v7 = vrot.slane %v1997_v49, %v9122_v16  ;;  %v3338_v10 = vcombine.low %v3330_v3, %v3337_v20  ;;  %1190 = vrot.lane.b32.xlu1 %v8847_v57, %s8394_s16  ;;  %1188 = vrot.lane.b32.xlu0 %v8826_v22, %s8394_s16 }
 0x131   : > { %v1630_v57 = vsel %vm1622_vm7, %v1557_v9, %v1007_v56 }
 0x132   : > { %v2236_v19 = vrot.slane %v2222_v36, %v9122_v16  ;;  %v1249_v2 = vpop.permute.xlu1 %1248  ;;  %8019 = vmatmul.mubr.msk.bf16.gmra.mxu0 %vm4247_vm13, %v3338_v10  ;;  %v1169_v62 = vpop.permute.xlu0 %1168  ;;  %v2237_v23 = vcombine.high %v2229_v7, %v2229_v7  ;;  %v1703_v45 = vsel %vm1695_vm8, %v1630_v57, %v1094_v31  ;;  %v2245_v56 = vrot.slane %v2229_v7, %v9122_v16  ;;  %v8292_v31 = vld [vmem:[%s8481_s10 + $0x24] sm:$0xff]  }
 0x133   : > { %8022 = vmatprep.mubr.msk.bf16.mxu0 %vm8399_vm4, %v11826_v44  ;;  %v1776_v63 = vsel %vm1768_vm9, %v1703_v45, %v1169_v62  ;;  %v1490_v36 = vsel %vm1476_vm6, %v8292_v31, %v8904_v43 }
 0x134   : > { %v2238_v22 = vcombine.high %v2236_v19, %v2236_v19  ;;  %1270 = vrot.lane.b32.xlu1 %v9255_v34, %s8393_s15  ;;  %1268 = vrot.lane.b32.xlu0 %v8291_v25, %s8393_s15  ;;  %v9266_v46 = vrot.slane %v2236_v19, %v9122_v16  ;;  %v2259_v50 = vrot.slane %v2237_v23, %v9122_v16 }
 0x135   : > { %v1849_v39 = vsel %vm1841_vm10, %v1776_v63, %v1249_v2  ;;  %v1563_v2 = vsel %vm1549_vm5, %v1490_v36, %v9050_v27 }
 0x136   : > { %v9262_v29 = vrot.slane %v2238_v22, %v9122_v16  ;;  %v1336_v12 = vpop.permute.xlu1 %1335  ;;  %v1013_v54 = vpop.permute.xlu0 %1012  ;;  %v7876_v20 = vcombine.high %v2245_v56, %v2259_v50  ;;  %v3340_v7 = vcombine.low %v2245_v56, %v2259_v50 }
 0x137   : > { %v1922_v33 = vsel %vm1914_vm11, %v1849_v39, %v1336_v12  ;;  %v1636_v62 = vsel %vm1622_vm7, %v1563_v2, %v1013_v54  ;;  %v9304_v39 = vld [vmem:[%s8481_s10 + $0x74] ss:$0 sps:$4 sm:$0x33]  }
 0x138   : > { %1357 = vrot.lane.b32.xlu1 %v8667_v41, %s8398_s20  ;;  %1355 = vrot.lane.b32.xlu0 %v8650_v6, %s8398_s20  ;;  %v3342_v1 = vcombine.low %v9266_v46, %v9262_v29  ;;  %v3363_v9 = vrot.slane %v7876_v20, %v9122_v16  ;;  %v3356_v30 = vrot.slane %v3340_v7, %v9122_v16 }
 0x13a   : > { %v1411_v5 = vpop.permute.xlu1 %1410  ;;  %v1100_v3 = vpop.permute.xlu0 %1099  ;;  %v3370_v10 = vrot.slane %v3342_v1, %v9122_v16 }
 0x13b   : > { %v1995_v58 = vsel %vm1987_vm12, %v1922_v33, %v1411_v5  ;;  %v1709_v23 = vsel %vm1695_vm8, %v1636_v62, %v1100_v3  ;;  %v9340_v62 = vld [vmem:[%s8481_s10 + $0x78] sm:$0xff]  }
 0x13c   : > { %v2214_v49 = vrot.slane %v1995_v58, %v9122_v16  ;;  %1432 = vrot.lane.b32.xlu1 %v8859_v17, %s8396_s19  ;;  %1430 = vrot.lane.b32.xlu0 %v8838_v24, %s8396_s19  ;;  %v3372_v22 = vcombine.low %v3363_v9, %v3370_v10 }
 0x13e   : > { %v2221_v14 = vrot.slane %v2214_v49, %v9122_v16  ;;  %v1255_v19 = vpop.permute.xlu1 %1254  ;;  %v1175_v43 = vpop.permute.xlu0 %1174  ;;  %v3386_v1 = vrot.slane %v3372_v22, %v9122_v16  ;;  %v8294_v49 = vld [vmem:[%s8481_s10 + $0x20] ss:$0 sps:$4 sm:$0x33]  }
 0x13f   : > { %v1782_v27 = vsel %vm1768_vm9, %v1709_v23, %v1175_v43  ;;  %v1488_v31 = vsel %vm1476_vm6, %v8294_v49, %v8879_v15  ;;  %v9344_v23 = vld [vmem:[%s8481_s10 + $0x80] ss:$0 sps:$4 sm:$0x33]  }
 0x140   : > { %v3339_v57 = vcombine.low %v2207_v52, %v2221_v14  ;;  %1117 = vrot.lane.b32.xlu1 %v8650_v6, %s8391_s13  ;;  %1030 = vrot.lane.b32.xlu0 %v8291_v25, %s8392_s14  ;;  %v1855_v54 = vsel %vm1841_vm10, %v1782_v27, %v1255_v19 }
 0x142   : > { %v3349_v45 = vrot.slane %v3339_v57, %v9122_v16  ;;  %v1342_v63 = vpop.permute.xlu1 %1341  ;;  %v1011_v12 = vpop.permute.xlu0 %1010  ;;  %v896_v57 = vrot.slane %v9340_v62, 1 }
 0x143   : > { %v1928_v6 = vsel %vm1914_vm11, %v1855_v54, %v1342_v63 }
 0x144   : > { %v3371_v50 = vcombine.low %v3349_v45, %v3356_v30  ;;  %1272 = vrot.lane.b32.xlu1 %v9304_v39, %s8393_s15  ;;  %1192 = vrot.lane.b32.xlu0 %v8838_v24, %s8394_s16  ;;  %v1561_v24 = vsel %vm1549_vm5, %v1488_v31, %v9040_v53  ;;  %v9347_v30 = vrot.slane %v9344_v23, 1 }
 0x145   : > { %v1634_v10 = vsel %vm1622_vm7, %v1561_v24, %v1011_v12  ;;  %v8297_v24 = vld [vmem:[%s8481_s10 + $0x30] sm:$0xff]  }
 0x146   : > { %v1417_v25 = vpop.permute.xlu1 %1416  ;;  %v3379_v56 = vrot.slane %v3371_v50, %v9122_v16  ;;  %v1098_v5 = vpop.permute.xlu0 %1097 }
 0x147   : > { %v2001_v33 = vsel %vm1987_vm12, %v1928_v6, %v1417_v25  ;;  %v1707_v53 = vsel %vm1695_vm8, %v1634_v10, %v1098_v5  ;;  %v9363_v6 = vsel %vm865_vm1, %v896_v57, %v9347_v30 }
 0x148   : > { %v2285_v58 = vcombine.high %v2001_v33, %v2001_v33  ;;  %v2292_v3 = vrot.slane %v2001_v33, %v9122_v16  ;;  %v3387_v20 = vcombine.low %v3379_v56, %v3386_v1  ;;  %1359 = vrot.lane.b32.xlu1 %v8661_v32, %s8398_s20  ;;  %1032 = vrot.lane.b32.xlu0 %v9255_v34, %s8392_s14 }
 0x149   : > { %v7877_v33 = vcombine.high %v9266_v46, %v9262_v29 }
 0x14a   : > { %v2300_v36 = vcombine.high %v2292_v3, %v2292_v3  ;;  %v1253_v7 = vpop.permute.xlu1 %1252  ;;  %8023 = vmatmul.mubr.msk.bf16.gmra.mxu0 %vm4247_vm13, %v3387_v20  ;;  %v9327_v52 = vrot.slane %v2285_v58, %v9122_v16  ;;  %v2308_v15 = vrot.slane %v2292_v3, %v9122_v16  ;;  %v1173_v14 = vpop.permute.xlu0 %1172 }
 0x14b   : > { %8026 = vmatprep.mubr.msk.bf16.mxu0 %vm8399_vm4, %v11826_v44  ;;  %v1780_v2 = vsel %vm1768_vm9, %v1707_v53, %v1173_v14  ;;  %v3398_v31 = vrot.slane %v7877_v33, %v9122_v16  ;;  %v8298_v53 = vld [vmem:[%s8481_s10 + $0x84] sm:$0xff]  }
 0x14c   : > { %v2322_v19 = vrot.slane %v2300_v36, %v9122_v16  ;;  %1434 = vrot.lane.b32.xlu1 %v8850_v40, %s8396_s19  ;;  %1119 = vrot.lane.b32.xlu0 %v8667_v41, %s8391_s13  ;;  %v9351_v22 = vrot.slane %v9327_v52, %v9122_v16  ;;  %v2330_v45 = vcombine.high %v2308_v15, %v2308_v15 }
 0x14d   : > { %v1853_v63 = vsel %vm1841_vm10, %v1780_v2, %v1253_v7  ;;  %v1494_v36 = vsel %vm1476_vm6, %v8297_v24, %v8916_v47 }
 0x14e   : > { %v2332_v43 = vcombine.high %v2322_v19, %v2322_v19  ;;  %v1415_v9 = vpop.permute.xlu1 %1414  ;;  %v1340_v27 = vpop.permute.xlu0 %1339  ;;  %v3390_v25 = vcombine.low %v2322_v19, %v2330_v45  ;;  %v1567_v10 = vsel %vm1549_vm5, %v1494_v36, %v9058_v61 }
 0x14f   : > { %v1926_v12 = vsel %vm1914_vm11, %v1853_v63, %v1340_v27 }
 0x150   : > { %v3391_v41 = vcombine.low %v2332_v43, %v9351_v22  ;;  %1274 = vrot.lane.b32.xlu1 %v9340_v62, %s8393_s15  ;;  %1194 = vrot.lane.b32.xlu0 %v8859_v17, %s8394_s16  ;;  %v1999_v50 = vsel %vm1987_vm12, %v1926_v12, %v1415_v9  ;;  %v3412_v3 = vrot.slane %v3390_v25, %v9122_v16  ;;  %v899_v43 = vrot.slane %v8298_v53, 1  ;;  %v9394_v9 = vld [vmem:[%s8481_s10 + $0x8c] ss:$0 sps:$4 sm:$0x33]   ;;  %v11827_v12 = vld [vmem:[#allocation8_spill] sm:$0xff] }
 0x151   : > { %v2277_v56 = vrot.slane %v1999_v50, %v9122_v16  ;;  %v9397_v61 = vrot.slane %v9394_v9, 1  ;;  %v8300_v50 = vld [vmem:[%s8481_s10 + $0x2c] ss:$0 sps:$4 sm:$0x33]  }
 0x152   : > { %v1104_v54 = vpop.permute.xlu1 %1103  ;;  %v1017_v1 = vpop.permute.xlu0 %1016  ;;  %v3419_v5 = vrot.slane %v3391_v41, %v9122_v16  ;;  %v1492_v25 = vsel %vm1476_vm6, %v8300_v50, %v8902_v42  ;;  %v2301_v42 = vcombine.high %v9327_v52, %v9327_v52  ;;  %v8301_v50 = vld [vmem:[%s8481_s10 + $0x3c] sm:$0xff]  }
 0x153   : > { %v2284_v58 = vrot.slane %v2277_v56, %v9122_v16  ;;  %v1640_v19 = vsel %vm1622_vm7, %v1567_v10, %v1017_v1  ;;  %v9413_v1 = vsel %vm865_vm1, %v899_v43, %v9397_v61  ;;  %v1565_v33 = vsel %vm1549_vm5, %v1492_v25, %v9048_v4 }
 0x154   : > { %1436 = vrot.lane.b32.xlu1 %v9363_v6, %s8396_s19  ;;  %1361 = vrot.lane.b32.xlu0 %v8679_v0, %s8398_s20  ;;  %v3421_v46 = vcombine.low %v3412_v3, %v3419_v5  ;;  %v1713_v57 = vsel %vm1695_vm8, %v1640_v19, %v1104_v54  ;;  %v2329_v52 = vrot.slane %v2301_v42, %v9122_v16 }
 0x155   : > { %v3389_v20 = vcombine.low %v2284_v58, %v2308_v15  ;;  %v1498_v25 = vsel %vm1476_vm6, %v8301_v50, %v8924_v60 }
 0x156   : > { %v1179_v17 = vpop.permute.xlu1 %1178  ;;  %v1015_v49 = vpop.permute.xlu0 %1014  ;;  %v3435_v2 = vrot.slane %v3421_v46, %v9122_v16 }
 0x157   : > { %v3405_v29 = vrot.slane %v3389_v20, %v9122_v16  ;;  %v1786_v63 = vsel %vm1768_vm9, %v1713_v57, %v1179_v17  ;;  %v1638_v17 = vsel %vm1622_vm7, %v1565_v33, %v1015_v49  ;;  %v1571_v33 = vsel %vm1549_vm5, %v1498_v25, %v9066_v26 }
 0x158   : > { %1123 = vrot.lane.b32.xlu1 %v8679_v0, %s8391_s13  ;;  %1036 = vrot.lane.b32.xlu0 %v9340_v62, %s8392_s14 }
 0x159   : > { %v3420_v14 = vcombine.low %v3398_v31, %v3405_v29 }
 0x15a   : > { %v1259_v7 = vpop.permute.xlu1 %1258  ;;  %v1102_v15 = vpop.permute.xlu0 %1101 }
 0x15b   : > { %v3428_v0 = vrot.slane %v3420_v14, %v9122_v16  ;;  %v1859_v41 = vsel %vm1841_vm10, %v1786_v63, %v1259_v7  ;;  %v1711_v3 = vsel %vm1695_vm8, %v1638_v17, %v1102_v15  ;;  %v2331_v7 = vcombine.high %v9351_v22, %v9351_v22 }
 0x15c   : > { %1278 = vrot.lane.b32.xlu1 %v8298_v53, %s8393_s15  ;;  %1198 = vrot.lane.b32.xlu0 %v9363_v6, %s8394_s16 }
 0x15d   : > { %v3436_v27 = vcombine.low %v3428_v0, %v3435_v2  ;;  %v2333_v2 = vcombine.high %v2329_v52, %v2329_v52 }
 0x15e   : > { %v1346_v47 = vpop.permute.xlu1 %1345  ;;  %v1177_v45 = vpop.permute.xlu0 %1176 }
 0x15f   : > { %8027 = vmatmul.mubr.msk.bf16.gmra.mxu0 %vm4247_vm13, %v3436_v27  ;;  %v1932_v56 = vsel %vm1914_vm11, %v1859_v41, %v1346_v47  ;;  %v1784_v20 = vsel %vm1768_vm9, %v1711_v3, %v1177_v45  ;;  %v3437_v47 = vcombine.low %v2329_v52, %v2331_v7  ;;  %v8302_v52 = vld [vmem:[%s8481_s10 + $0x90] sm:$0xff]  }
 0x160   : > { %1365 = vrot.lane.b32.xlu1 %v11827_v12, %s8398_s20  ;;  %1034 = vrot.lane.b32.xlu0 %v9304_v39, %s8392_s14 }
 0x161   : > { %8030 = vmatprep.mubr.msk.bf16.mxu0 %vm8399_vm4, %v11826_v44 }
 0x162   : > { %v1421_v54 = vpop.permute.xlu1 %1420  ;;  %v1257_v58 = vpop.permute.xlu0 %1256 }
 0x163   : > { %v2005_v5 = vsel %vm1987_vm12, %v1932_v56, %v1421_v54  ;;  %v1857_v29 = vsel %vm1841_vm10, %v1784_v20, %v1257_v58 }
 0x164   : > { %v2355_v39 = vrot.slane %v2005_v5, %v9122_v16  ;;  %1440 = vrot.lane.b32.xlu1 %v9413_v1, %s8396_s19  ;;  %1121 = vrot.lane.b32.xlu0 %v8661_v32, %s8391_s13  ;;  %v2348_v56 = vcombine.high %v2005_v5, %v2005_v5 }
 0x166   : > { %v2363_v31 = vcombine.high %v2355_v39, %v2355_v39  ;;  %v1419_v4 = vpop.permute.xlu1 %1418  ;;  %v1344_v46 = vpop.permute.xlu0 %1343  ;;  %v2371_v49 = vrot.slane %v2355_v39, %v9122_v16  ;;  %v2362_v5 = vrot.slane %v2348_v56, %v9122_v16 }
 0x167   : > { %v1930_v36 = vsel %vm1914_vm11, %v1857_v29, %v1344_v46 }
 0x168   : > { %v2385_v24 = vrot.slane %v2363_v31, %v9122_v16  ;;  %v2003_v10 = vsel %vm1987_vm12, %v1930_v36, %v1419_v4  ;;  %960 = vrot.lane.b32.xlu1 %v9363_v6, %s8390_s12  ;;  %1196 = vrot.lane.b32.xlu0 %v8850_v40, %s8394_s16  ;;  %v3447_v40 = vrot.slane %v3437_v47, %v9122_v16 }
 0x169   : > { %v2340_v14 = vrot.slane %v2003_v10, %v9122_v16  ;;  %v2364_v29 = vcombine.high %v2362_v5, %v2362_v5 }
 0x16a   : > { %v3439_v32 = vcombine.low %v2371_v49, %v2385_v24  ;;  %v7878_v15 = vcombine.high %v2371_v49, %v2385_v24  ;;  %v1108_v19 = vpop.permute.xlu1 %1107  ;;  %v1021_v0 = vpop.permute.xlu0 %1020  ;;  %v8303_v24 = vld [vmem:[%s8481_s10 + $0x38] ss:$0 sps:$4 sm:$0x33]  }
 0x16b   : > { %v2347_v57 = vrot.slane %v2340_v14, %v9122_v16  ;;  %v1644_v17 = vsel %vm1622_vm7, %v1571_v33, %v1021_v0  ;;  %v1496_v36 = vsel %vm1476_vm6, %v8303_v24, %v8914_v18  ;;  %v2392_v18 = vrot.slane %v2364_v29, %v9122_v16 }
 0x16c   : > { %v3461_v43 = vrot.slane %v3439_v32, %v9122_v16  ;;  %v3468_v22 = vrot.slane %v7878_v15, %v9122_v16  ;;  %1040 = vrot.lane.b32.xlu1 %v8298_v53, %s8392_s14  ;;  %1276 = vrot.lane.b32.xlu0 %v9344_v23, %s8393_s15  ;;  %v11828_v53 = vld [vmem:[#allocation6_spill] sm:$0xff]  ;;  %v1717_v26 = vsel %vm1695_vm8, %v1644_v17, %v1108_v19  ;;  %v902_v32 = vrot.slane %v8302_v52, 1  ;;  %v9484_v15 = vld [vmem:[%s8481_s10 + $0x98] ss:$0 sps:$4 sm:$0x33]  }
 0x16d   : > { %v3438_v45 = vcombine.low %v2333_v2, %v2347_v57  ;;  %v1569_v14 = vsel %vm1549_vm5, %v1496_v36, %v9056_v8 }
 0x16e   : > { %v1183_v6 = vpop.permute.xlu1 %1182  ;;  %v1019_v27 = vpop.permute.xlu0 %1018  ;;  %v3470_v63 = vcombine.low %v3461_v43, %v3468_v22 }
 0x16f   : > { %v3454_v41 = vrot.slane %v3438_v45, %v9122_v16  ;;  %v1790_v31 = vsel %vm1768_vm9, %v1717_v26, %v1183_v6  ;;  %v1642_v0 = vsel %vm1622_vm7, %v1569_v14, %v1019_v27  ;;  %v2378_v45 = vrot.slane %v2362_v5, %v9122_v16 }
 0x170   : > { %1127 = vrot.lane.b32.xlu1 %v11827_v12, %s8391_s13  ;;  %1363 = vrot.lane.b32.xlu0 %v11828_v53, %s8398_s20  ;;  %v3484_v60 = vrot.slane %v3470_v63, %v9122_v16 }
 0x171   : > { %v3469_v42 = vcombine.low %v3447_v40, %v3454_v41  ;;  %v3486_v63 = vcombine.low %v2378_v45, %v2392_v18  ;;  %v7879_v50 = vcombine.high %v2378_v45, %v2392_v18  ;;  %v9548_v18 = vld [vmem:[%s8481_s10 + $0xa4] ss:$0 sps:$4 sm:$0x33]  }
 0x172   : > { %v1263_v54 = vpop.permute.xlu1 %1262  ;;  %v1106_v58 = vpop.permute.xlu0 %1105 }
 0x173   : > { %v3477_v12 = vrot.slane %v3469_v42, %v9122_v16  ;;  %v1863_v4 = vsel %vm1841_vm10, %v1790_v31, %v1263_v54  ;;  %v1715_v2 = vsel %vm1695_vm8, %v1642_v0, %v1106_v58  ;;  %v3496_v58 = vrot.slane %v3486_v63, %v9122_v16 }
 0x174   : > { %1202 = vrot.lane.b32.xlu1 %v9413_v1, %s8394_s16  ;;  %1438 = vrot.lane.b32.xlu0 %v9347_v30, %s8396_s19  ;;  %v3503_v17 = vrot.slane %v7879_v50, %v9122_v16 }
 0x175   : > { %v3485_v20 = vcombine.low %v3477_v12, %v3484_v60 }
 0x176   : > { %v1350_v39 = vpop.permute.xlu1 %1349  ;;  %v1181_v3 = vpop.permute.xlu0 %1180  ;;  %v3518_v24 = vcombine.low %v3496_v58, %v3503_v17 }
 0x177   : > { %8031 = vmatmul.mubr.msk.bf16.gmra.mxu0 %vm4247_vm13, %v3485_v20  ;;  %v1936_v46 = vsel %vm1914_vm11, %v1863_v4, %v1350_v39  ;;  %v1788_v43 = vsel %vm1768_vm9, %v1715_v2, %v1181_v3  ;;  %v11829_v3 = vld [vmem:[#allocation7_spill] sm:$0xff]  ;;  %v8305_v20 = vld [vmem:[%s8481_s10 + $0x48] sm:$0xff]   ;;  %v9551_v2 = vrot.slane %v9548_v18, 1 }
 0x178   : > { %1038 = vrot.lane.b32.xlu1 %v9344_v23, %s8392_s14  ;;  %1282 = vrot.lane.b32.xlu0 %v8302_v52, %s8393_s15  ;;  %v9487_v23 = vrot.slane %v9484_v15, 1  ;;  %v1502_v31 = vsel %vm1476_vm6, %v8305_v20, %v8932_v13  ;;  %v3526_v0 = vrot.slane %v3518_v24, %v9122_v16 }
 0x179   : > { %8034 = vmatprep.mubr.msk.bf16.mxu0 %vm8399_vm4, %v11826_v44  ;;  %v1575_v36 = vsel %vm1549_vm5, %v1502_v31, %v9074_v21  ;;  %v9593_v31 = vld [vmem:[%s8481_s10 + $0xa8] sm:$0xff]  }
 0x17a   : > { %v1425_v49 = vpop.permute.xlu1 %1424  ;;  %v1261_v10 = vpop.permute.xlu0 %1260  ;;  %v9503_v6 = vsel %vm865_vm1, %v902_v32, %v9487_v23 }
 0x17b   : > { %v2009_v7 = vsel %vm1987_vm12, %v1936_v46, %v1425_v49  ;;  %v1861_v27 = vsel %vm1841_vm10, %v1788_v43, %v1261_v10 }
 0x17c   : > { %v2418_v19 = vrot.slane %v2009_v7, %v9122_v16  ;;  %1125 = vrot.lane.b32.xlu1 %v11828_v53, %s8391_s13  ;;  %1369 = vrot.lane.b32.xlu0 %v8700_v51, %s8398_s20  ;;  %v2411_v12 = vcombine.high %v2009_v7, %v2009_v7 }
 0x17e   : > { %v1423_v47 = vpop.permute.xlu1 %1422  ;;  %v2426_v22 = vcombine.high %v2418_v19, %v2418_v19  ;;  %v2434_v8 = vrot.slane %v2418_v19, %v9122_v16  ;;  %v1348_v57 = vpop.permute.xlu0 %1347  ;;  %v2425_v4 = vrot.slane %v2411_v12, %v9122_v16 }
 0x17f   : > { %v1934_v40 = vsel %vm1914_vm11, %v1861_v27, %v1348_v57 }
 0x180   : > { %1200 = vrot.lane.b32.xlu1 %v9347_v30, %s8394_s16  ;;  %1444 = vrot.lane.b32.xlu0 %v9503_v6, %s8396_s19  ;;  %v9513_v25 = vrot.slane %v2426_v22, %v9122_v16  ;;  %v2456_v56 = vcombine.high %v2434_v8, %v2434_v8  ;;  %v2007_v53 = vsel %vm1987_vm12, %v1934_v40, %v1423_v47 }
 0x181   : > { %v2403_v33 = vrot.slane %v2007_v53, %v9122_v16  ;;  %v2427_v32 = vcombine.high %v2425_v4, %v2425_v4  ;;  %v2441_v47 = vrot.slane %v2425_v4, %v9122_v16 }
 0x182   : > { %v1112_v41 = vpop.permute.xlu1 %1111  ;;  %v1025_v54 = vpop.permute.xlu0 %1024  ;;  %v3489_v60 = vcombine.low %v9513_v25, %v2456_v56  ;;  %v2458_v56 = vcombine.high %v9513_v25, %v9513_v25 }
 0x183   : > { %v2410_v5 = vrot.slane %v2403_v33, %v9122_v16  ;;  %v1648_v7 = vsel %vm1622_vm7, %v1575_v36, %v1025_v54  ;;  %v2455_v40 = vrot.slane %v2427_v32, %v9122_v16  ;;  %v9614_v32 = vld [vmem:[%s8481_s10 + $0xb0] ss:$0 sps:$4 sm:$0x33]  }
 0x184   : > { %1280 = vrot.lane.b32.xlu1 %v9394_v9, %s8393_s15  ;;  %964 = vrot.lane.b32.xlu0 %v9413_v1, %s8390_s12  ;;  %v3517_v29 = vrot.slane %v3489_v60, %v9122_v16  ;;  %v3535_v60 = vcombine.low %v2458_v56, %v2441_v47 }
 0x185   : > { %v3488_v26 = vcombine.low %v2410_v5, %v2434_v8  ;;  %v8308_v8 = vld [vmem:[%s8481_s10 + $0x44] ss:$0 sps:$4 sm:$0x33]  }
 0x186   : > { %v1187_v42 = vpop.permute.xlu1 %1186  ;;  %v1023_v39 = vpop.permute.xlu0 %1022  ;;  %v1500_v57 = vsel %vm1476_vm6, %v8308_v8, %v8922_v48  ;;  %v2457_v48 = vcombine.high %v2441_v47, %v2441_v47  ;;  %v3545_v24 = vrot.slane %v3535_v60, %v9122_v16 }
 0x187   : > { %v3510_v46 = vrot.slane %v3488_v26, %v9122_v16  ;;  %v1573_v27 = vsel %vm1549_vm5, %v1500_v57, %v9064_v38 }
 0x188   : > { %1367 = vrot.lane.b32.xlu1 %v11829_v3, %s8398_s20  ;;  %1044 = vrot.lane.b32.xlu0 %v8302_v52, %s8392_s14  ;;  %v9542_v52 = vld [vmem:[%s8481_s10 + $0x9c] sm:$0xff]   ;;  %v1646_v53 = vsel %vm1622_vm7, %v1573_v27, %v1023_v39  ;;  %v3536_v5 = vcombine.low %v2455_v40, %v2457_v48 }
 0x189   : > { %v3519_v13 = vcombine.low %v3510_v46, %v3517_v29  ;;  %v905_v10 = vrot.slane %v9542_v52, 1  ;;  %v2459_v29 = vcombine.high %v2455_v40, %v2455_v40 }
 0x18a   : > { %v1267_v1 = vpop.permute.xlu1 %1266  ;;  %v1110_v49 = vpop.permute.xlu0 %1109  ;;  %v3552_v36 = vrot.slane %v3536_v5, %v9122_v16 }
 0x18b   : > { %v3533_v21 = vrot.slane %v3519_v13, %v9122_v16  ;;  %v9571_v50 = vsel %vm865_vm1, %v905_v10, %v9551_v2  ;;  %v1719_v54 = vsel %vm1695_vm8, %v1646_v53, %v1110_v49  ;;  %v8311_v53 = vld [vmem:[%s8481_s10 + $0x50] ss:$0 sps:$4 sm:$0x33]  }
 0x18c   : > { %1442 = vrot.lane.b32.xlu1 %v9397_v61, %s8396_s19  ;;  %1131 = vrot.lane.b32.xlu0 %v8700_v51, %s8391_s13  ;;  %v1721_v51 = vsel %vm1695_vm8, %v1648_v7, %v1112_v41 }
 0x18d   : > { %v1794_v43 = vsel %vm1768_vm9, %v1721_v51, %v1187_v42  ;;  %v3534_v22 = vcombine.low %v3526_v0, %v3533_v21 }
 0x18e   : > { %v1354_v14 = vpop.permute.xlu1 %1353  ;;  %v1185_v19 = vpop.permute.xlu0 %1184  ;;  %v1867_v45 = vsel %vm1841_vm10, %v1794_v43, %v1267_v1  ;;  %v3567_v43 = vcombine.low %v3545_v24, %v3552_v36 }
 0x18f   : > { %v1940_v63 = vsel %vm1914_vm11, %v1867_v45, %v1354_v14  ;;  %8035 = vmatmul.mubr.msk.bf16.gmra.mxu0 %vm4247_vm13, %v3534_v22  ;;  %v1792_v58 = vsel %vm1768_vm9, %v1719_v54, %v1185_v19  ;;  %v9617_v14 = vrot.slane %v9614_v32, 1 }
 0x190   : > { %962 = vrot.lane.b32.xlu1 %v9347_v30, %s8390_s12  ;;  %1206 = vrot.lane.b32.xlu0 %v9503_v6, %s8394_s16  ;;  %v3575_v40 = vrot.slane %v3567_v43, %v9122_v16 }
 0x191   : > { %8038 = vmatprep.mubr.msk.bf16.mxu0 %vm8399_vm4, %v11826_v44 }
 0x192   : > { %v1429_v41 = vpop.permute.xlu1 %1428  ;;  %v1265_v30 = vpop.permute.xlu0 %1264 }
 0x193   : > { %v2013_v38 = vsel %vm1987_vm12, %v1940_v63, %v1429_v41  ;;  %v1865_v42 = vsel %vm1841_vm10, %v1792_v58, %v1265_v30 }
 0x194   : > { %v2481_v33 = vrot.slane %v2013_v38, %v9122_v16  ;;  %1286 = vrot.lane.b32.xlu1 %v9542_v52, %s8393_s15  ;;  %972 = vrot.lane.b32.xlu0 %v9571_v50, %s8390_s12  ;;  %v2474_v21 = vcombine.high %v2013_v38, %v2013_v38  ;;  %v11831_v38 = vld [vmem:[#allocation19_spill] sm:$0xff] }
 0x195   : > { %v1504_v54 = vsel %vm1476_vm6, %v8311_v53, %v11831_v38 }
 0x196   : > { %v2489_v25 = vcombine.high %v2481_v33, %v2481_v33  ;;  %v1427_v17 = vpop.permute.xlu1 %1426  ;;  %v1352_v12 = vpop.permute.xlu0 %1351  ;;  %v9598_v1 = vrot.slane %v2481_v33, %v9122_v16  ;;  %v2488_v27 = vrot.slane %v2474_v21, %v9122_v16  ;;  %v8312_v33 = vld [vmem:[%s8481_s10 + $0x54] sm:$0xff]  }
 0x197   : > { %v1938_v39 = vsel %vm1914_vm11, %v1865_v42, %v1352_v12  ;;  %v1506_v58 = vsel %vm1476_vm6, %v8312_v33, %v8940_v55 }
 0x198   : > { %v9589_v26 = vrot.slane %v2489_v25, %v9122_v16  ;;  %v2011_v20 = vsel %vm1987_vm12, %v1938_v39, %v1427_v17  ;;  %1052 = vrot.lane.b32.xlu1 %v9593_v31, %s8392_s14  ;;  %1042 = vrot.lane.b32.xlu0 %v9394_v9, %s8392_s14  ;;  %v908_v9 = vrot.slane %v9593_v31, 1  ;;  %v2490_v56 = vcombine.high %v2488_v27, %v2488_v27 }
 0x199   : > { %v2466_v4 = vrot.slane %v2011_v20, %v9122_v16  ;;  %v1577_v25 = vsel %vm1549_vm5, %v1504_v54, %v9072_v37  ;;  %v1579_v42 = vsel %vm1549_vm5, %v1506_v58, %v9082_v59  ;;  %v9661_v59 = vld [vmem:[%s8481_s10 + $0xb4] sm:$0xff]  }
 0x19a   : > { %v1029_v46 = vpop.permute.xlu1 %1028  ;;  %v1027_v49 = vpop.permute.xlu0 %1026  ;;  %v3538_v7 = vcombine.low %v9598_v1, %v9589_v26  ;;  %v9627_v22 = vsel %vm865_vm1, %v908_v9, %v9617_v14  ;;  %v2518_v5 = vrot.slane %v2490_v56, %v9122_v16 }
 0x19b   : > { %v2473_v13 = vrot.slane %v2466_v4, %v9122_v16  ;;  %v1652_v17 = vsel %vm1622_vm7, %v1579_v42, %v1029_v46  ;;  %v1650_v12 = vsel %vm1622_vm7, %v1577_v25, %v1027_v49  ;;  %v911_v42 = vrot.slane %v9661_v59, 1 }
 0x19c   : > { %1129 = vrot.lane.b32.xlu1 %v11829_v3, %s8391_s13  ;;  %1373 = vrot.lane.b32.xlu0 %v8712_v28, %s8398_s20  ;;  %v3566_v47 = vrot.slane %v3538_v7, %v9122_v16  ;;  %v11830_v3 = vld [vmem:[#allocation12_spill] sm:$0xff] }
 0x19d   : > { %v3537_v10 = vcombine.low %v2459_v29, %v2473_v13  ;;  %v2504_v29 = vrot.slane %v2488_v27, %v9122_v16 }
 0x19e   : > { %v1116_v19 = vpop.permute.xlu1 %1115  ;;  %v1114_v0 = vpop.permute.xlu0 %1113 }
 0x19f   : > { %v3559_v51 = vrot.slane %v3537_v10, %v9122_v16  ;;  %v1725_v39 = vsel %vm1695_vm8, %v1652_v17, %v1116_v19  ;;  %v1723_v20 = vsel %vm1695_vm8, %v1650_v12, %v1114_v0  ;;  %v3585_v10 = vcombine.low %v2504_v29, %v2518_v5  ;;  %v9700_v17 = vld [vmem:[%s8481_s10 + $0xbc] ss:$0 sps:$4 sm:$0x33]  }
 0x1a0   : > { %1448 = vrot.lane.b32.xlu1 %v9571_v50, %s8396_s19  ;;  %1139 = vrot.lane.b32.xlu0 %v11830_v3, %s8391_s13  ;;  %v9703_v12 = vrot.slane %v9700_v17, 1 }
 0x1a1   : > { %v3568_v8 = vcombine.low %v3559_v51, %v3566_v47  ;;  %v11832_v47 = vld [vmem:[#allocation14_spill] sm:$0xff]  ;;  %v7880_v51 = vcombine.high %v9598_v1, %v9589_v26  ;;  %v11835_v26 = vld [vmem:[#allocation41_spill] sm:$0xff] }
 0x1a2   : > { %v1191_v57 = vpop.permute.xlu1 %1190  ;;  %v1189_v45 = vpop.permute.xlu0 %1188 }
 0x1a3   : > { %v3582_v63 = vrot.slane %v3568_v8, %v9122_v16  ;;  %v1798_v37 = vsel %vm1768_vm9, %v1725_v39, %v1191_v57  ;;  %v1796_v4 = vsel %vm1768_vm9, %v1723_v20, %v1189_v45  ;;  %v11833_v8 = vld [vmem:[#allocation9_spill] sm:$0xff]  ;;  %v3594_v53 = vrot.slane %v7880_v51, %v9122_v16 }
 0x1a4   : > { %1214 = vrot.lane.b32.xlu1 %v9627_v22, %s8394_s16  ;;  %1204 = vrot.lane.b32.xlu0 %v9397_v61, %s8394_s16 }
 0x1a5   : > { %v3583_v41 = vcombine.low %v3575_v40, %v3582_v63 }
 0x1a6   : > { %v1271_v30 = vpop.permute.xlu1 %1270  ;;  %v1269_v48 = vpop.permute.xlu0 %1268 }
 0x1a7   : > { %8039 = vmatmul.mubr.msk.bf16.gmra.mxu0 %vm4247_vm13, %v3583_v41  ;;  %v1871_v46 = vsel %vm1841_vm10, %v1798_v37, %v1271_v30  ;;  %v1869_v49 = vsel %vm1841_vm10, %v1796_v4, %v1269_v48  ;;  %v7881_v41 = vcombine.high %v2504_v29, %v2518_v5  ;;  %v3601_v30 = vrot.slane %v3585_v10, %v9122_v16  ;;  %v11834_v48 = vld [vmem:[#allocation20_spill] sm:$0xff] }
 0x1a8   : > { %1284 = vrot.lane.b32.xlu1 %v9484_v15, %s8393_s15  ;;  %8042 = vmatprep.mubr.msk.bf16.mxu0 %vm8399_vm4, %v11826_v44  ;;  %v1508_v56 = vsel %vm1476_vm6, %v9222_v35, %v11834_v48 }
 0x1a9   : > { %976 = vrot.lane.b32.xlu0 %v9627_v22, %s8390_s12  ;;  %v1581_v1 = vsel %vm1549_vm5, %v1508_v56, %v11835_v26 }
 0x1aa   : > { %v1358_v55 = vpop.permute.xlu1 %1357  ;;  %v1356_v60 = vpop.permute.xlu0 %1355 }
 0x1ab   : > { %v1944_v24 = vsel %vm1914_vm11, %v1871_v46, %v1358_v55  ;;  %v1942_v36 = vsel %vm1914_vm11, %v1869_v49, %v1356_v60  ;;  %v3608_v55 = vrot.slane %v7881_v41, %v9122_v16  ;;  %v3616_v60 = vcombine.low %v3594_v53, %v3601_v30 }
 0x1ac   : > { %1056 = vrot.lane.b32.xlu1 %v9661_v59, %s8392_s14 }
 0x1ad   : > { %1294 = vrot.lane.b32.xlu0 %v9661_v59, %s8393_s15 }
 0x1ae   : > { %v1433_v7 = vpop.permute.xlu1 %1432  ;;  %v1431_v13 = vpop.permute.xlu0 %1430 }
 0x1af   : > { %v2017_v9 = vsel %vm1987_vm12, %v1944_v24, %v1433_v7  ;;  %v2015_v19 = vsel %vm1987_vm12, %v1942_v36, %v1431_v13  ;;  %v9716_v24 = vsel %vm865_vm1, %v911_v42, %v9703_v12  ;;  %v3624_v36 = vrot.slane %v3616_v60, %v9122_v16 }
 0x1b0   : > { %v2544_v0 = vrot.slane %v2017_v9, %v9122_v16  ;;  %v2529_v21 = vrot.slane %v2015_v19, %v9122_v16  ;;  %1381 = vrot.lane.b32.xlu1 %v11832_v47, %s8398_s20  ;;  %v2537_v43 = vcombine.high %v2017_v9, %v2017_v9 }
 0x1b1   : > { %1371 = vrot.lane.b32.xlu0 %v11833_v8, %s8398_s20 }
 0x1b2   : > { %v2552_v57 = vcombine.high %v2544_v0, %v2544_v0  ;;  %v2560_v45 = vrot.slane %v2544_v0, %v9122_v16  ;;  %v2536_v27 = vrot.slane %v2529_v21, %v9122_v16  ;;  %v1118_v40 = vpop.permute.xlu1 %1117  ;;  %v1031_v63 = vpop.permute.xlu0 %1030  ;;  %v2551_v38 = vrot.slane %v2537_v43, %v9122_v16 }
 0x1b3   : > { %v1654_v58 = vsel %vm1622_vm7, %v1581_v1, %v1031_v63 }
 0x1b4   : > { %974 = vrot.lane.b32.xlu1 %v9551_v2, %s8390_s12  ;;  %v3587_v54 = vcombine.low %v2536_v27, %v2560_v45  ;;  %v2574_v33 = vrot.slane %v2552_v57, %v9122_v16  ;;  %v2567_v39 = vrot.slane %v2551_v38, %v9122_v16  ;;  %v1727_v37 = vsel %vm1695_vm8, %v1654_v58, %v1118_v40  ;;  %v11836_v57 = vld [vmem:[#allocation22_spill] sm:$0xff]  ;;  %v11837_v27 = vld [vmem:[#allocation43_spill] sm:$0xff] }
 0x1b5   : > { %968 = vrot.lane.b32.xlu0 %v9503_v6, %s8390_s12  ;;  %v2553_v6 = vcombine.high %v2551_v38, %v2551_v38  ;;  %v2582_v13 = vcombine.high %v2560_v45, %v2560_v45  ;;  %v1510_v45 = vsel %vm1476_vm6, %v9217_v11, %v11836_v57 }
 0x1b6   : > { %v1273_v25 = vpop.permute.xlu1 %1272  ;;  %v1193_v35 = vpop.permute.xlu0 %1192  ;;  %v3615_v5 = vrot.slane %v3587_v54, %v9122_v16  ;;  %v2584_v4 = vcombine.high %v2574_v33, %v2574_v33  ;;  %v2583_v9 = vcombine.high %v2567_v39, %v2567_v39  ;;  %v1583_v40 = vsel %vm1549_vm5, %v1510_v45, %v11837_v27 }
 0x1b7   : > { %v1800_v29 = vsel %vm1768_vm9, %v1727_v37, %v1193_v35  ;;  %v2581_v10 = vrot.slane %v2553_v6, %v9122_v16  ;;  %v3633_v63 = vcombine.low %v2574_v33, %v2582_v13  ;;  %v9757_v37 = vld [vmem:[%s8481_s10 + $0xc0] sm:$0xff]  }
 0x1b8   : > { %1446 = vrot.lane.b32.xlu1 %v9487_v23, %s8396_s19  ;;  %v3617_v20 = vcombine.low %v3608_v55, %v3615_v5  ;;  %v1873_v19 = vsel %vm1841_vm10, %v1800_v29, %v1273_v25  ;;  %v3634_v21 = vcombine.low %v2584_v4, %v2567_v39  ;;  %v11838_v4 = vld [vmem:[#allocation11_spill] sm:$0xff] }
 0x1b9   : > { %1143 = vrot.lane.b32.xlu0 %v11832_v47, %s8391_s13  ;;  %v3635_v30 = vcombine.low %v2581_v10, %v2583_v9  ;;  %v2585_v56 = vcombine.high %v2581_v10, %v2581_v10  ;;  %v3643_v33 = vrot.slane %v3633_v63, %v9122_v16 }
 0x1ba   : > { %v1360_v46 = vpop.permute.xlu1 %1359  ;;  %v1033_v49 = vpop.permute.xlu0 %1032  ;;  %v3631_v7 = vrot.slane %v3617_v20, %v9122_v16  ;;  %v3650_v11 = vrot.slane %v3634_v21, %v9122_v16 }
 0x1bb   : > { %v1946_v47 = vsel %vm1914_vm11, %v1873_v19, %v1360_v46  ;;  %v1656_v48 = vsel %vm1622_vm7, %v1583_v40, %v1033_v49  ;;  %v3657_v25 = vrot.slane %v3635_v30, %v9122_v16  ;;  %v11840_v19 = vld [vmem:[#allocation45_spill] sm:$0xff] }
 0x1bc   : > { %1048 = vrot.lane.b32.xlu1 %v9542_v52, %s8392_s14  ;;  %v3632_v0 = vcombine.low %v3624_v36, %v3631_v7  ;;  %v3665_v5 = vcombine.low %v3643_v33, %v3650_v11  ;;  %v11839_v7 = vld [vmem:[#allocation24_spill] sm:$0xff]  ;;  %v9789_v30 = vld [vmem:[%s8481_s10 + $0xc8] ss:$0 sps:$4 sm:$0x33]  }
 0x1bd   : > { %1456 = vrot.lane.b32.xlu0 %v9716_v24, %s8396_s19  ;;  %v1514_v13 = vsel %vm1476_vm6, %v9255_v34, %v11839_v7 }
 0x1be   : > { %v1435_v51 = vpop.permute.xlu1 %1434  ;;  %v1120_v43 = vpop.permute.xlu0 %1119  ;;  %8043 = vmatmul.mubr.msk.bf16.gmra.mxu0 %vm4247_vm13, %v3632_v0  ;;  %v3673_v49 = vrot.slane %v3665_v5, %v9122_v16  ;;  %v1587_v0 = vsel %vm1549_vm5, %v1514_v13, %v11840_v19 }
 0x1bf   : > { %v2019_v52 = vsel %vm1987_vm12, %v1946_v47, %v1435_v51  ;;  %8046 = vmatprep.mubr.msk.bf16.mxu0 %vm8399_vm4, %v11826_v44  ;;  %v1729_v1 = vsel %vm1695_vm8, %v1656_v48, %v1120_v43  ;;  %v9792_v48 = vrot.slane %v9789_v30, 1 }
 0x1c0   : > { %v2592_v41 = vrot.slane %v2019_v52, %v9122_v16  ;;  %1218 = vrot.lane.b32.xlu1 %v9716_v24, %s8394_s16 }
 0x1c1   : > { %1054 = vrot.lane.b32.xlu0 %v9614_v32, %s8392_s14 }
 0x1c2   : > { %v2599_v26 = vrot.slane %v2592_v41, %v9122_v16  ;;  %v1275_v53 = vpop.permute.xlu1 %1274  ;;  %v1195_v38 = vpop.permute.xlu0 %1194  ;;  %v11841_v41 = vld [vmem:[#allocation16_spill] sm:$0xff] }
 0x1c3   : > { %v1802_v54 = vsel %vm1768_vm9, %v1729_v1, %v1195_v38 }
 0x1c4   : > { %v3636_v58 = vcombine.low %v2585_v56, %v2599_v26  ;;  %1135 = vrot.lane.b32.xlu1 %v8712_v28, %s8391_s13  ;;  %v1875_v55 = vsel %vm1841_vm10, %v1802_v54, %v1275_v53 }
 0x1c5   : > { %966 = vrot.lane.b32.xlu0 %v9397_v61, %s8390_s12 }
 0x1c6   : > { %v3664_v35 = vrot.slane %v3636_v58, %v9122_v16  ;;  %v1437_v42 = vpop.permute.xlu1 %1436  ;;  %v1362_v60 = vpop.permute.xlu0 %1361 }
 0x1c7   : > { %v1948_v6 = vsel %vm1914_vm11, %v1875_v55, %v1362_v60 }
 0x1c8   : > { %v3666_v39 = vcombine.low %v3657_v25, %v3664_v35  ;;  %v2021_v20 = vsel %vm1987_vm12, %v1948_v6, %v1437_v42  ;;  %1298 = vrot.lane.b32.xlu1 %v9757_v37, %s8393_s15 }
 0x1c9   : > { %v2600_v28 = vcombine.high %v2021_v20, %v2021_v20  ;;  %v2607_v61 = vrot.slane %v2021_v20, %v9122_v16  ;;  %1141 = vrot.lane.b32.xlu0 %v11838_v4, %s8391_s13 }
 0x1ca   : > { %v1124_v29 = vpop.permute.xlu1 %1123  ;;  %v1037_v46 = vpop.permute.xlu0 %1036  ;;  %v3680_v36 = vrot.slane %v3666_v39, %v9122_v16 }
 0x1cb   : > { %v2614_v10 = vrot.slane %v2600_v28, %v9122_v16  ;;  %v2615_v9 = vcombine.high %v2607_v61, %v2607_v61  ;;  %v2623_v51 = vrot.slane %v2607_v61, %v9122_v16  ;;  %v1660_v57 = vsel %vm1622_vm7, %v1587_v0, %v1037_v46 }
 0x1cc   : > { %1210 = vrot.lane.b32.xlu1 %v9571_v50, %s8394_s16  ;;  %v3681_v21 = vcombine.low %v3673_v49, %v3680_v36  ;;  %v1733_v63 = vsel %vm1695_vm8, %v1660_v57, %v1124_v29 }
 0x1cd   : > { %v2616_v47 = vcombine.high %v2614_v10, %v2614_v10  ;;  %v2637_v43 = vrot.slane %v2615_v9, %v9122_v16  ;;  %1046 = vrot.lane.b32.xlu0 %v9484_v15, %s8392_s14  ;;  %v2630_v52 = vrot.slane %v2614_v10, %v9122_v16  ;;  %v914_v15 = vrot.slane %v9757_v37, 1 }
 0x1ce   : > { %v1279_v34 = vpop.permute.xlu1 %1278  ;;  %8047 = vmatmul.mubr.msk.bf16.gmra.mxu0 %vm4247_vm13, %v3681_v21  ;;  %v1199_v45 = vpop.permute.xlu0 %1198 }
 0x1cf   : > { %v2644_v50 = vrot.slane %v2616_v47, %v9122_v16  ;;  %v3682_v27 = vcombine.low %v2623_v51, %v2637_v43  ;;  %v7882_v40 = vcombine.high %v2623_v51, %v2637_v43  ;;  %8050 = vmatprep.mubr.msk.bf16.mxu0 %vm8399_vm4, %v11826_v44  ;;  %v1806_v53 = vsel %vm1768_vm9, %v1733_v63, %v1199_v45  ;;  %v8317_v51 = vld [vmem:[%s8481_s10 + $0x68] ss:$0 sps:$4 sm:$0x33]  }
 0x1d0   : > { %1385 = vrot.lane.b32.xlu1 %v11841_v41, %s8398_s20  ;;  %v1879_v35 = vsel %vm1841_vm10, %v1806_v53, %v1279_v34  ;;  %v9808_v42 = vsel %vm865_vm1, %v914_v15, %v9792_v48  ;;  %v11842_v43 = vld [vmem:[#allocation21_spill] sm:$0xff] }
 0x1d1   : > { %v3684_v11 = vcombine.low %v2630_v52, %v2644_v50  ;;  %v7883_v56 = vcombine.high %v2630_v52, %v2644_v50  ;;  %v3692_v26 = vrot.slane %v3682_v27, %v9122_v16  ;;  %v3699_v1 = vrot.slane %v7882_v40, %v9122_v16  ;;  %1216 = vrot.lane.b32.xlu0 %v9617_v14, %s8394_s16  ;;  %v11844_v45 = vld [vmem:[#allocation13_spill] sm:$0xff] }
 0x1d2   : > { %v1366_v38 = vpop.permute.xlu1 %1365  ;;  %v1035_v58 = vpop.permute.xlu0 %1034  ;;  %v1512_v57 = vsel %vm1476_vm6, %v8317_v51, %v11842_v43  ;;  %v9877_v51 = vld [vmem:[%s11747_s2] ss:$0 sm:$0xff] }
 0x1d3   : > { %v3706_v54 = vrot.slane %v3684_v11, %v9122_v16  ;;  %v3713_v33 = vrot.slane %v7883_v56, %v9122_v16  ;;  %v3714_v25 = vcombine.low %v3692_v26, %v3699_v1  ;;  %v1952_v60 = vsel %vm1914_vm11, %v1879_v35, %v1366_v38 }
 0x1d4   : > { %1290 = vrot.lane.b32.xlu1 %v9593_v31, %s8393_s15 }
 0x1d5   : > { %1133 = vrot.lane.b32.xlu0 %v11833_v8, %s8391_s13  ;;  %v3715_v55 = vcombine.low %v3706_v54, %v3713_v33  ;;  %v3722_v20 = vrot.slane %v3714_v25, %v9122_v16 }
 0x1d6   : > { %v1441_v5 = vpop.permute.xlu1 %1440  ;;  %v1122_v39 = vpop.permute.xlu0 %1121 }
 0x1d7   : > { %v2025_v6 = vsel %vm1987_vm12, %v1952_v60, %v1441_v5  ;;  %v3729_v31 = vrot.slane %v3715_v55, %v9122_v16  ;;  %v11845_v5 = vld [vmem:[#allocation10_spill] sm:$0xff] }
 0x1d8   : > { %v2663_v28 = vcombine.high %v2025_v6, %v2025_v6  ;;  %v2670_v61 = vrot.slane %v2025_v6, %v9122_v16  ;;  %1460 = vrot.lane.b32.xlu1 %v9808_v42, %s8396_s19  ;;  %v8401_v6 = vmov 1983009808  }
 0x1d9   : > { %1296 = vrot.lane.b32.xlu0 %v9700_v17, %s8393_s15  ;;  %v3730_v8 = vcombine.low %v3722_v20, %v3729_v31 }
 0x1da   : > { %v961_v29 = vpop.permute.xlu1 %960  ;;  %v2677_v46 = vrot.slane %v2663_v28, %v9122_v16  ;;  %v2678_v49 = vcombine.high %v2670_v61, %v2670_v61  ;;  %v1197_v36 = vpop.permute.xlu0 %1196  ;;  %v2686_v40 = vrot.slane %v2670_v61, %v9122_v16 }
 0x1db   : > { %v4352_v7 = vpop.f32.mrf.mxu0  ;;  %8051 = vmatmul.mubr.msk.bf16.gmra.mxu0 %vm4247_vm13, %v3730_v8 }
 0x1dc   : > { %1377 = vrot.lane.b32.xlu1 %v11830_v3, %s8398_s20  ;;  %8054 = vmatprep.mubr.msk.bf16.mxu0 %vm8399_vm4, %v11826_v44  ;;  %v2679_v9 = vcombine.high %v2677_v46, %v2677_v46  ;;  %v2693_v19 = vrot.slane %v2677_v46, %v9122_v16  ;;  %v2700_v0 = vrot.slane %v2678_v49, %v9122_v16  ;;  %v11843_v3 = vld [vmem:[#allocation42_spill] sm:$0xff] }
 0x1dd   : > { %1208 = vrot.lane.b32.xlu0 %v9487_v23, %s8394_s16  ;;  %v8016_v13 = vpop.f32.mrf.mxu0  ;;  %v1585_v34 = vsel %vm1549_vm5, %v1512_v57, %v11843_v3  ;;  %v2708_v54 = vcombine.high %v2686_v40, %v2686_v40  ;;  %v11846_v46 = vld [vmem:[#allocation26_spill] sm:$0xff] }
 0x1de   : > { %v1041_v10 = vpop.permute.xlu1 %1040  ;;  %v1277_v21 = vpop.permute.xlu0 %1276  ;;  %v1658_v50 = vsel %vm1622_vm7, %v1585_v34, %v1035_v58  ;;  %v9841_v63 = vrot.slane %v2679_v9, %v9122_v16  ;;  %v2709_v15 = vcombine.high %v2693_v19, %v2693_v19  ;;  %v2710_v11 = vcombine.high %v2700_v0, %v2700_v0 }
 0x1df   : > { %v4355_v47 = vpop.f32.mrf.mxu0  ;;  %v1731_v26 = vsel %vm1695_vm8, %v1658_v50, %v1122_v39  ;;  %v4636_v39 = vunpack.c.l.s4 %v8401_v6  ;;  %v3732_v20 = vcombine.low %v2700_v0, %v2708_v54  ;;  %v1518_v49 = vsel %vm1476_vm6, %v9340_v62, %v11846_v46 }
 0x1e0   : > { %1288 = vrot.lane.b32.xlu1 %v9548_v18, %s8393_s15  ;;  %v1804_v1 = vsel %vm1768_vm9, %v1731_v26, %v1197_v36  ;;  %v3733_v33 = vcombine.low %v2710_v11, %v2693_v19  ;;  %v3734_v58 = vcombine.low %v9841_v63, %v2709_v15  ;;  %v1591_v7 = vsel %vm1549_vm5, %v1518_v49, %v961_v29 }
 0x1e1   : > { %1383 = vrot.lane.b32.xlu0 %v11844_v45, %s8398_s20  ;;  %v8017_v52 = vpop.f32.mrf.mxu0  ;;  %v1877_v53 = vsel %vm1841_vm10, %v1804_v1, %v1277_v21  ;;  %v4637_v9 = vunpack.c.0.s8 %v4636_v39  ;;  %v3748_v19 = vrot.slane %v3732_v20, %v9122_v16  ;;  %v1664_v0 = vsel %vm1622_vm7, %v1591_v7, %v1041_v10 }
 0x1e2   : > { %v1128_v27 = vpop.permute.xlu1 %1127  ;;  %v1364_v56 = vpop.permute.xlu0 %1363  ;;  %v3755_v31 = vrot.slane %v3733_v33, %v9122_v16  ;;  %v3762_v28 = vrot.slane %v3734_v58, %v9122_v16  ;;  %v11847_v52 = vld [vmem:[#allocation46_spill] sm:$0xff] }
 0x1e3   : > { %v1950_v25 = vsel %vm1914_vm11, %v1877_v53, %v1364_v56  ;;  %v1737_v43 = vsel %vm1695_vm8, %v1664_v0, %v1128_v27  ;;  %v9888_v50 = vsub.s32 %v4637_v9, %v11847_v52 }
 0x1e4   : > { %1458 = vrot.lane.b32.xlu1 %v9703_v12, %s8396_s19  ;;  %v3764_v62 = vcombine.low %v3755_v31, %v3762_v28 }
 0x1e5   : > { %1452 = vrot.lane.b32.xlu0 %v9627_v22, %s8396_s19 }
 0x1e6   : > { %v1203_v38 = vpop.permute.xlu1 %1202  ;;  %v1439_v35 = vpop.permute.xlu0 %1438  ;;  %v3778_v11 = vrot.slane %v3764_v62, %v9122_v16 }
 0x1e7   : > { %v2023_v55 = vsel %vm1987_vm12, %v1950_v25, %v1439_v35 }
 0x1e8   : > { %978 = vrot.lane.b32.xlu1 %v9617_v14, %s8390_s12  ;;  %v2655_v60 = vrot.slane %v2023_v55, %v9122_v16  ;;  %v8318_v55 = vld [vmem:[%s8481_s10 + $0x74] ss:$0 sps:$4 sm:$0x33]  }
 0x1e9   : > { %1375 = vrot.lane.b32.xlu0 %v11845_v5, %s8398_s20 }
 0x1ea   : > { %v9858_v22 = vpop.permute.xlu1 %1038  ;;  %v2662_v61 = vrot.slane %v2655_v60, %v9122_v16  ;;  %v1283_v8 = vpop.permute.xlu0 %1282  ;;  %v11848_v60 = vld [vmem:[#allocation23_spill] sm:$0xff] }
 0x1eb   : > { %v1516_v6 = vsel %vm1476_vm6, %v8318_v55, %v11848_v60 }
 0x1ec   : > { %1450 = vrot.lane.b32.xlu1 %v9551_v2, %s8396_s19  ;;  %v3731_v36 = vcombine.low %v2662_v61, %v2686_v40 }
 0x1ed   : > { %980 = vrot.lane.b32.xlu0 %v9716_v24, %s8390_s12  ;;  %v1810_v24 = vsel %vm1768_vm9, %v1737_v43, %v1203_v38 }
 0x1ee   : > { %v1126_v13 = vpop.permute.xlu1 %1125  ;;  %v3741_v21 = vrot.slane %v3731_v36, %v9122_v16  ;;  %v1370_v47 = vpop.permute.xlu0 %1369  ;;  %v1883_v57 = vsel %vm1841_vm10, %v1810_v24, %v1283_v8  ;;  %v11849_v8 = vld [vmem:[#allocation44_spill] sm:$0xff] }
 0x1ef   : > { %v1956_v27 = vsel %vm1914_vm11, %v1883_v57, %v1370_v47  ;;  %v1589_v46 = vsel %vm1549_vm5, %v1516_v6, %v11849_v8 }
 0x1f0   : > { %1060 = vrot.lane.b32.xlu1 %v9757_v37, %s8392_s14  ;;  %v3763_v29 = vcombine.low %v3741_v21, %v3748_v19  ;;  %v1662_v36 = vsel %vm1622_vm7, %v1589_v46, %v9858_v22 }
 0x1f1   : > { %1058 = vrot.lane.b32.xlu0 %v9700_v17, %s8392_s14 }
 0x1f2   : > { %v4360_v10 = vpop.f32.mrf.mxu0  ;;  %v1201_v3 = vpop.permute.xlu1 %1200  ;;  %v3771_v15 = vrot.slane %v3763_v29, %v9122_v16 }
 0x1f3   : > { %v4361_v34 = vadd.f32 %v9877_v51, %v4360_v10  ;;  %v1445_v40 = vpop.permute.xlu0 %1444 }
 0x1f4   : > { %v8020_v37 = vpop.f32.mrf.mxu0  ;;  %v2029_v26 = vsel %vm1987_vm12, %v1956_v27, %v1445_v40  ;;  %1145 = vrot.lane.b32.xlu1 %v11844_v45, %s8391_s13  ;;  %v3779_v54 = vcombine.low %v3771_v15, %v3778_v11 }
 0x1f5   : > { %v4520_v56 = vmax.f32 %v4361_v34, 0.0  ;;  %v2726_v1 = vcombine.high %v2029_v26, %v2029_v26  ;;  %v2733_v53 = vrot.slane %v2029_v26, %v9122_v16  ;;  %970 = vrot.lane.b32.xlu0 %v9487_v23, %s8390_s12 }
 0x1f6   : > { %v4363_v38 = vpop.f32.mrf.mxu0  ;;  %v1281_v25 = vpop.permute.xlu1 %1280  ;;  %8055 = vmatmul.mubr.msk.bf16.gmra.mxu0 %vm4247_vm13, %v3779_v54 }
 0x1f7   : > { %v4634_v33 = vcombine.high %v4520_v56, %v4520_v56  ;;  %v4641_v58 = vrot.slane %v4520_v56, %v9888_v50  ;;  %v4364_v35 = vadd.f32 %v9877_v51, %v4363_v38  ;;  %v2740_v45 = vrot.slane %v2726_v1, %v9122_v16  ;;  %v9906_v39 = vpop.permute.xlu0 %964  ;;  %8058 = vmatprep.mubr.msk.bf16.mxu0 %vm8399_vm4, %v11826_v44 }
 0x1f8   : > { %v8021_v20 = vpop.f32.mrf.mxu0  ;;  %v2741_v28 = vcombine.high %v2733_v53, %v2733_v53  ;;  %1050 = vrot.lane.b32.xlu1 %v9548_v18, %s8392_s14  ;;  %v1735_v18 = vsel %vm1695_vm8, %v1662_v36, %v1126_v13  ;;  %v2749_v24 = vrot.slane %v2733_v53, %v9122_v16  ;;  %v2711_v1 = vcombine.high %v9841_v63, %v9841_v63 }
 0x1f9   : > { %v4648_v23 = vrot.slane %v4634_v33, %v9888_v50  ;;  %v4649_v31 = vcombine.high %v4641_v58, %v4641_v58  ;;  %v4521_v61 = vmax.f32 %v4364_v35, 0.0  ;;  %v2742_v49 = vcombine.high %v2740_v45, %v2740_v45  ;;  %1147 = vrot.lane.b32.xlu0 %v11841_v41, %s8391_s13  ;;  %v11850_v20 = vld [vmem:[#allocation18_spill] sm:$0xff] }
 0x1fa   : > { %v1368_v0 = vpop.permute.xlu1 %1367  ;;  %v1808_v62 = vsel %vm1768_vm9, %v1735_v18, %v1201_v3  ;;  %v9930_v41 = vrot.slane %v2740_v45, %v9122_v16  ;;  %v2763_v22 = vrot.slane %v2741_v28, %v9122_v16 }
 0x1fb   : > { %v5680_v7 = vcombine.low %v4649_v31, %v4648_v23  ;;  %v4650_v9 = vcombine.high %v4648_v23, %v4648_v23  ;;  %v9920_v19 = vrot.slane %v4521_v61, %v9888_v50  ;;  %v9924_v21 = vrot.slane %v2742_v49, %v9122_v16  ;;  %v9926_v47 = vpop.permute.xlu0 %1044  ;;  %v11851_v23 = vld [vmem:[#allocation15_spill] sm:$0xff] }
 0x1fc   : > { %1222 = vrot.lane.b32.xlu1 %v9808_v42, %s8394_s16  ;;  %v1881_v13 = vsel %vm1841_vm10, %v1808_v62, %v1281_v25  ;;  %v7884_v37 = vcombine.high %v2749_v24, %v2763_v22  ;;  %v3781_v56 = vcombine.low %v2749_v24, %v2763_v22  ;;  %v4651_v25 = vcombine.high %v4521_v61, %v4521_v61  ;;  %v9980_v61 = vld [vmem:[%s8481_s10 + $0xd4] ss:$0 sps:$4 sm:$0x33]  }
 0x1fd   : > { %v5681_v43 = vcombine.low %v4650_v9, %v9920_v19  ;;  %1220 = vrot.lane.b32.xlu0 %v9703_v12, %s8394_s16  ;;  %v5688_v29 = vrot.slane %v5680_v7, %v9888_v50  ;;  %v3783_v10 = vcombine.low %v9930_v41, %v9924_v21  ;;  %v1954_v3 = vsel %vm1914_vm11, %v1881_v13, %v1368_v0 }
 0x1fe   : > { %v1443_v34 = vpop.permute.xlu1 %1442  ;;  %v3804_v33 = vrot.slane %v7884_v37, %v9122_v16  ;;  %v3797_v63 = vrot.slane %v3781_v56, %v9122_v16  ;;  %v9983_v8 = vrot.slane %v9980_v61, 1  ;;  %v4666_v46 = vcombine.high %v9920_v19, %v9920_v19  ;;  %v11852_v37 = vld [vmem:[#allocation28_spill] sm:$0xff] }
 0x1ff   : > { %v5695_v57 = vrot.slane %v5681_v43, %v9888_v50  ;;  %v2027_v27 = vsel %vm1987_vm12, %v1954_v3, %v1443_v34  ;;  %v9946_v40 = vpop.permute.xlu0 %1131  ;;  %v3811_v26 = vrot.slane %v3783_v10, %v9122_v16  ;;  %v9999_v19 = vadd.s32 4294967295, %v11847_v52 }
 0x200   : > { %v2718_v11 = vrot.slane %v2027_v27, %v9122_v16  ;;  %1300 = vrot.lane.b32.xlu1 %v9789_v30, %s8393_s15  ;;  %v8321_v27 = vld [vmem:[%s8481_s10 + $0x84] sm:$0xff]  }
 0x201   : > { %v9948_v15 = vcombine.low %v5688_v29, %v5695_v57  ;;  %1137 = vrot.lane.b32.xlu0 %v11845_v5, %s8391_s13  ;;  %v9965_v5 = vld [vmem:[%s8481_s10 + $0xcc] sm:$0xff]   ;;  %v3813_v35 = vcombine.low %v3804_v33, %v3811_v26  ;;  %vm5369_vm14 = vcmp.ge.s32.totalorder %v9999_v19, 0 }
 0x202   : > { %v2725_v53 = vrot.slane %v2718_v11, %v9122_v16  ;;  %v9959_v38 = vpop.permute.xlu1 %962  ;;  %v917_v28 = vrot.slane %v9965_v5, 1  ;;  %v1522_v11 = vsel %vm1476_vm6, %v8321_v27, %v11852_v37  ;;  %v11853_v27 = vld [vmem:[#allocation25_spill] sm:$0xff] }
 0x203   : > { %v1207_v54 = vpop.permute.xlu0 %1206  ;;  %v3827_v9 = vrot.slane %v3813_v35, %v9122_v16  ;;  %v1595_v26 = vsel %vm1549_vm5, %v1522_v11, %v9906_v39  ;;  %v6434_v35 = vsel %vm5369_vm14, %v9948_v15, 0.0 }
 0x204   : > { %v3780_v58 = vcombine.low %v2711_v1, %v2725_v53  ;;  %1212 = vrot.lane.b32.xlu1 %v9551_v2, %s8394_s16  ;;  %v4665_v2 = vrot.slane %v4651_v25, %v9888_v50  ;;  %v10014_v57 = vsel %vm865_vm1, %v917_v28, %v9983_v8  ;;  %v1668_v53 = vsel %vm1622_vm7, %v1595_v26, %v9926_v47 }
 0x205   : > { %1302 = vrot.lane.b32.xlu0 %v9965_v5, %s8393_s15 }
 0x206   : > { %v3790_v55 = vrot.slane %v3780_v58, %v9122_v16  ;;  %v1287_v60 = vpop.permute.xlu1 %1286  ;;  %v5697_v24 = vcombine.low %v4666_v46, %v4665_v2  ;;  %v4667_v13 = vcombine.high %v4665_v2, %v4665_v2 }
 0x207   : > { %v9971_v6 = vpop.permute.xlu0 %972 }
 0x208   : > { %v3812_v45 = vcombine.low %v3790_v55, %v3797_v63  ;;  %1389 = vrot.lane.b32.xlu1 %v11850_v20, %s8398_s20  ;;  %v5705_v1 = vrot.slane %v5697_v24, %v9888_v50 }
 0x209   : > { %1387 = vrot.lane.b32.xlu0 %v11851_v23, %s8398_s20 }
 0x20a   : > { %v4368_v31 = vpop.f32.mrf.mxu0  ;;  %v9987_v49 = vpop.permute.xlu1 %1052  ;;  %v3820_v7 = vrot.slane %v3812_v45, %v9122_v16 }
 0x20b   : > { %v4369_v36 = vadd.f32 %v9877_v51, %v4368_v31  ;;  %v9992_v0 = vpop.permute.xlu0 %1042  ;;  %v10067_v31 = vld [vmem:[%s8481_s10 + $0xe0] ss:$0 sps:$4 sm:$0x33]  }
 0x20c   : > { %v8024_v18 = vpop.f32.mrf.mxu0  ;;  %1462 = vrot.lane.b32.xlu1 %v9792_v48, %s8396_s19  ;;  %v3828_v22 = vcombine.low %v3820_v7, %v3827_v9 }
 0x20d   : > { %v9994_v62 = vmax.f32 %v4369_v36, 0.0  ;;  %1292 = vrot.lane.b32.xlu0 %v9614_v32, %s8393_s15  ;;  %v1080_v18 = vshll.u32 %v10067_v31, 16 }
 0x20e   : > { %v10003_v43 = vpop.f32.mrf.mxu0  ;;  %v10009_v10 = vpop.permute.xlu1 %1129  ;;  %8059 = vmatmul.mubr.msk.bf16.gmra.mxu0 %vm4247_vm13, %v3828_v22 }
 0x20f   : > { %v10007_v29 = vrot.slane %v9994_v62, %v9888_v50  ;;  %v1374_v3 = vpop.permute.xlu0 %1373  ;;  %8062 = vmatprep.mubr.msk.bf16.mxu0 %vm8399_vm4, %v11826_v44 }
 0x210   : > { %v8025_v34 = vpop.f32.mrf.mxu0  ;;  %1379 = vrot.lane.b32.xlu1 %v11838_v4, %s8398_s20  ;;  %v1741_v4 = vsel %vm1695_vm8, %v1668_v53, %v9946_v40 }
 0x211   : > { %v5698_v56 = vcombine.low %v4667_v13, %v10007_v29  ;;  %1464 = vrot.lane.b32.xlu0 %v10014_v57, %s8396_s19  ;;  %v1814_v39 = vsel %vm1768_vm9, %v1741_v4, %v1207_v54  ;;  %v8322_v34 = vld [vmem:[%s8481_s10 + $0x80] ss:$0 sps:$4 sm:$0x33]  }
 0x212   : > { %v1449_v58 = vpop.permute.xlu1 %1448  ;;  %v1887_v47 = vsel %vm1841_vm10, %v1814_v39, %v1287_v60  ;;  %v1520_v37 = vsel %vm1476_vm6, %v8322_v34, %v11853_v27  ;;  %v8323_v34 = vld [vmem:[%s8481_s10 + $0x8c] ss:$0 sps:$4 sm:$0x33]   ;;  %v11855_v27 = vld [vmem:[#allocation27_spill] sm:$0xff] }
 0x213   : > { %v5712_v33 = vrot.slane %v5698_v56, %v9888_v50  ;;  %v10035_v25 = vpop.permute.xlu0 %1139  ;;  %v1960_v40 = vsel %vm1914_vm11, %v1887_v47, %v1374_v3  ;;  %v1593_v26 = vsel %vm1549_vm5, %v1520_v37, %v9959_v38  ;;  %v10113_v47 = vld [vmem:[%s8481_s10 + $0xe4] sm:$0xff]   ;;  %v10143_v37 = vsel %vm1476_vm6, %v8323_v34, %v11855_v27 }
 0x214   : > { %1454 = vrot.lane.b32.xlu1 %v9617_v14, %s8396_s19  ;;  %v2033_v54 = vsel %vm1987_vm12, %v1960_v40, %v1449_v58  ;;  %v10057_v14 = vld [vmem:[%s8481_s10 + $0xd8] sm:$0xff]   ;;  %v1666_v58 = vsel %vm1622_vm7, %v1593_v26, %v9992_v0  ;;  %11856 = vst [vmem:[#allocation8_spill] sm:$0xff] %v10143_v37 }
 0x215   : > { %v5713_v63 = vcombine.low %v5705_v1, %v5712_v33  ;;  %982 = vrot.lane.b32.xlu0 %v9703_v12, %s8390_s12  ;;  %v2796_v15 = vrot.slane %v2033_v54, %v9122_v16  ;;  %v2789_v36 = vcombine.high %v2033_v54, %v2033_v54  ;;  %v11854_v1 = vld [vmem:[#allocation17_spill] sm:$0xff]  ;;  %v10100_v33 = vrot.slane %v1080_v18, 1 }
 0x216   : > { %v10049_v45 = vpop.permute.xlu1 %1214 }
 0x217   : > { %v10046_v55 = vpack.c.bf16 %v5713_v63, %v6434_v35  ;;  %v1205_v2 = vpop.permute.xlu0 %1204  ;;  %v2804_v28 = vcombine.high %v2796_v15, %v2796_v15  ;;  %v10090_v11 = vrot.slane %v2796_v15, %v9122_v16  ;;  %v1739_v35 = vsel %vm1695_vm8, %v1666_v58, %v10009_v10  ;;  %v10149_v58 = vld [vmem:[%s8481_s10 + $0xec] ss:$0 sps:$4 sm:$0x33]  }
 0x218   : > { %1149 = vrot.lane.b32.xlu1 %v11851_v23, %s8391_s13  ;;  %v1075_v23 = vshll.u32 %v10057_v14, 16  ;;  %v1812_v54 = vsel %vm1768_vm9, %v1739_v35, %v1205_v2  ;;  %v5311_v10 = vadd.s32 16, %v11847_v52  ;;  %v11862_v52 = vld [vmem:[#allocation32_spill] sm:$0xff] }
 0x219   : > { %1062 = vrot.lane.b32.xlu0 %v9789_v30, %s8392_s14  ;;  %v2826_v22 = vrot.slane %v2804_v28, %v9122_v16  ;;  %v2834_v0 = vcombine.high %v10090_v11, %v10090_v11 }
 0x21a   : > { %v1285_v12 = vpop.permute.xlu1 %1284  ;;  %v1077_v9 = vrot.slane %v1075_v23, 1 }
 0x21b   : > { %v10060_v60 = vpop.permute.xlu0 %976  ;;  %v2836_v4 = vcombine.high %v2826_v22, %v2826_v22 }
 0x21c   : > { %984 = vrot.lane.b32.xlu1 %v9808_v42, %s8390_s12  ;;  %v1073_v42 = vshrl.u32 %v10057_v14, 16 }
 0x21d   : > { %1224 = vrot.lane.b32.xlu0 %v9792_v48, %s8394_s16 }
 0x21e   : > { %v10070_v30 = vpop.permute.xlu1 %1056  ;;  %v1078_v53 = vor.u32 %v1077_v9, %v1073_v42  ;;  %v10134_v42 = vrot.slane %v10067_v31, 1 }
 0x21f   : > { %v10072_v46 = vpop.permute.xlu0 %1294  ;;  %v4376_v7 = vpop.f32.mrf.mxu0 }
 0x220   : > { %1064 = vrot.lane.b32.xlu1 %v9965_v5, %s8392_s14  ;;  %v10087_v5 = vrot.slane %v2789_v36, %v9122_v16  ;;  %v1083_v15 = vsel %vm522_vm0, %v1078_v53, %v10100_v33  ;;  %v1159_v36 = vrot.slane %v10057_v14, 1  ;;  %v4377_v26 = vadd.f32 %v9877_v51, %v4376_v7 }
 0x221   : > { %1304 = vrot.lane.b32.xlu0 %v9980_v61, %s8393_s15  ;;  %v8028_v24 = vpop.f32.mrf.mxu0  ;;  %v10163_v7 = vadd.s32 4294967295, %v5311_v10 }
 0x222   : > { %v10081_v13 = vpop.permute.xlu1 %1381  ;;  %v10117_v40 = vrot.slane %v10087_v5, %v9122_v16  ;;  %v1317_v24 = vshll.u32 %v10113_v47, 16  ;;  %v1161_v34 = vsel %vm865_vm1, %v1159_v36, %v10134_v42  ;;  %v1322_v36 = vshll.u32 %v10149_v58, 16 }
 0x223   : > { %v1372_v3 = vpop.permute.xlu0 %1371  ;;  %v10092_v56 = vpop.f32.mrf.mxu0  ;;  %vm5470_vm15 = vcmp.lt.s32.totalorder %v10163_v7, 16 }
 0x224   : > { %1151 = vrot.lane.b32.xlu1 %v11850_v20, %s8391_s13  ;;  %v4372_v20 = vadd.f32 %v9877_v51, %v10003_v43  ;;  %v1885_v43 = vsel %vm1841_vm10, %v1812_v54, %v1285_v12  ;;  %v3832_v23 = vcombine.low %v2836_v4, %v10117_v40  ;;  %v8324_v4 = vld [vmem:[%s8481_s10 + $0x98] ss:$0 sps:$4 sm:$0x33]   ;;  %v11859_v54 = vld [vmem:[#allocation30_spill] sm:$0xff] }
 0x225   : > { %1391 = vrot.lane.b32.xlu0 %v11854_v1, %s8398_s20  ;;  %v8029_v39 = vpop.f32.mrf.mxu0  ;;  %v1958_v28 = vsel %vm1914_vm11, %v1885_v43, %v1372_v3  ;;  %v3831_v3 = vcombine.low %v2826_v22, %v2834_v0  ;;  %v4668_v22 = vcombine.high %v9994_v62, %v9994_v62  ;;  %v7885_v0 = vcombine.high %v9930_v41, %v9924_v21 }
 0x226   : > { %v10104_v63 = vpop.permute.xlu1 %974  ;;  %v4523_v12 = vmax.f32 %v4372_v20, 0.0  ;;  %v11857_v39 = vld [vmem:[#allocation29_spill] sm:$0xff]  ;;  %v8325_v20 = vld [vmem:[%s8481_s10 + $0x90] sm:$0xff]   ;;  %v4683_v62 = vcombine.high %v10007_v29, %v10007_v29  ;;  %v1319_v21 = vrot.slane %v1317_v24, 1  ;;  %v11861_v29 = vld [vmem:[#allocation31_spill] sm:$0xff] }
 0x227   : > { %v10110_v38 = vpop.permute.xlu0 %968  ;;  %v10154_v35 = vsel %vm1476_vm6, %v8324_v4, %v11857_v39  ;;  %v10159_v43 = vsel %vm1476_vm6, %v8325_v20, %v11859_v54  ;;  %v1315_v4 = vshrl.u32 %v10113_v47, 16  ;;  %v3853_v41 = vrot.slane %v3831_v3, %v9122_v16  ;;  %v8326_v39 = vld [vmem:[%s8481_s10 + $0xa4] ss:$0 sps:$4 sm:$0x33]   ;;  %v8327_v54 = vld [vmem:[%s8481_s10 + $0x9c] sm:$0xff]  }
 0x228   : > { %1226 = vrot.lane.b32.xlu1 %v10014_v57, %s8394_s16  ;;  %11858 = vst [vmem:[#allocation6_spill] sm:$0xff] %v10154_v35  ;;  %v4692_v10 = vrot.slane %v4523_v12, %v9888_v50  ;;  %v10191_v20 = vsel %vm1476_vm6, %v8326_v39, %v11861_v29  ;;  %v1530_v24 = vsel %vm1476_vm6, %v8327_v54, %v11862_v52  ;;  %v11863_v35 = vld [vmem:[#allocation33_spill] sm:$0xff] }
 0x229   : > { %1466 = vrot.lane.b32.xlu0 %v9983_v8, %s8396_s19  ;;  %v10199_v3 = vsel %vm1476_vm6, %v9614_v32, %v11863_v35  ;;  %v5720_v52 = vrot.slane %v4683_v62, %v9888_v50  ;;  %v1320_v32 = vor.u32 %v1319_v21, %v1315_v4  ;;  %v1084_v4 = vshrl.u32 %v10067_v31, 16 }
 0x22a   : > { %v1447_v2 = vpop.permute.xlu1 %1446  ;;  %11864 = vst [vmem:[#allocation12_spill] sm:$0xff] %v10199_v3  ;;  %v4700_v54 = vcombine.high %v4692_v10, %v4692_v10  ;;  %v11867_v3 = vld [vmem:[#allocation34_spill] sm:$0xff] }
 0x22b   : > { %v2031_v9 = vsel %vm1987_vm12, %v1958_v28, %v1447_v2  ;;  %v10137_v18 = vpop.permute.xlu0 %1143  ;;  %v3860_v28 = vrot.slane %v3832_v23, %v9122_v16  ;;  %v10182_v23 = vmax.f32 %v4377_v26, 0.0  ;;  %v4685_v26 = vcombine.high %v4523_v12, %v4523_v12 }
 0x22c   : > { %v2781_v53 = vrot.slane %v2031_v9, %v9122_v16  ;;  %1393 = vrot.lane.b32.xlu1 %v1083_v15, %s8398_s20  ;;  %v1324_v12 = vrot.slane %v1322_v36, 1 }
 0x22d   : > { %1306 = vrot.lane.b32.xlu0 %v10057_v14, %s8393_s15  ;;  %v3862_v29 = vcombine.low %v3853_v41, %v3860_v28  ;;  %v4709_v35 = vrot.slane %v10182_v23, %v9888_v50  ;;  %v4380_v28 = vadd.f32 %v9877_v51, %v10092_v56  ;;  %v4699_v21 = vrot.slane %v4685_v26, %v9888_v50 }
 0x22e   : > { %v2788_v2 = vrot.slane %v2781_v53, %v9122_v16  ;;  %v10171_v9 = vpop.permute.xlu1 %1048  ;;  %v6436_v26 = vsel %vm5470_vm15, %v5720_v52, 0.0  ;;  %v11872_v52 = vrot.slane %v10149_v58, 1 }
 0x22f   : > { %11860 = vst [vmem:[#allocation7_spill] sm:$0xff] %v10171_v9  ;;  %v10178_v27 = vpop.permute.xlu0 %1456  ;;  %v3876_v36 = vrot.slane %v3862_v29, %v9122_v16 }
 0x230   : > { %v3830_v53 = vcombine.low %v2788_v2, %v10090_v11  ;;  %988 = vrot.lane.b32.xlu1 %v10014_v57, %s8390_s12  ;;  %v4682_v11 = vrot.slane %v4668_v22, %v9888_v50  ;;  %v3839_v57 = vrot.slane %v7885_v0, %v9122_v16  ;;  %v1401_v0 = vrot.slane %v10113_v47, 1 }
 0x231   : > { %1468 = vrot.lane.b32.xlu0 %v1161_v34, %s8396_s19 }
 0x232   : > { %v3846_v2 = vrot.slane %v3830_v53, %v9122_v16  ;;  %v10205_v39 = vpop.permute.xlu1 %1218  ;;  %v4684_v53 = vcombine.high %v4682_v11, %v4682_v11 }
 0x233   : > { %v10209_v37 = vpop.permute.xlu0 %1054 }
 0x234   : > { %11865 = vst [vmem:[#allocation19_spill] sm:$0xff] %v10209_v37  ;;  %v3861_v22 = vcombine.low %v3839_v57, %v3846_v2  ;;  %1155 = vrot.lane.b32.xlu1 %v1083_v15, %s8391_s13  ;;  %v1326_v57 = vshrl.u32 %v10149_v58, 16  ;;  %v8328_v2 = vld [vmem:[%s8481_s10 + $0xa8] sm:$0xff]  }
 0x235   : > { %1068 = vrot.lane.b32.xlu0 %v10057_v14, %s8392_s14  ;;  %v10230_v56 = vsel %vm1476_vm6, %v8328_v2, %v11867_v3  ;;  %v11868_v14 = vld [vmem:[#allocation35_spill] sm:$0xff]  ;;  %v4702_v3 = vcombine.high %v10182_v23, %v10182_v23  ;;  %v4717_v2 = vcombine.high %v4709_v35, %v4709_v35 }
 0x236   : > { %v10222_v41 = vpop.permute.xlu1 %1135  ;;  %v3869_v15 = vrot.slane %v3861_v22, %v9122_v16  ;;  %v10235_v62 = vsel %vm1476_vm6, %v9700_v17, %v11868_v14  ;;  %v11870_v22 = vld [vmem:[#allocation36_spill] sm:$0xff]  ;;  %v5721_v14 = vcombine.low %v4682_v11, %v4684_v53  ;;  %v10263_v11 = vor.u32 %v1326_v57, %v1324_v12 }
 0x237   : > { %11866 = vst [vmem:[#allocation14_spill] sm:$0xff] %v10222_v41  ;;  %11869 = vst [vmem:[#allocation9_spill] sm:$0xff] %v10235_v62  ;;  %v5722_v41 = vcombine.low %v4692_v10, %v4700_v54  ;;  %v10239_v37 = vpop.permute.xlu0 %966  ;;  %v10244_v29 = vsel %vm1476_vm6, %v9661_v59, %v11870_v22  ;;  %v4384_v9 = vpop.f32.mrf.mxu0  ;;  %v4525_v62 = vmax.f32 %v4380_v28, 0.0  ;;  %v1325_v10 = vsel %vm522_vm0, %v1320_v32, %v1324_v12 }
 0x238   : > { %11871 = vst [vmem:[#allocation20_spill] sm:$0xff] %v10244_v29  ;;  %986 = vrot.lane.b32.xlu1 %v9792_v48, %s8390_s12  ;;  %v3877_v17 = vcombine.low %v3869_v15, %v3876_v36  ;;  %v1403_v59 = vsel %vm865_vm1, %v1401_v0, %v11872_v52  ;;  %v10255_v54 = vpack.c.bf16 %v6436_v26, %v6436_v26 }
 0x239   : > { %1230 = vrot.lane.b32.xlu0 %v1161_v34, %s8394_s16  ;;  %v4701_v22 = vcombine.high %v4699_v21, %v4699_v21  ;;  %v8032_v23 = vpop.f32.mrf.mxu0  ;;  %v10261_v48 = vor.u32 %v1084_v4, %v10100_v33  ;;  %v1603_v34 = vsel %vm1549_vm5, %v1530_v24, %v9971_v6  ;;  %v5736_v32 = vrot.slane %v5722_v41, %v9888_v50 }
 0x23a   : > { %v10257_v29 = vpop.permute.xlu1 %1298  ;;  %8063 = vmatmul.mubr.msk.bf16.gmra.mxu0 %vm4247_vm13, %v3877_v17  ;;  %v2805_v0 = vcombine.high %v10087_v5, %v10087_v5  ;;  %v1676_v28 = vsel %vm1622_vm7, %v1603_v34, %v9987_v49  ;;  %v4716_v33 = vrot.slane %v4702_v3, %v9888_v50  ;;  %v5739_v12 = vcombine.low %v4709_v35, %v4717_v2 }
 0x23b   : > { %v10270_v53 = vpop.permute.xlu0 %1141  ;;  %8066 = vmatprep.mubr.msk.bf16.mxu0 %vm8399_vm4, %v11826_v44  ;;  %v10277_v4 = vpop.f32.mrf.mxu0  ;;  %v6536_v6 = vshll.u32 %v10046_v55, 16  ;;  %v5729_v5 = vrot.slane %v5721_v14, %v9888_v50  ;;  %v1749_v24 = vsel %vm1695_vm8, %v1676_v28, %v10035_v25  ;;  %v4719_v41 = vcombine.high %v4525_v62, %v4525_v62 }
 0x23c   : > { %1066 = vrot.lane.b32.xlu1 %v9980_v61, %s8392_s14  ;;  %v4726_v15 = vrot.slane %v4525_v62, %v9888_v50  ;;  %v5738_v49 = vcombine.low %v4699_v21, %v4701_v22  ;;  %v1822_v35 = vsel %vm1768_vm9, %v1749_v24, %v10049_v45  ;;  %v6541_v61 = vshll.u32 %v10255_v54, 16 }
 0x23d   : > { %1310 = vrot.lane.b32.xlu0 %v10113_v47, %s8393_s15  ;;  %v8033_v36 = vpop.f32.mrf.mxu0  ;;  %v5737_v26 = vcombine.low %v5729_v5, %v5736_v32  ;;  %v10294_v3 = vrot.slane %v2805_v0, %v9122_v16  ;;  %v2835_v25 = vcombine.high %v10117_v40, %v10117_v40  ;;  %v1895_v62 = vsel %vm1841_vm10, %v1822_v35, %v10072_v46 }
 0x23e   : > { %v10290_v57 = vpop.permute.xlu1 %1210  ;;  %v5753_v21 = vrot.slane %v5739_v12, %v9888_v50  ;;  %v5761_v45 = vrot.slane %v4716_v33, %v9888_v50  ;;  %v1968_v2 = vsel %vm1914_vm11, %v1895_v62, %v10081_v13  ;;  %v6538_v17 = vrot.slane %v6536_v6, 1 }
 0x23f   : > { %v10300_v47 = vpop.permute.xlu0 %1046  ;;  %v10309_v14 = vrot.slane %v4719_v41, %v9888_v50  ;;  %v4734_v40 = vcombine.high %v4726_v15, %v4726_v15  ;;  %v2041_v46 = vsel %vm1987_vm12, %v1968_v2, %v10178_v27  ;;  %v4385_v52 = vadd.f32 %v9877_v51, %v4384_v9 }
 0x240   : > { %1153 = vrot.lane.b32.xlu1 %v11854_v1, %s8391_s13  ;;  %v5746_v22 = vrot.slane %v5738_v49, %v9888_v50  ;;  %v6534_v13 = vshrl.u32 %v10046_v55, 16  ;;  %v8402_v34 = vmov 0   ;;  %v11784_v1 = vmov 0.0|0.0  }
 0x241   : > { %1397 = vrot.lane.b32.xlu0 %v1325_v10, %s8398_s20  ;;  %v10317_v32 = vrot.slane %v8402_v34, 1  ;;  %v10320_v0 = vrot.slane %v11784_v1, 1  ;;  %v6437_v28 = vsel %vm5369_vm14, %v5737_v26, 0.0  ;;  %v10325_v27 = vcombine.low %v10294_v3, %v2835_v25 }
 0x242   : > { %v1386_v23 = vpop.permute.xlu1 %1385  ;;  %v1607_v9 = vsel %vm1549_vm5, %v10230_v56, %v10060_v60  ;;  %v4718_v10 = vcombine.high %v4716_v33, %v4716_v33  ;;  %v5754_v6 = vcombine.low %v5746_v22, %v5753_v21  ;;  %v6439_v5 = vsel %vm5470_vm15, %v5761_v45, 0.0 }
 0x243   : > { %v10330_v12 = vpop.permute.xlu0 %1216  ;;  %v2915_v24 = vcombine.high %v2041_v46, %v2041_v46  ;;  %v2922_v41 = vrot.slane %v2041_v46, %v9122_v16  ;;  %v5763_v49 = vcombine.low %v4734_v40, %v10309_v14  ;;  %v4526_v35 = vmax.f32 %v4385_v52, 0.0 }
 0x244   : > { %1228 = vrot.lane.b32.xlu1 %v9983_v8, %s8394_s16  ;;  %v6539_v36 = vor.u32 %v6538_v17, %v6534_v13  ;;  %v6543_v60 = vrot.slane %v6541_v61, 1  ;;  %v1680_v56 = vsel %vm1622_vm7, %v1607_v9, %v10070_v30  ;;  %v2837_v26 = vcombine.high %v10294_v3, %v10294_v3 }
 0x245   : > { %1472 = vrot.lane.b32.xlu0 %v1403_v59, %s8396_s19  ;;  %v6780_v25 = vrot.slane %v10046_v55, 1  ;;  %v6781_v62 = vrot.slane %v10255_v54, 1  ;;  %v10347_v21 = vpack.c.bf16 %v6439_v5, %v6439_v5  ;;  %v5762_v45 = vcombine.low %v4718_v10, %v4726_v15 }
 0x246   : > { %v10341_v33 = vpop.permute.xlu1 %1290  ;;  %v1753_v59 = vsel %vm1695_vm8, %v1680_v56, %v10137_v18  ;;  %v10355_v61 = vpack.c.bf16 %v5754_v6, %v6437_v28  ;;  %v2929_v17 = vrot.slane %v2915_v24, %v9122_v16  ;;  %v2930_v40 = vcombine.high %v2922_v41, %v2922_v41 }
 0x247   : > { %v10351_v2 = vpop.permute.xlu0 %1133  ;;  %v1826_v46 = vsel %vm1768_vm9, %v1753_v59, %v10205_v39  ;;  %v5777_v54 = vrot.slane %v5763_v49, %v9888_v50  ;;  %v4736_v15 = vcombine.high %v4526_v35, %v4526_v35  ;;  %v4743_v18 = vrot.slane %v4526_v35, %v9888_v50 }
 0x248   : > { %1395 = vrot.lane.b32.xlu1 %v10261_v48, %s8398_s20  ;;  %v1899_v52 = vsel %vm1841_vm10, %v1826_v46, %v10257_v29  ;;  %v1605_v22 = vsel %vm1549_vm5, %v10191_v20, %v10104_v63  ;;  %v10373_v34 = vsel %vm522_vm0, %v6539_v36, %v6543_v60  ;;  %v10376_v28 = vsel %vm865_vm1, %v6780_v25, %v6781_v62  ;;  %v11873_v60 = vld [vmem:[#allocation7_spill] sm:$0xff] }
 0x249   : > { %1308 = vrot.lane.b32.xlu0 %v10067_v31, %s8393_s15  ;;  %v1972_v39 = vsel %vm1914_vm11, %v1899_v52, %v1386_v23  ;;  %v5770_v9 = vrot.slane %v5762_v45, %v9888_v50  ;;  %v4388_v29 = vadd.f32 %v9877_v51, %v10277_v4  ;;  %v6553_v63 = vshll.u32 %v10347_v21, 16 }
 0x24a   : > { %v1461_v13 = vpop.permute.xlu1 %1460  ;;  %v1599_v20 = vsel %vm1549_vm5, %v10159_v43, %v10110_v38  ;;  %v2931_v23 = vcombine.high %v2929_v17, %v2929_v17  ;;  %v2945_v5 = vrot.slane %v2929_v17, %v9122_v16  ;;  %v10390_v24 = vrot.slane %v2930_v40, %v9122_v16 }
 0x24b   : > { %v10382_v10 = vsel %vm1987_vm12, %v1972_v39, %v1461_v13  ;;  %v1297_v6 = vpop.permute.xlu0 %1296  ;;  %v5778_v4 = vcombine.low %v5770_v9, %v5777_v54  ;;  %v4750_v49 = vrot.slane %v4736_v15, %v9888_v50  ;;  %v4751_v35 = vcombine.high %v4743_v18, %v4743_v18  ;;  %v11874_v39 = vld [vmem:[#allocation19_spill] sm:$0xff] }
 0x24c   : > { %990 = vrot.lane.b32.xlu1 %v9983_v8, %s8390_s12  ;;  %v6548_v36 = vshll.u32 %v10355_v61, 16  ;;  %v1672_v38 = vsel %vm1622_vm7, %v1599_v20, %v11873_v60  ;;  %v4735_v43 = vcombine.high %v10309_v14, %v10309_v14  ;;  %v2985_v56 = vrot.slane %v10382_v10, %v9122_v16  ;;  %v11876_v20 = vld [vmem:[#allocation8_spill] sm:$0xff]  ;;  %s8406_s12 = smov 32  }
 0x24d   : > { %1470 = vrot.lane.b32.xlu0 %v10134_v42, %s8396_s19  ;;  %v6784_v8 = vrot.slane %v10347_v21, 1  ;;  %v4527_v62 = vmax.f32 %v4388_v29, 0.0  ;;  %v6546_v59 = vshrl.u32 %v10355_v61, 16  ;;  %v10408_v17 = vrot.slane %v6553_v63, 1  ;;  %v11875_v29 = vld [vmem:[#allocation14_spill] sm:$0xff] }
 0x24e   : > { %v1378_v25 = vpop.permute.xlu1 %1377  ;;  %v6783_v40 = vrot.slane %v10355_v61, 1  ;;  %v10412_v46 = vrot.slane %v2922_v41, %v9122_v16  ;;  %v10415_v14 = vrot.slane %v2931_v23, %v9122_v16  ;;  %v2961_v54 = vcombine.high %v2945_v5, %v2945_v5 }
 0x24f   : > { %v10405_v45 = vpop.permute.xlu0 %1208  ;;  %v2962_v15 = vcombine.high %v10390_v24, %v10390_v24  ;;  %v10423_v52 = vsel %vm5369_vm14, %v5778_v4, 0.0  ;;  %v1678_v13 = vsel %vm1622_vm7, %v1605_v22, %v11874_v39  ;;  %v5780_v9 = vcombine.low %v4751_v35, %v4750_v49  ;;  %v4392_v1 = vpop.f32.mrf.mxu0 }
 0x250   : > { %1157 = vrot.lane.b32.xlu1 %v10261_v48, %s8391_s13  ;;  %v6550_v41 = vrot.slane %v6548_v36, 1  ;;  %v1745_v63 = vsel %vm1695_vm8, %v1672_v38, %v11875_v29  ;;  %v1597_v23 = vsel %vm1549_vm5, %v11876_v20, %v10239_v37  ;;  %v4752_v48 = vcombine.high %v4750_v49, %v4750_v49 }
 0x251   : > { %1070 = vrot.lane.b32.xlu0 %v10067_v31, %s8392_s14  ;;  %v2993_v60 = vcombine.high %v2985_v56, %v2985_v56  ;;  %v5779_v30 = vcombine.low %v4735_v43, %v4743_v18  ;;  %v1751_v22 = vsel %vm1695_vm8, %v1678_v13, %v10270_v53  ;;  %v4753_v35 = vcombine.high %v4527_v62, %v4527_v62  ;;  %v8036_v37 = vpop.f32.mrf.mxu0 }
 0x252   : > { %v10434_v4 = vpop.permute.xlu1 %1288  ;;  %v4393_v31 = vadd.f32 %v9877_v51, %v4392_v1  ;;  %v3976_v39 = vcombine.low %v2962_v15, %v2945_v5  ;;  %v3977_v38 = vcombine.low %v10415_v14, %v2961_v54  ;;  %v1824_v29 = vsel %vm1768_vm9, %v1751_v22, %v10330_v12 }
 0x253   : > { %v1384_v36 = vpop.permute.xlu0 %1383  ;;  %v2963_v18 = vcombine.high %v10415_v14, %v10415_v14  ;;  %v5794_v49 = vrot.slane %v5780_v9, %v9888_v50  ;;  %v1818_v53 = vsel %vm1768_vm9, %v1745_v63, %v10290_v57  ;;  %v1897_v1 = vsel %vm1841_vm10, %v1824_v29, %v1297_v6  ;;  %v4395_v15 = vpop.f32.mrf.mxu0 }
 0x254   : > { %1312 = vrot.lane.b32.xlu1 %v10149_v58, %s8393_s15  ;;  %v4528_v5 = vmax.f32 %v4393_v31, 0.0  ;;  %v5802_v12 = vrot.slane %v4752_v48, %v9888_v50  ;;  %v1891_v43 = vsel %vm1841_vm10, %v1818_v53, %v10341_v33  ;;  %v10456_v54 = vrot.slane %v2993_v60, %v9122_v16  ;;  %s8407_s15 = smov 40  }
 0x255   : > { %1232 = vrot.lane.b32.xlu0 %v10134_v42, %s8394_s16  ;;  %v1970_v14 = vsel %vm1914_vm11, %v1897_v1, %v1384_v36  ;;  %v5787_v57 = vrot.slane %v5779_v30, %v9888_v50  ;;  %v4767_v6 = vrot.slane %v4753_v35, %v9888_v50  ;;  %v1964_v9 = vsel %vm1914_vm11, %v1891_v43, %v1378_v25  ;;  %v8037_v48 = vpop.f32.mrf.mxu0 }
 0x256   : > { %v1459_v13 = vpop.permute.xlu1 %1458  ;;  %v10464_v20 = vrot.slane %v2985_v56, %v9122_v16  ;;  %v4770_v33 = vcombine.high %v4528_v5, %v4528_v5  ;;  %v11877_v30 = vrot.slane %v10149_v58, 1  ;;  %v3986_v35 = vrot.slane %v3976_v39, %v9122_v16 }
 0x257   : > { %v2043_v42 = vsel %vm1987_vm12, %v1970_v14, %v1459_v13  ;;  %v1453_v63 = vpop.permute.xlu0 %1452  ;;  %v3993_v25 = vrot.slane %v3977_v38, %v9122_v16  ;;  %v5795_v31 = vcombine.low %v5787_v57, %v5794_v49  ;;  %v4760_v36 = vrot.slane %v4527_v62, %v9888_v50 }
 0x258   : > { %v2970_v60 = vrot.slane %v2043_v42, %v9122_v16  ;;  %v10468_v22 = vsel %vm1987_vm12, %v1964_v9, %v1453_v63  ;;  %1474 = vrot.lane.b32.xlu1 %v11877_v30, %s8396_s19  ;;  %v3979_v56 = vcombine.low %v10464_v20, %v10456_v54  ;;  %v6442_v39 = vsel %vm5470_vm15, %v5802_v12, 0.0 }
 0x259   : > { %1399 = vrot.lane.b32.xlu0 %v10263_v11, %s8398_s20  ;;  %v2859_v37 = vrot.slane %v10468_v22, %v9122_v16  ;;  %v2960_v38 = vcombine.high %v10412_v46, %v10412_v46  ;;  %v1670_v62 = vsel %vm1622_vm7, %v1597_v23, %v10300_v47  ;;  %v6551_v49 = vor.u32 %v6550_v41, %v6546_v59 }
 0x25a   : > { %v2977_v29 = vrot.slane %v2970_v60, %v9122_v16  ;;  %v10483_v58 = vpop.permute.xlu1 %978  ;;  %v10498_v53 = vsel %vm865_vm1, %v6783_v40, %v6784_v8  ;;  %v4769_v1 = vcombine.high %v4767_v6, %v4767_v6  ;;  %v4784_v12 = vrot.slane %v4770_v33, %v9888_v50 }
 0x25b   : > { %v1376_v11 = vpop.permute.xlu0 %1375  ;;  %v2867_v14 = vcombine.high %v2859_v37, %v2859_v37  ;;  %v4768_v47 = vcombine.high %v4760_v36, %v4760_v36  ;;  %v1743_v59 = vsel %vm1695_vm8, %v1670_v62, %v10351_v2  ;;  %v4008_v21 = vcombine.low %v3986_v35, %v3993_v25 }
 0x25c   : > { %v3978_v43 = vcombine.low %v2963_v18, %v2977_v29  ;;  %6715 = vrot.lane.b32.xlu1 %v10373_v34, %s8404_s30  ;;  %v10507_v41 = vpack.c.bf16 %v6442_v39, %v6442_v39  ;;  %v10510_v8 = vpack.c.bf16 %v5795_v31, %v10423_v52  ;;  %v4007_v40 = vrot.slane %v3979_v56, %v9122_v16 }
 0x25d   : > { %6713 = vrot.lane.b32.xlu0 %v10317_v32, %s8404_s30  ;;  %v1816_v23 = vsel %vm1768_vm9, %v1743_v59, %v10405_v45  ;;  %v4777_v57 = vrot.slane %v4528_v5, %v9888_v50  ;;  %v4396_v2 = vadd.f32 %v9877_v51, %v4395_v15  ;;  %v2875_v9 = vrot.slane %v2859_v37, %v9122_v16 }
 0x25e   : > { %v4000_v18 = vrot.slane %v3978_v43, %v9122_v16  ;;  %v1451_v13 = vpop.permute.xlu1 %1450  ;;  %v2889_v42 = vrot.slane %v2867_v14, %v9122_v16  ;;  %v5804_v52 = vcombine.low %v4767_v6, %v4769_v1  ;;  %v2978_v33 = vcombine.high %v10382_v10, %v10382_v10 }
 0x25f   : > { %v10520_v63 = vpop.permute.xlu0 %980  ;;  %v4786_v48 = vcombine.high %v4784_v12, %v4784_v12  ;;  %v1889_v45 = vsel %vm1841_vm10, %v1816_v23, %v10434_v4  ;;  %v10529_v51 = vcombine.low %v10390_v24, %v2960_v38  ;;  %v5803_v6 = vcombine.low %v4760_v36, %v4768_v47 }
 0x260   : > { %6827 = vrot.lane.b32.xlu1 %v10376_v28, %s8405_s8  ;;  %v4009_v5 = vcombine.low %v4000_v18, %v4007_v40  ;;  %v3880_v15 = vcombine.low %v2875_v9, %v2889_v42  ;;  %v1962_v60 = vsel %vm1914_vm11, %v1889_v45, %v1376_v11  ;;  %v7886_v10 = vcombine.high %v2875_v9, %v2889_v42 }
 0x261   : > { %6825 = vrot.lane.b32.xlu0 %v10320_v0, %s8405_s8  ;;  %v2035_v30 = vsel %vm1987_vm12, %v1962_v60, %v1451_v13  ;;  %v6560_v4 = vshll.u32 %v10510_v8, 16  ;;  %v4785_v25 = vcombine.high %v4777_v57, %v4777_v57  ;;  %v4529_v31 = vmax.f32 %v4396_v2, 0.0 }
 0x262   : > { %v10535_v35 = vpop.permute.xlu1 %1060  ;;  %v2844_v24 = vrot.slane %v2035_v30, %v9122_v16  ;;  %v4016_v29 = vrot.slane %v4008_v21, %v9122_v16  ;;  %v5818_v37 = vrot.slane %v5804_v52, %v9888_v50  ;;  %v2992_v39 = vrot.slane %v2978_v33, %v9122_v16 }
 0x263   : > { %v10539_v56 = vpop.permute.xlu0 %1058  ;;  %v5821_v36 = vcombine.low %v4784_v12, %v4786_v48  ;;  %v6565_v38 = vshll.u32 %v10507_v41, 16  ;;  %v3902_v62 = vrot.slane %v3880_v15, %v9122_v16  ;;  %v3909_v11 = vrot.slane %v7886_v10, %v9122_v16  ;;  %v8279_v10 = vld [vmem:[%s11748_s3 + $0x20] ss:$0 sps:$4 sm:$0xff]  }
 0x264   : > { %6860 = vrot.lane.b32.xlu1 %v10355_v61, %s8396_s19  ;;  %v2851_v1 = vrot.slane %v2844_v24, %v9122_v16  ;;  %v4023_v43 = vrot.slane %v4009_v5, %v9122_v16  ;;  %v5811_v14 = vrot.slane %v5803_v6, %v9888_v50  ;;  %v2852_v12 = vcombine.high %v10468_v22, %v10468_v22  ;;  %v10570_v22 = vld [vmem:[%s11747_s2] ss:$0 sm:$0xff] }
 0x265   : > { %6858 = vrot.lane.b32.xlu0 %v10046_v55, %s8396_s19  ;;  %v10560_v59 = vsel %vm522_vm0, %v6551_v49, %v10408_v17  ;;  %v6562_v21 = vrot.slane %v6560_v4, 1  ;;  %v5820_v40 = vcombine.low %v4777_v57, %v4785_v25  ;;  %v4787_v23 = vcombine.high %v4529_v31, %v4529_v31  ;;  %8179 = vmatprep.subr.msk.bf16.mxu1 %vm7422_vm2, %v8279_v10 }
 0x266   : > { %v10556_v47 = vpop.permute.xlu1 %1145  ;;  %v3879_v18 = vcombine.low %v2837_v26, %v2851_v1  ;;  %v4024_v13 = vcombine.low %v4016_v29, %v4023_v43  ;;  %v5819_v42 = vcombine.low %v5811_v14, %v5818_v37  ;;  %v2994_v52 = vcombine.high %v2992_v39, %v2992_v39 }
 0x267   : > { %v10565_v2 = vpop.permute.xlu0 %970  ;;  %v4400_v9 = vpop.f32.mrf.mxu0  ;;  %v6558_v3 = vshrl.u32 %v10510_v8, 16  ;;  %v5835_v26 = vrot.slane %v5821_v36, %v9888_v50  ;;  %v3911_v49 = vcombine.low %v3902_v62, %v3909_v11  ;;  %v6567_v48 = vrot.slane %v6565_v38, 1 }
 0x268   : > { %v4401_v17 = vadd.f32 %v10570_v22, %v4400_v9  ;;  %6904 = vrot.lane.b32.xlu1 %v10560_v59, %s8406_s12  ;;  %v3895_v57 = vrot.slane %v3879_v18, %v9122_v16  ;;  %8075 = vmatmul.mubr.msk.bf16.vlgmr.msra.gmra.mxu1 %vm4247_vm13, %v4024_v13  ;;  %v4794_v45 = vrot.slane %v4529_v31, %v9888_v50 }
 0x269   : > { %6902 = vrot.lane.b32.xlu0 %v10373_v34, %s8406_s12  ;;  %v8040_v33 = vpop.f32.mrf.mxu0  ;;  %v2866_v5 = vrot.slane %v2852_v12, %v9122_v16  ;;  %v6563_v6 = vor.u32 %v6562_v21, %v6558_v3  ;;  %8078 = vmatprep.mubr.msk.bf16.mxu1 %vm8399_vm4, %v11826_v44  ;;  %v10591_v30 = vrot.slane %v2992_v39, %v9122_v16 }
 0x26a   : > { %v4530_v15 = vmax.f32 %v4401_v17, 0.0  ;;  %v10583_v60 = vpop.permute.xlu1 %1050  ;;  %v5828_v34 = vrot.slane %v5820_v40, %v9888_v50  ;;  %v4801_v4 = vrot.slane %v4787_v23, %v9888_v50  ;;  %v11878_v25 = vrot.slane %v10325_v27, %v9122_v16 }
 0x26b   : > { %v10598_v24 = vpop.permute.xlu0 %1147  ;;  %v4403_v29 = vpop.f32.mrf.mxu0  ;;  %v10601_v37 = vrot.slane %v2994_v52, %v9122_v16  ;;  %v3925_v1 = vrot.slane %v3911_v49, %v9122_v16  ;;  %v4802_v43 = vcombine.high %v4794_v45, %v4794_v45  ;;  %v2868_v14 = vcombine.high %v2866_v5, %v2866_v5  ;;  %v8280_v52 = vld [vmem:[%s11748_s3 + $0x18] sm:$0xff]  }
 0x26c   : > { %v3910_v31 = vcombine.low %v11878_v25, %v3895_v57  ;;  %v4804_v36 = vcombine.high %v4530_v15, %v4530_v15  ;;  %v4811_v38 = vrot.slane %v4530_v15, %v9888_v50  ;;  %v4404_v39 = vadd.f32 %v10570_v22, %v4403_v29  ;;  %6940 = vrot.lane.b32.xlu1 %v10498_v53, %s8407_s15 }
 0x26d   : > { %v5836_v62 = vcombine.low %v5828_v34, %v5835_v26  ;;  %6938 = vrot.lane.b32.xlu0 %v10376_v28, %s8407_s15  ;;  %v8041_v27 = vpop.f32.mrf.mxu0  ;;  %v5843_v23 = vrot.slane %v4794_v45, %v9888_v50  ;;  %v4803_v18 = vcombine.high %v4801_v4, %v4801_v4  ;;  %v7424_v28 = vsel %vm7422_vm2, %v8279_v10, 0 }
 0x26e   : > { %v3918_v11 = vrot.slane %v3910_v31, %v9122_v16  ;;  %v4818_v12 = vrot.slane %v4804_v36, %v9888_v50  ;;  %v4531_v21 = vmax.f32 %v4404_v39, 0.0  ;;  %v10612_v40 = vpop.permute.xlu1 %1222  ;;  %v6443_v17 = vsel %vm5369_vm14, %v5819_v42, 0.0  ;;  %8099 = vmatpush3.bf16.msra.mxu1 %v7424_v28 }
 0x26f   : > { %v10615_v9 = vpop.permute.xlu0 %1220  ;;  %v4026_v3 = vcombine.low %v10591_v30, %v10601_v37  ;;  %v4819_v26 = vcombine.high %v4811_v38, %v4811_v38  ;;  %v10626_v57 = vpack.c.bf16 %v5836_v62, %v6443_v17  ;;  %v5845_v33 = vcombine.low %v4803_v18, %v4811_v38  ;;  %8100 = vmatprep.subr.bf16.mxu1 %v8280_v52  ;;  %v8282_v17 = vld [vmem:[%s11748_s3 + $0x8] sm:$0xff]  }
 0x270   : > { %v3926_v13 = vcombine.low %v3918_v11, %v3925_v1  ;;  %v4820_v49 = vcombine.high %v4818_v12, %v4818_v12  ;;  %6973 = vrot.lane.b32.xlu1 %v10510_v8, %s8408_s18  ;;  %v4828_v45 = vrot.slane %v4531_v21, %v9888_v50  ;;  %v7888_v42 = vcombine.high %v10464_v20, %v10456_v54  ;;  %v8281_v20 = vld [vmem:[%s11748_s3 + $0x10] sm:$0xff]  }
 0x271   : > { %6971 = vrot.lane.b32.xlu0 %v10355_v61, %s8408_s18  ;;  %v2896_v15 = vrot.slane %v2868_v14, %v9122_v16  ;;  %v10638_v34 = vsel %vm522_vm0, %v6563_v6, %v6567_v48  ;;  %v6787_v25 = vrot.slane %v10507_v41, 1  ;;  %v5844_v31 = vcombine.low %v4802_v43, %v4801_v4 }
 0x272   : > { %8067 = vmatmul.mubr.msk.bf16.gmra.mxu0 %vm4247_vm13, %v3926_v13  ;;  %v10635_v10 = vpop.permute.xlu1 %1300  ;;  %v6445_v29 = vsel %vm5470_vm15, %v5843_v23, 0.0  ;;  %v4821_v36 = vcombine.high %v4531_v21, %v4531_v21  ;;  %v5862_v38 = vcombine.low %v4820_v49, %v4828_v45  ;;  %v2882_v48 = vrot.slane %v2866_v5, %v9122_v16  ;;  %8101 = vmatpush3.bf16.msra.mxu1 %v8280_v52 }
 0x273   : > { %8070 = vmatprep.mubr.msk.bf16.mxu0 %vm8399_vm4, %v11826_v44  ;;  %v10645_v54 = vpop.permute.xlu0 %1137  ;;  %v5861_v41 = vcombine.low %v4819_v26, %v4818_v12  ;;  %v4836_v6 = vcombine.high %v4828_v45, %v4828_v45  ;;  %v6786_v4 = vrot.slane %v10510_v8, 1  ;;  %v7889_v39 = vcombine.high %v10591_v30, %v10601_v37  ;;  %v8330_v30 = vld [vmem:[%s8481_s10 + $0xc0] sm:$0xff]   ;;  %v11879_v37 = vld [vmem:[#allocation38_spill] sm:$0xff]  ;;  %8102 = vmatprep.subr.bf16.mxu1 %v8281_v20 }
 0x274   : > { %7017 = vrot.lane.b32.xlu1 %v10638_v34, %s8409_s22  ;;  %v10657_v62 = vrot.slane %v4026_v3, %v9122_v16  ;;  %v5859_v27 = vrot.slane %v5845_v33, %v9888_v50  ;;  %v6572_v5 = vshll.u32 %v10626_v57, 16  ;;  %v10663_v11 = vpack.c.bf16 %v6445_v29, %v6445_v29 }
 0x275   : > { %7015 = vrot.lane.b32.xlu0 %v10560_v59, %s8409_s22  ;;  %v3927_v1 = vcombine.low %v2882_v48, %v2896_v15  ;;  %v7887_v43 = vcombine.high %v2882_v48, %v2896_v15  ;;  %v5876_v14 = vrot.slane %v5862_v38, %v9888_v50  ;;  %v10671_v21 = vsel %vm1476_vm6, %v8330_v30, %v11879_v37  ;;  %v11880_v38 = vld [vmem:[#allocation12_spill] sm:$0xff] }
 0x276   : > { %v10666_v12 = vpop.permute.xlu1 %1212  ;;  %v10674_v23 = vrot.slane %v7888_v42, %v9122_v16  ;;  %v5852_v18 = vrot.slane %v5844_v31, %v9888_v50  ;;  %v4835_v13 = vrot.slane %v4821_v36, %v9888_v50  ;;  %v3958_v52 = vrot.slane %v10529_v51, %v9122_v16  ;;  %8103 = vmatpush3.bf16.msra.mxu1 %v8281_v20 }
 0x277   : > { %v1303_v28 = vpop.permute.xlu0 %1302  ;;  %v5869_v3 = vrot.slane %v5861_v41, %v9888_v50  ;;  %v5884_v26 = vrot.slane %v4836_v6, %v9888_v50  ;;  %v10688_v49 = vsel %vm865_vm1, %v6786_v4, %v6787_v25  ;;  %v10691_v33 = vrot.slane %v7889_v39, %v9122_v16  ;;  %v11881_v41 = vld [vmem:[#allocation20_spill] sm:$0xff]  ;;  %8104 = vmatprep.subr.bf16.mxu1 %v8282_v17 }
 0x278   : > { %6717 = vrot.lane.b32.xlu1 %v10560_v59, %s8404_s30  ;;  %v4057_v45 = vcombine.low %v10674_v23, %v10657_v62  ;;  %v5860_v42 = vcombine.low %v5852_v18, %v5859_v27  ;;  %v6574_v15 = vrot.slane %v6572_v5, 1  ;;  %v10698_v31 = vrot.slane %v3927_v1, %v9122_v16  ;;  %v8283_v5 = vld [vmem:[%s11748_s3] sm:$0xff]  }
 0x279   : > { %7051 = vrot.lane.b32.xlu0 %v10498_v53, %s8410_s9  ;;  %v10701_v59 = vrot.slane %v7887_v43, %v9122_v16  ;;  %v5877_v25 = vcombine.low %v5869_v3, %v5876_v14  ;;  %v6577_v36 = vshll.u32 %v10663_v11, 16  ;;  %v1609_v48 = vsel %vm1549_vm5, %v11880_v38, %v10483_v58  ;;  %v11882_v14 = vld [vmem:[#allocation6_spill] sm:$0xff] }
 0x27a   : > { %v1390_v29 = vpop.permute.xlu1 %1389  ;;  %v1611_v6 = vsel %vm1549_vm5, %v11881_v41, %v10520_v63  ;;  %v4837_v4 = vcombine.high %v4835_v13, %v4835_v13  ;;  %v6570_v27 = vshrl.u32 %v10626_v57, 16  ;;  %v1682_v1 = vsel %vm1622_vm7, %v1609_v48, %v10539_v56  ;;  %8105 = vmatpush3.bf16.msra.mxu1 %v8282_v17 }
 0x27b   : > { %v1388_v39 = vpop.permute.xlu0 %1387  ;;  %v1684_v20 = vsel %vm1622_vm7, %v1611_v6, %v10535_v35  ;;  %v6448_v58 = vsel %vm5470_vm15, %v5884_v26, 0.0  ;;  %v6789_v63 = vrot.slane %v10626_v57, 1  ;;  %v1755_v43 = vsel %vm1695_vm8, %v1682_v1, %v10556_v47  ;;  %8106 = vmatprep.subr.bf16.mxu1 %v8283_v5 }
 0x27c   : > { %6719 = vrot.lane.b32.xlu1 %v10638_v34, %s8404_s30  ;;  %v1601_v30 = vsel %vm1549_vm5, %v11882_v14, %v10565_v2  ;;  %v6446_v35 = vsel %vm5369_vm14, %v5860_v42, 0.0  ;;  %v6575_v56 = vor.u32 %v6574_v15, %v6570_v27  ;;  %v6579_v3 = vrot.slane %v6577_v36, 1 }
 0x27d   : > { %7053 = vrot.lane.b32.xlu0 %v10688_v49, %s8410_s9  ;;  %v10732_v37 = vpack.c.bf16 %v5877_v25, %v6446_v35  ;;  %v6790_v26 = vrot.slane %v10663_v11, 1  ;;  %v3959_v47 = vcombine.low %v10698_v31, %v10701_v59  ;;  %v1674_v2 = vsel %vm1622_vm7, %v1601_v30, %v10583_v60 }
 0x27e   : > { %v1463_v18 = vpop.permute.xlu1 %1462  ;;  %v10739_v38 = vcombine.low %v4835_v13, %v4837_v4  ;;  %v10741_v42 = vpack.c.bf16 %v6448_v58, %v6448_v58  ;;  %v1828_v15 = vsel %vm1768_vm9, %v1755_v43, %v10615_v9  ;;  %v4408_v25 = vpop.f32.mrf.mxu0  ;;  %v1757_v11 = vsel %vm1695_vm8, %v1684_v20, %v10598_v24  ;;  %8107 = vmatpush3.bf16.msra.mxu1 %v8283_v5 }
 0x27f   : > { %v1293_v48 = vpop.permute.xlu0 %1292  ;;  %v1901_v36 = vsel %vm1841_vm10, %v1828_v15, %v10635_v10  ;;  %v4409_v17 = vadd.f32 %v10570_v22, %v4408_v25  ;;  %v10753_v60 = vsel %vm865_vm1, %v6789_v63, %v6790_v26  ;;  %v1830_v9 = vsel %vm1768_vm9, %v1757_v11, %v10612_v40 }
 0x280   : > { %6831 = vrot.lane.b32.xlu1 %v10688_v49, %s8405_s8  ;;  %v1747_v13 = vsel %vm1695_vm8, %v1674_v2, %v10645_v54  ;;  %v1974_v41 = vsel %vm1914_vm11, %v1901_v36, %v1388_v39  ;;  %v8044_v24 = vpop.f32.mrf.mxu0  ;;  %v10763_v10 = vsel %vm522_vm0, %v6575_v56, %v6579_v3  ;;  %v1903_v6 = vsel %vm1841_vm10, %v1830_v9, %v1303_v28 }
 0x281   : > { %6829 = vrot.lane.b32.xlu0 %v10498_v53, %s8405_s8  ;;  %v2047_v4 = vsel %vm1987_vm12, %v1974_v41, %v1463_v18  ;;  %v4532_v27 = vmax.f32 %v4409_v17, 0.0  ;;  %v6584_v40 = vshll.u32 %v10732_v37, 16  ;;  %v5893_v54 = vrot.slane %v10739_v38, %v9888_v50 }
 0x282   : > { %v1380_v20 = vpop.permute.xlu1 %1379  ;;  %v1820_v39 = vsel %vm1768_vm9, %v1747_v13, %v10666_v12  ;;  %v1976_v53 = vsel %vm1914_vm11, %v1903_v6, %v1390_v29  ;;  %v4411_v1 = vpop.f32.mrf.mxu0  ;;  %v6589_v63 = vshll.u32 %v10741_v42, 16  ;;  %v3033_v5 = vrot.slane %v2047_v4, %v9122_v16 }
 0x283   : > { %v1465_v58 = vpop.permute.xlu0 %1464  ;;  %v4838_v28 = vcombine.high %v4532_v27, %v4532_v27  ;;  %v4845_v43 = vrot.slane %v4532_v27, %v9888_v50  ;;  %v4412_v14 = vadd.f32 %v10570_v22, %v4411_v1  ;;  %v6793_v56 = vrot.slane %v10741_v42, 1 }
 0x284   : > { %v2049_v30 = vsel %vm1987_vm12, %v1976_v53, %v1465_v58  ;;  %6864 = vrot.lane.b32.xlu1 %v10626_v57, %s8396_s19  ;;  %v8045_v29 = vpop.f32.mrf.mxu0  ;;  %v6586_v15 = vrot.slane %v6584_v40, 1  ;;  %v1893_v25 = vsel %vm1841_vm10, %v1820_v39, %v1293_v48  ;;  %v3040_v42 = vrot.slane %v3033_v5, %v9122_v16 }
 0x285   : > { %v3041_v35 = vcombine.high %v2049_v30, %v2049_v30  ;;  %v3048_v12 = vrot.slane %v2049_v30, %v9122_v16  ;;  %6862 = vrot.lane.b32.xlu0 %v10510_v8, %s8396_s19  ;;  %v4852_v18 = vrot.slane %v4838_v28, %v9888_v50  ;;  %v4853_v3 = vcombine.high %v4845_v43, %v4845_v43 }
 0x286   : > { %v4533_v26 = vmax.f32 %v4412_v14, 0.0  ;;  %v1455_v2 = vpop.permute.xlu1 %1454  ;;  %v1966_v4 = vsel %vm1914_vm11, %v1893_v25, %v1380_v20  ;;  %v6582_v48 = vshrl.u32 %v10732_v37, 16 }
 0x287   : > { %v3055_v11 = vrot.slane %v3041_v35, %v9122_v16  ;;  %v3056_v36 = vcombine.high %v3048_v12, %v3048_v12  ;;  %v3064_v17 = vrot.slane %v3048_v12, %v9122_v16  ;;  %v983_v9 = vpop.permute.xlu0 %982  ;;  %v4854_v13 = vcombine.high %v4852_v18, %v4852_v18 }
 0x288   : > { %v5886_v41 = vcombine.low %v4845_v43, %v4853_v3  ;;  %v4855_v24 = vcombine.high %v4533_v26, %v4533_v26  ;;  %v4862_v6 = vrot.slane %v4533_v26, %v9888_v50  ;;  %6908 = vrot.lane.b32.xlu1 %v10763_v10, %s8406_s12  ;;  %v2039_v20 = vsel %vm1987_vm12, %v1966_v4, %v1455_v2 }
 0x289   : > { %v3057_v27 = vcombine.high %v3055_v11, %v3055_v11  ;;  %6906 = vrot.lane.b32.xlu0 %v10638_v34, %s8406_s12  ;;  %v3071_v53 = vrot.slane %v3055_v11, %v9122_v16  ;;  %v3078_v1 = vrot.slane %v3056_v36, %v9122_v16  ;;  %v4028_v43 = vcombine.low %v3040_v42, %v3064_v17 }
 0x28a   : > { %v10797_v40 = vrot.slane %v4855_v24, %v9888_v50  ;;  %v4870_v39 = vcombine.high %v4862_v6, %v4862_v6  ;;  %v10801_v58 = vpop.permute.xlu1 %1149  ;;  %v5900_v28 = vrot.slane %v5886_v41, %v9888_v50  ;;  %v6792_v34 = vrot.slane %v10732_v37, 1 }
 0x28b   : > { %v1063_v14 = vpop.permute.xlu0 %1062  ;;  %v5902_v30 = vcombine.low %v4852_v18, %v4854_v13  ;;  %v6587_v35 = vor.u32 %v6586_v15, %v6582_v48  ;;  %v6591_v12 = vrot.slane %v6589_v63, 1  ;;  %v10811_v3 = vrot.slane %v3057_v27, %v9122_v16 }
 0x28c   : > { %v5903_v5 = vcombine.low %v4862_v6, %v4870_v39  ;;  %6944 = vrot.lane.b32.xlu1 %v10753_v60, %s8407_s15  ;;  %v5925_v29 = vrot.slane %v10797_v40, %v9888_v50  ;;  %v3086_v26 = vcombine.high %v3064_v17, %v3064_v17  ;;  %v4056_v25 = vrot.slane %v4028_v43, %v9122_v16 }
 0x28d   : > { %6942 = vrot.lane.b32.xlu0 %v10688_v49, %s8407_s15  ;;  %v3087_v2 = vcombine.high %v3071_v53, %v3071_v53  ;;  %v3088_v11 = vcombine.high %v3078_v1, %v3078_v1  ;;  %v2907_v36 = vrot.slane %v2039_v20, %v9122_v16  ;;  %v5901_v13 = vcombine.low %v5893_v54, %v5900_v28 }
 0x28e   : > { %v5917_v18 = vrot.slane %v5903_v5, %v9888_v50  ;;  %v985_v15 = vpop.permute.xlu1 %984  ;;  %v4416_v63 = vpop.f32.mrf.mxu0  ;;  %v4058_v41 = vcombine.low %v10691_v33, %v4056_v25  ;;  %v4065_v49 = vrot.slane %v4057_v45, %v9122_v16  ;;  %v3967_v24 = vrot.slane %v3959_v47, %v9122_v16 }
 0x28f   : > { %v1225_v17 = vpop.permute.xlu0 %1224  ;;  %v5910_v6 = vrot.slane %v5902_v30, %v9888_v50  ;;  %v2914_v42 = vrot.slane %v2907_v36, %v9122_v16  ;;  %v10835_v33 = vsel %vm522_vm0, %v6587_v35, %v6591_v12  ;;  %v10838_v54 = vsel %vm865_vm1, %v6792_v34, %v6793_v56 }
 0x290   : > { %6977 = vrot.lane.b32.xlu1 %v10732_v37, %s8408_s18  ;;  %v8048_v38 = vpop.f32.mrf.mxu0  ;;  %v6451_v62 = vsel %vm5470_vm15, %v5925_v29, 0.0  ;;  %v10842_v23 = vcombine.low %v3078_v1, %v3086_v26  ;;  %v4417_v45 = vadd.f32 %v10570_v22, %v4416_v63  ;;  %v4072_v31 = vrot.slane %v4058_v41, %v9122_v16  ;;  %v11883_v1 = vld [vmem:[#allocation9_spill] sm:$0xff] }
 0x291   : > { %6975 = vrot.lane.b32.xlu0 %v10626_v57, %s8408_s18  ;;  %v5918_v59 = vcombine.low %v5910_v6, %v5917_v18  ;;  %v10848_v47 = vcombine.low %v3088_v11, %v3071_v53  ;;  %v10851_v4 = vcombine.low %v10811_v3, %v3087_v2  ;;  %v3929_v56 = vcombine.low %v2914_v42, %v10412_v46 }
 0x292   : > { %v1065_v27 = vpop.permute.xlu1 %1064  ;;  %v4419_v48 = vpop.f32.mrf.mxu0  ;;  %v6449_v39 = vsel %vm5369_vm14, %v5901_v13, 0.0  ;;  %v1613_v28 = vsel %vm1549_vm5, %v11883_v1, %v983_v9  ;;  %v4534_v43 = vmax.f32 %v4417_v45, 0.0  ;;  %v10859_v30 = vpack.c.bf16 %v6451_v62, %v6451_v62 }
 0x293   : > { %v4420_v20 = vadd.f32 %v10570_v22, %v4419_v48  ;;  %v1305_v34 = vpop.permute.xlu0 %1304  ;;  %v3951_v53 = vrot.slane %v3929_v56, %v9122_v16  ;;  %v1686_v5 = vsel %vm1622_vm7, %v1613_v28, %v1063_v14  ;;  %v4073_v35 = vcombine.low %v4065_v49, %v4072_v31 }
 0x294   : > { %7021 = vrot.lane.b32.xlu1 %v10835_v33, %s8409_s22  ;;  %v8049_v46 = vpop.f32.mrf.mxu0  ;;  %v4084_v12 = vrot.slane %v10842_v23, %v9122_v16  ;;  %v4872_v29 = vcombine.high %v4534_v43, %v4534_v43  ;;  %v4879_v9 = vrot.slane %v4534_v43, %v9888_v50  ;;  %v10870_v25 = vpack.c.bf16 %v5918_v59, %v6449_v39 }
 0x295   : > { %v4535_v26 = vmax.f32 %v4420_v20, 0.0  ;;  %7019 = vrot.lane.b32.xlu0 %v10763_v10, %s8409_s22  ;;  %v4091_v14 = vrot.slane %v10848_v47, %v9122_v16  ;;  %v3960_v18 = vcombine.low %v3951_v53, %v3958_v52  ;;  %v4871_v2 = vcombine.high %v10797_v40, %v10797_v40  ;;  %8079 = vmatmul.mubr.msk.bf16.gmra.mxu1 %vm4247_vm13, %v4073_v35 }
 0x296   : > { %v1152_v11 = vpop.permute.xlu1 %1151  ;;  %v4886_v36 = vrot.slane %v4872_v29, %v9888_v50  ;;  %v4887_v63 = vcombine.high %v4879_v9, %v4879_v9  ;;  %v1759_v13 = vsel %vm1695_vm8, %v1686_v5, %v10801_v58  ;;  %8082 = vmatprep.mubr.msk.bf16.mxu1 %vm8399_vm4, %v11826_v44  ;;  %v1615_v51 = vsel %vm1549_vm5, %v10671_v21, %v985_v15 }
 0x297   : > { %v4889_v41 = vcombine.high %v4535_v26, %v4535_v26  ;;  %v1392_v49 = vpop.permute.xlu0 %1391  ;;  %v1832_v52 = vsel %vm1768_vm9, %v1759_v13, %v1225_v17  ;;  %v4896_v40 = vrot.slane %v4535_v26, %v9888_v50  ;;  %v3974_v6 = vrot.slane %v3960_v18, %v9122_v16 }
 0x298   : > { %6721 = vrot.lane.b32.xlu1 %v10763_v10, %s8404_s30  ;;  %v5926_v42 = vcombine.low %v4871_v2, %v4879_v9  ;;  %v5927_v38 = vcombine.low %v4887_v63, %v4886_v36  ;;  %v4888_v58 = vcombine.high %v4886_v36, %v4886_v36  ;;  %v1905_v21 = vsel %vm1841_vm10, %v1832_v52, %v1305_v34 }
 0x299   : > { %v4903_v62 = vrot.slane %v4889_v41, %v9888_v50  ;;  %7055 = vrot.lane.b32.xlu0 %v10753_v60, %s8410_s9  ;;  %v4904_v45 = vcombine.high %v4896_v40, %v4896_v40  ;;  %v3975_v15 = vcombine.low %v3967_v24, %v3974_v6  ;;  %v6596_v31 = vshll.u32 %v10870_v25, 16 }
 0x29a   : > { %v1227_v17 = vpop.permute.xlu1 %1226  ;;  %v5941_v59 = vrot.slane %v5927_v38, %v9888_v50  ;;  %v1688_v56 = vsel %vm1622_vm7, %v1615_v51, %v1065_v27  ;;  %v5943_v10 = vcombine.low %v4888_v58, %v4896_v40  ;;  %v1978_v48 = vsel %vm1914_vm11, %v1905_v21, %v1392_v49 }
 0x29b   : > { %v1467_v39 = vpop.permute.xlu0 %1466  ;;  %v4424_v1 = vpop.f32.mrf.mxu0  ;;  %v5944_v28 = vcombine.low %v4904_v45, %v4903_v62  ;;  %8071 = vmatmul.mubr.msk.bf16.gmra.mxu0 %vm4247_vm13, %v3975_v15  ;;  %v5934_v24 = vrot.slane %v5926_v42, %v9888_v50  ;;  %v1761_v34 = vsel %vm1695_vm8, %v1688_v56, %v1152_v11  ;;  %v3089_v27 = vcombine.high %v10811_v3, %v10811_v3 }
 0x29c   : > { %v2051_v43 = vsel %vm1987_vm12, %v1978_v48, %v1467_v39  ;;  %v4425_v20 = vadd.f32 %v10570_v22, %v4424_v1  ;;  %6723 = vrot.lane.b32.xlu1 %v10835_v33, %s8404_s30  ;;  %v4905_v35 = vcombine.high %v4903_v62, %v4903_v62  ;;  %v6598_v26 = vrot.slane %v6596_v31, 1 }
 0x29d   : > { %v3096_v53 = vrot.slane %v2051_v43, %v9122_v16  ;;  %7057 = vrot.lane.b32.xlu0 %v10838_v54, %s8410_s9  ;;  %v8052_v5 = vpop.f32.mrf.mxu0  ;;  %v5958_v46 = vrot.slane %v5944_v28, %v9888_v50  ;;  %v5951_v18 = vrot.slane %v5943_v10, %v9888_v50  ;;  %v1834_v2 = vsel %vm1768_vm9, %v1761_v34, %v1227_v17 }
 0x29e   : > { %v4536_v29 = vmax.f32 %v4425_v20, 0.0  ;;  %v1394_v9 = vpop.permute.xlu1 %1393  ;;  %v6601_v63 = vshll.u32 %v10859_v30, 16  ;;  %v5942_v13 = vcombine.low %v5934_v24, %v5941_v59  ;;  %v6594_v51 = vshrl.u32 %v10870_v25, 16 }
 0x29f   : > { %v3103_v11 = vrot.slane %v3096_v53, %v9122_v16  ;;  %v1307_v36 = vpop.permute.xlu0 %1306  ;;  %v4427_v3 = vpop.f32.mrf.mxu0  ;;  %v5959_v52 = vcombine.low %v5951_v18, %v5958_v46  ;;  %v4098_v40 = vrot.slane %v10851_v4, %v9122_v16  ;;  %v5966_v58 = vrot.slane %v4905_v35, %v9888_v50 }
 0x2a0   : > { %v4906_v41 = vcombine.high %v4536_v29, %v4536_v29  ;;  %v1907_v49 = vsel %vm1841_vm10, %v1834_v2, %v1307_v36  ;;  %6835 = vrot.lane.b32.xlu1 %v10838_v54, %s8405_s8  ;;  %v4428_v42 = vadd.f32 %v10570_v22, %v4427_v3  ;;  %v6599_v21 = vor.u32 %v6598_v26, %v6594_v51 }
 0x2a1   : > { %v4077_v6 = vcombine.low %v3089_v27, %v3103_v11  ;;  %6833 = vrot.lane.b32.xlu0 %v10753_v60, %s8405_s8  ;;  %v8053_v38 = vpop.f32.mrf.mxu0  ;;  %v4106_v4 = vcombine.low %v4084_v12, %v4091_v14  ;;  %v1980_v60 = vsel %vm1914_vm11, %v1907_v49, %v1394_v9  ;;  %v6603_v59 = vrot.slane %v6601_v63, 1 }
 0x2a2   : > { %v4920_v62 = vrot.slane %v4906_v41, %v9888_v50  ;;  %v10928_v45 = vpop.permute.xlu1 %988  ;;  %v4537_v17 = vmax.f32 %v4428_v42, 0.0  ;;  %v6452_v56 = vsel %vm5369_vm14, %v5942_v13, 0.0  ;;  %v4913_v10 = vrot.slane %v4536_v29, %v9888_v50 }
 0x2a3   : > { %v4105_v15 = vrot.slane %v4077_v6, %v9122_v16  ;;  %v1469_v31 = vpop.permute.xlu0 %1468  ;;  %v6795_v23 = vrot.slane %v10870_v25, 1  ;;  %v10945_v47 = vpack.c.bf16 %v5959_v52, %v6452_v56  ;;  %v10953_v20 = vsel %vm522_vm0, %v6599_v21, %v6603_v59 }
 0x2a4   : > { %v2053_v48 = vsel %vm1987_vm12, %v1980_v60, %v1469_v31  ;;  %6868 = vrot.lane.b32.xlu1 %v10870_v25, %s8396_s19  ;;  %v4923_v14 = vcombine.high %v4537_v17, %v4537_v17  ;;  %v4922_v1 = vcombine.high %v4920_v62, %v4920_v62  ;;  %v6454_v24 = vsel %vm5470_vm15, %v5966_v58, 0.0 }
 0x2a5   : > { %v4107_v12 = vcombine.low %v4098_v40, %v4105_v15  ;;  %v3104_v39 = vcombine.high %v2053_v48, %v2053_v48  ;;  %6866 = vrot.lane.b32.xlu0 %v10732_v37, %s8396_s19  ;;  %v3111_v28 = vrot.slane %v2053_v48, %v9122_v16  ;;  %v4930_v34 = vrot.slane %v4537_v17, %v9888_v50  ;;  %v11884_v48 = vld [vmem:[#allocation40_spill] sm:$0xff] }
 0x2a6   : > { %v10950_v43 = vpop.permute.xlu1 %1155  ;;  %v4937_v27 = vrot.slane %v4923_v14, %v9888_v50  ;;  %v4921_v46 = vcombine.high %v4913_v10, %v4913_v10  ;;  %v4114_v9 = vrot.slane %v4106_v4, %v9122_v16  ;;  %v6796_v26 = vrot.slane %v10859_v30, 1 }
 0x2a7   : > { %v3118_v53 = vrot.slane %v3104_v39, %v9122_v16  ;;  %v1069_v5 = vpop.permute.xlu0 %1068  ;;  %v4121_v35 = vrot.slane %v4107_v12, %v9122_v16  ;;  %v3119_v29 = vcombine.high %v3111_v28, %v3111_v28  ;;  %v10967_v11 = vpack.c.bf16 %v6454_v24, %v6454_v24 }
 0x2a8   : > { %6912 = vrot.lane.b32.xlu1 %v10953_v20, %s8406_s12  ;;  %v4939_v18 = vcombine.high %v4937_v27, %v4937_v27  ;;  %v6608_v36 = vshll.u32 %v10945_v47, 16  ;;  %v5968_v3 = vcombine.low %v4920_v62, %v4922_v1  ;;  %v3127_v63 = vrot.slane %v3111_v28, %v9122_v16 }
 0x2a9   : > { %v3120_v2 = vcombine.high %v3118_v53, %v3118_v53  ;;  %6910 = vrot.lane.b32.xlu0 %v10835_v33, %s8406_s12  ;;  %v3141_v13 = vrot.slane %v3119_v29, %v9122_v16  ;;  %v4122_v49 = vcombine.low %v4114_v9, %v4121_v35  ;;  %v4938_v51 = vcombine.high %v4930_v34, %v4930_v34 }
 0x2aa   : > { %v10972_v41 = vpop.permute.xlu1 %986  ;;  %v3134_v30 = vrot.slane %v3118_v53, %v9122_v16  ;;  %v10977_v33 = vsel %vm865_vm1, %v6795_v23, %v6796_v26  ;;  %v5967_v6 = vcombine.low %v4913_v10, %v4921_v46  ;;  %v6606_v58 = vshrl.u32 %v10945_v47, 16  ;;  %v8331_v10 = vld [vmem:[%s8481_s10 + $0xcc] sm:$0xff]  }
 0x2ab   : > { %v3148_v52 = vrot.slane %v3120_v2, %v9122_v16  ;;  %v1231_v40 = vpop.permute.xlu0 %1230  ;;  %v4123_v42 = vcombine.low %v3127_v63, %v3141_v13  ;;  %v7890_v38 = vcombine.high %v3127_v63, %v3141_v13  ;;  %8083 = vmatmul.mubr.msk.bf16.gmra.mxu1 %vm4247_vm13, %v4122_v49  ;;  %v5985_v62 = vcombine.low %v4937_v27, %v4939_v18 }
 0x2ac   : > { %6948 = vrot.lane.b32.xlu1 %v10977_v33, %s8407_s15  ;;  %v6610_v15 = vrot.slane %v6608_v36, 1  ;;  %8086 = vmatprep.mubr.msk.bf16.mxu1 %vm8399_vm4, %v11826_v44  ;;  %v5982_v17 = vrot.slane %v5968_v3, %v9888_v50  ;;  %v6613_v56 = vshll.u32 %v10967_v11, 16  ;;  %v1546_v23 = vsel %vm1476_vm6, %v8331_v10, %v11884_v48 }
 0x2ad   : > { %v4125_v21 = vcombine.low %v3134_v30, %v3148_v52  ;;  %v7891_v4 = vcombine.high %v3134_v30, %v3148_v52  ;;  %6946 = vrot.lane.b32.xlu0 %v10838_v54, %s8407_s15  ;;  %v4133_v60 = vrot.slane %v4123_v42, %v9122_v16  ;;  %v4140_v31 = vrot.slane %v7890_v38, %v9122_v16 }
 0x2ae   : > { %v1067_v59 = vpop.permute.xlu1 %1066  ;;  %v5984_v12 = vcombine.low %v4930_v34, %v4938_v51  ;;  %v5975_v1 = vrot.slane %v5967_v6, %v9888_v50  ;;  %v1619_v28 = vsel %vm1549_vm5, %v1546_v23, %v10928_v45  ;;  %v6611_v27 = vor.u32 %v6610_v15, %v6606_v58 }
 0x2af   : > { %v4147_v54 = vrot.slane %v4125_v21, %v9122_v16  ;;  %v4154_v14 = vrot.slane %v7891_v4, %v9122_v16  ;;  %v1311_v39 = vpop.permute.xlu0 %1310  ;;  %v4155_v24 = vcombine.low %v4133_v60, %v4140_v31  ;;  %v5999_v53 = vrot.slane %v5985_v62, %v9888_v50  ;;  %v11885_v60 = vld [vmem:[#allocation37_spill] sm:$0xff] }
 0x2b0   : > { %6981 = vrot.lane.b32.xlu1 %v10945_v47, %s8408_s18  ;;  %v1692_v35 = vsel %vm1622_vm7, %v1619_v28, %v1069_v5  ;;  %v6615_v34 = vrot.slane %v6613_v56, 1  ;;  %v5983_v29 = vcombine.low %v5975_v1, %v5982_v17  ;;  %v5992_v26 = vrot.slane %v5984_v12, %v9888_v50  ;;  %v8332_v17 = vld [vmem:[%s8481_s10 + $0xc8] ss:$0 sps:$4 sm:$0x33]  }
 0x2b1   : > { %6979 = vrot.lane.b32.xlu0 %v10870_v25, %s8408_s18  ;;  %v4156_v46 = vcombine.low %v4147_v54, %v4154_v14  ;;  %v4163_v2 = vrot.slane %v4155_v24, %v9122_v16  ;;  %v1765_v5 = vsel %vm1695_vm8, %v1692_v35, %v10950_v43  ;;  %v6798_v38 = vrot.slane %v10945_v47, 1 }
 0x2b2   : > { %v1154_v9 = vpop.permute.xlu1 %1153  ;;  %v11007_v45 = vsel %vm522_vm0, %v6611_v27, %v6615_v34  ;;  %v6000_v3 = vcombine.low %v5992_v26, %v5999_v53  ;;  %v1838_v63 = vsel %vm1768_vm9, %v1765_v5, %v1231_v40  ;;  %v6455_v30 = vsel %vm5369_vm14, %v5983_v29, 0.0 }
 0x2b3   : > { %v1398_v18 = vpop.permute.xlu0 %1397  ;;  %v4170_v36 = vrot.slane %v4156_v46, %v9122_v16  ;;  %v1911_v49 = vsel %vm1841_vm10, %v1838_v63, %v1311_v39  ;;  %v6799_v58 = vrot.slane %v10967_v11, 1 }
 0x2b4   : > { %7025 = vrot.lane.b32.xlu1 %v11007_v45, %s8409_s22  ;;  %v1984_v52 = vsel %vm1914_vm11, %v1911_v49, %v1398_v18  ;;  %v11031_v62 = vpack.c.bf16 %v6000_v3, %v6455_v30  ;;  %v11886_v3 = vld [vmem:[#allocation39_spill] sm:$0xff] }
 0x2b5   : > { %7023 = vrot.lane.b32.xlu0 %v10953_v20, %s8409_s22  ;;  %v4171_v13 = vcombine.low %v4163_v2, %v4170_v36  ;;  %v11049_v39 = vsel %vm865_vm1, %v6798_v38, %v6799_v58 }
 0x2b6   : > { %v1229_v51 = vpop.permute.xlu1 %1228  ;;  %v4432_v43 = vpop.f32.mrf.mxu0 }
 0x2b7   : > { %8087 = vmatmul.mubr.msk.bf16.gmra.mxu1 %vm4247_vm13, %v4171_v13  ;;  %v1473_v6 = vpop.permute.xlu0 %1472  ;;  %v4433_v42 = vadd.f32 %v10570_v22, %v4432_v43 }
 0x2b8   : > { %v2057_v40 = vsel %vm1987_vm12, %v1984_v52, %v1473_v6  ;;  %6725 = vrot.lane.b32.xlu1 %v10953_v20, %s8404_s30  ;;  %8090 = vmatprep.mubr.msk.bf16.mxu1 %vm8399_vm4, %v11826_v44  ;;  %v8056_v15 = vpop.f32.mrf.mxu0  ;;  %v1544_v20 = vsel %vm1476_vm6, %v8332_v17, %v11885_v60 }
 0x2b9   : > { %v3167_v21 = vcombine.high %v2057_v40, %v2057_v40  ;;  %v3174_v4 = vrot.slane %v2057_v40, %v9122_v16  ;;  %7059 = vrot.lane.b32.xlu0 %v10977_v33, %s8410_s9  ;;  %v4538_v31 = vmax.f32 %v4433_v42, 0.0  ;;  %v1617_v11 = vsel %vm1549_vm5, %v1544_v20, %v10972_v41 }
 0x2ba   : > { %v1396_v56 = vpop.permute.xlu1 %1395  ;;  %v4435_v23 = vpop.f32.mrf.mxu0  ;;  %v1690_v54 = vsel %vm1622_vm7, %v1617_v11, %v1067_v59  ;;  %v6620_v59 = vshll.u32 %v11031_v62, 16 }
 0x2bb   : > { %v3181_v10 = vrot.slane %v3167_v21, %v9122_v16  ;;  %v3182_v48 = vcombine.high %v3174_v4, %v3174_v4  ;;  %v1309_v12 = vpop.permute.xlu0 %1308  ;;  %v11044_v14 = vrot.slane %v4538_v31, %v9888_v50  ;;  %v1763_v27 = vsel %vm1695_vm8, %v1690_v54, %v1154_v9  ;;  %v8333_v9 = vld [vmem:[%s8481_s10 + $0xd4] ss:$0 sps:$4 sm:$0x33]  }
 0x2bc   : > { %6727 = vrot.lane.b32.xlu1 %v11007_v45, %s8404_s30  ;;  %v8057_v24 = vpop.f32.mrf.mxu0  ;;  %v3190_v35 = vrot.slane %v3174_v4, %v9122_v16  ;;  %v1836_v46 = vsel %vm1768_vm9, %v1763_v27, %v1229_v51  ;;  %v1548_v63 = vsel %vm1476_vm6, %v8333_v9, %v11886_v3  ;;  %v6622_v49 = vrot.slane %v6620_v59, 1 }
 0x2bd   : > { %v3183_v1 = vcombine.high %v3181_v10, %v3181_v10  ;;  %v3197_v28 = vrot.slane %v3181_v10, %v9122_v16  ;;  %v3204_v41 = vrot.slane %v3182_v48, %v9122_v16  ;;  %7061 = vrot.lane.b32.xlu0 %v11049_v39, %s8410_s9  ;;  %v6007_v53 = vrot.slane %v11044_v14, %v9888_v50 }
 0x2be   : > { %v991_v34 = vpop.permute.xlu1 %990  ;;  %v1909_v5 = vsel %vm1841_vm10, %v1836_v46, %v1309_v12  ;;  %v4940_v51 = vcombine.high %v4538_v31, %v4538_v31  ;;  %v3212_v30 = vcombine.high %v3190_v35, %v3190_v35  ;;  %v4436_v43 = vadd.f32 %v10570_v22, %v4435_v23 }
 0x2bf   : > { %v11062_v29 = vrot.slane %v3183_v1, %v9122_v16  ;;  %v3213_v26 = vcombine.high %v3197_v28, %v3197_v28  ;;  %v3214_v18 = vcombine.high %v3204_v41, %v3204_v41  ;;  %v1471_v2 = vpop.permute.xlu0 %1470  ;;  %v6457_v36 = vsel %vm5470_vm15, %v6007_v53, 0.0 }
 0x2c0   : > { %6839 = vrot.lane.b32.xlu1 %v11049_v39, %s8405_s8  ;;  %v6502_v13 = vpack.c.bf16 %v6457_v36, %v6457_v36  ;;  %v1621_v40 = vsel %vm1549_vm5, %v1548_v63, %v991_v34  ;;  %v1982_v38 = vsel %vm1914_vm11, %v1909_v5, %v1396_v56  ;;  %v6618_v21 = vshrl.u32 %v11031_v62, 16 }
 0x2c1   : > { %6837 = vrot.lane.b32.xlu0 %v10977_v33, %s8405_s8  ;;  %v4174_v52 = vcombine.low %v3214_v18, %v3197_v28  ;;  %v4175_v42 = vcombine.low %v11062_v29, %v3213_v26  ;;  %v2055_v4 = vsel %vm1987_vm12, %v1982_v38, %v1471_v2  ;;  %v4954_v60 = vrot.slane %v4940_v51, %v9888_v50 }
 0x2c2   : > { %v1158_v6 = vpop.permute.xlu1 %1157  ;;  %v3159_v15 = vrot.slane %v2055_v4, %v9122_v16  ;;  %v6623_v22 = vor.u32 %v6622_v49, %v6618_v21  ;;  %v6625_v17 = vshll.u32 %v6502_v13, 16  ;;  %v4173_v20 = vcombine.low %v3204_v41, %v3212_v30 }
 0x2c3   : > { %v1071_v58 = vpop.permute.xlu0 %1070  ;;  %v4196_v31 = vrot.slane %v4174_v52, %v9122_v16  ;;  %v4539_v56 = vmax.f32 %v4436_v43, 0.0  ;;  %v4203_v10 = vrot.slane %v4175_v42, %v9122_v16  ;;  %v6802_v41 = vrot.slane %v6502_v13, 1  ;;  %v11122_v43 = vld [vmem:[%s11747_s2] ss:$0 sm:$0xff] }
 0x2c4   : > { %v1694_v33 = vsel %vm1622_vm7, %v1621_v40, %v1071_v58  ;;  %6872 = vrot.lane.b32.xlu1 %v11031_v62, %s8396_s19  ;;  %v3166_v48 = vrot.slane %v3159_v15, %v9122_v16  ;;  %v6627_v54 = vrot.slane %v6625_v17, 1  ;;  %v4956_v59 = vcombine.high %v4954_v60, %v4954_v60 }
 0x2c5   : > { %6870 = vrot.lane.b32.xlu0 %v10945_v47, %s8396_s19  ;;  %v1767_v23 = vsel %vm1695_vm8, %v1694_v33, %v1158_v6  ;;  %v4957_v27 = vcombine.high %v4539_v56, %v4539_v56  ;;  %v4964_v53 = vrot.slane %v4539_v56, %v9888_v50  ;;  %v6801_v46 = vrot.slane %v11031_v62, 1 }
 0x2c6   : > { %v1313_v11 = vpop.permute.xlu1 %1312  ;;  %v4172_v28 = vcombine.low %v3166_v48, %v3190_v35  ;;  %v11093_v24 = vsel %vm522_vm0, %v6623_v22, %v6627_v54  ;;  %v4189_v26 = vrot.slane %v4173_v20, %v9122_v16  ;;  %v4205_v36 = vcombine.low %v4196_v31, %v4203_v10 }
 0x2c7   : > { %v1233_v12 = vpop.permute.xlu0 %1232  ;;  %v11109_v63 = vsel %vm865_vm1, %v6801_v46, %v6802_v41  ;;  %v4971_v13 = vrot.slane %v4957_v27, %v9888_v50  ;;  %v6009_v49 = vcombine.low %v4956_v59, %v4964_v53  ;;  %v4972_v52 = vcombine.high %v4964_v53, %v4964_v53 }
 0x2c8   : > { %v1840_v1 = vsel %vm1768_vm9, %v1767_v23, %v1233_v12  ;;  %6916 = vrot.lane.b32.xlu1 %v11093_v24, %s8406_s12  ;;  %v4182_v35 = vrot.slane %v4172_v28, %v9122_v16  ;;  %v4219_v42 = vrot.slane %v4205_v36, %v9122_v16  ;;  %v3215_v58 = vcombine.high %v11062_v29, %v11062_v29 }
 0x2c9   : > { %6914 = vrot.lane.b32.xlu0 %v11007_v45, %s8406_s12  ;;  %v1913_v18 = vsel %vm1841_vm10, %v1840_v1, %v1313_v11  ;;  %v4955_v45 = vcombine.high %v11044_v14, %v11044_v14  ;;  %v6023_v22 = vrot.slane %v6009_v49, %v9888_v50  ;;  %v4973_v56 = vcombine.high %v4971_v13, %v4971_v13 }
 0x2ca   : > { %v1475_v34 = vpop.permute.xlu1 %1474  ;;  %v4204_v9 = vcombine.low %v4182_v35, %v4189_v26  ;;  %vm7181_vm5 = vcmask 261120   ;;  %vm7214_vm6 = vcmask 326656   ;;  %vm7247_vm7 = vcmask 392192  }
 0x2cb   : > { %v1400_v2 = vpop.permute.xlu0 %1399  ;;  %v6008_v38 = vcombine.low %v4955_v45, %v4954_v60  ;;  %v6025_v60 = vcombine.low %v4972_v52, %v4971_v13  ;;  %vm7280_vm8 = vcmask 457728   ;;  %vm7313_vm9 = vcmask 523264  }
 0x2cc   : > { %v1986_v5 = vsel %vm1914_vm11, %v1913_v18, %v1400_v2  ;;  %6952 = vrot.lane.b32.xlu1 %v11109_v63, %s8407_s15  ;;  %vm7389_vm10 = vcmask 588800  }
 0x2cd   : > { %v2059_v3 = vsel %vm1987_vm12, %v1986_v5, %v1475_v34  ;;  %6950 = vrot.lane.b32.xlu0 %v11049_v39, %s8407_s15  ;;  %v4212_v39 = vrot.slane %v4204_v9, %v9122_v16  ;;  %v6016_v10 = vrot.slane %v6008_v38, %v9888_v50  ;;  %v6033_v41 = vrot.slane %v6025_v60, %v9888_v50 }
 0x2ce   : > { %v3222_v51 = vrot.slane %v2059_v3, %v9122_v16  ;;  %v11117_v14 = vpop.permute.xlu1 %6715  ;;  %v4440_v30 = vpop.f32.mrf.mxu0 }
 0x2cf   : > { %v4441_v6 = vadd.f32 %v11122_v43, %v4440_v30  ;;  %v6714_v40 = vpop.permute.xlu0 %6713  ;;  %v4220_v15 = vcombine.low %v4212_v39, %v4219_v42  ;;  %v6024_v1 = vcombine.low %v6016_v10, %v6023_v22 }
 0x2d0   : > { %v3229_v21 = vrot.slane %v3222_v51, %v9122_v16  ;;  %v8060_v4 = vpop.f32.mrf.mxu0 }
 0x2d1   : > { %v11130_v33 = vmax.f32 %v4441_v6, 0.0  ;;  %6983 = vrot.lane.b32.xlu0 %v11031_v62, %s8408_s18  ;;  %8091 = vmatmul.mubr.msk.bf16.gmra.mxu1 %vm4247_vm13, %v4220_v15  ;;  %v6458_v35 = vsel %vm5369_vm14, %v6024_v1, 0.0  ;;  %v7085_v6 = vsel %vm7083_vm3, 0.0|0.0, %v6714_v40 }
 0x2d2   : > { %v4221_v17 = vcombine.low %v3215_v58, %v3229_v21  ;;  %v11135_v20 = vpop.permute.xlu1 %6827  ;;  %v11137_v31 = vpop.f32.mrf.mxu0  ;;  %8094 = vmatprep.mubr.msk.bf16.mxu1 %vm8399_vm4, %v11826_v44  ;;  %vm7116_vm4 = vcmask 130048  }
 0x2d3   : > { %v4981_v29 = vrot.slane %v11130_v33, %v9888_v50  ;;  %v6826_v11 = vpop.permute.xlu0 %6825 }
 0x2d4   : > { %v8061_v48 = vpop.f32.mrf.mxu0  ;;  %v4228_v23 = vrot.slane %v4221_v17, %v9122_v16  ;;  %v7118_v4 = vsel %vm7116_vm4, %v7085_v6, %v6826_v11 }
 0x2d5   : > { %v4989_v12 = vcombine.high %v4981_v29, %v4981_v29  ;;  %v6026_v54 = vcombine.low %v4973_v56, %v4981_v29  ;;  %7027 = vrot.lane.b32.xlu0 %v11093_v24, %s8409_s22 }
 0x2d6   : > { %v6861_v28 = vpop.permute.xlu1 %6860  ;;  %v4235_v34 = vrot.slane %v4228_v23, %v9122_v16  ;;  %v4444_v23 = vadd.f32 %v11122_v43, %v11137_v31 }
 0x2d7   : > { %v6040_v59 = vrot.slane %v6026_v54, %v9888_v50  ;;  %v6048_v27 = vrot.slane %v4989_v12, %v9888_v50  ;;  %v6859_v53 = vpop.permute.xlu0 %6858 }
 0x2d8   : > { %v7150_v22 = vsel %vm1987_vm12, %v7118_v4, %v6859_v53 }
 0x2d9   : > { %v6041_v46 = vcombine.low %v6033_v41, %v6040_v59  ;;  %v6460_v26 = vsel %vm5470_vm15, %v6048_v27, 0.0  ;;  %7063 = vrot.lane.b32.xlu0 %v11109_v63, %s8410_s9  ;;  %8095 = vmatmul.mubr.msk.bf16.gmra.mxu1 %vm4247_vm13, %v4235_v34  ;;  %v4541_v41 = vmax.f32 %v4444_v23, 0.0  ;;  %v4974_v59 = vcombine.high %v11130_v33, %v11130_v33 }
 0x2da   : > { %v6504_v18 = vpack.c.bf16 %v6460_v26, %v6460_v26  ;;  %v6905_v2 = vpop.permute.xlu1 %6904 }
 0x2db   : > { %v11158_v36 = vpack.c.bf16 %v6041_v46, %v6458_v35  ;;  %v6903_v45 = vpop.permute.xlu0 %6902  ;;  %v4998_v34 = vrot.slane %v4541_v41, %v9888_v50  ;;  %v4991_v46 = vcombine.high %v4541_v41, %v4541_v41  ;;  %v4988_v26 = vrot.slane %v4974_v59, %v9888_v50 }
 0x2dc   : > { %v6805_v5 = vrot.slane %v6504_v18, 1  ;;  %v6637_v3 = vshll.u32 %v6504_v18, 16  ;;  %v7183_v17 = vsel %vm7181_vm5, %v7150_v22, %v6903_v45 }
 0x2dd   : > { %6985 = vrot.lane.b32.xlu1 %v11158_v36, %s8408_s18  ;;  %v6804_v16 = vrot.slane %v11158_v36, 1  ;;  %v6632_v9 = vshll.u32 %v11158_v36, 16  ;;  %v6630_v30 = vshrl.u32 %v11158_v36, 16  ;;  %v5005_v45 = vrot.slane %v4991_v46, %v9888_v50 }
 0x2de   : > { %v6941_v13 = vpop.permute.xlu1 %6940  ;;  %v6639_v42 = vrot.slane %v6637_v3, 1 }
 0x2df   : > { %v6939_v49 = vpop.permute.xlu0 %6938  ;;  %v6806_v51 = vsel %vm865_vm1, %v6804_v16, %v6805_v5  ;;  %v6634_v52 = vrot.slane %v6632_v9, 1  ;;  %v4990_v5 = vcombine.high %v4988_v26, %v4988_v26 }
 0x2e0   : > { %7065 = vrot.lane.b32.xlu0 %v6806_v51, %s8410_s9  ;;  %v7216_v60 = vsel %vm7214_vm6, %v7183_v17, %v6939_v49 }
 0x2e1   : > { %v6635_v39 = vor.u32 %v6634_v52, %v6630_v30  ;;  %v6049_v52 = vcombine.low %v4988_v26, %v4990_v5 }
 0x2e2   : > { %v6974_v38 = vpop.permute.xlu1 %6973 }
 0x2e3   : > { %v6972_v58 = vpop.permute.xlu0 %6971  ;;  %v6640_v21 = vsel %vm522_vm0, %v6635_v39, %v6639_v42  ;;  %v6057_v17 = vrot.slane %v6049_v52, %v9888_v50 }
 0x2e4   : > { %7029 = vrot.lane.b32.xlu1 %v6640_v21, %s8409_s22  ;;  %6841 = vrot.lane.b32.xlu0 %v11109_v63, %s8405_s8  ;;  %v7087_v63 = vsel %vm7083_vm3, %v10046_v55, %v11117_v14  ;;  %v7249_v29 = vsel %vm7247_vm7, %v7216_v60, %v6972_v58 }
 0x2e5   : > { %v7120_v56 = vsel %vm7116_vm4, %v7087_v63, %v11135_v20 }
 0x2e6   : > { %v7018_v15 = vpop.permute.xlu1 %7017  ;;  %v7152_v10 = vsel %vm1987_vm12, %v7120_v56, %v6861_v28 }
 0x2e7   : > { %v7016_v40 = vpop.permute.xlu0 %7015  ;;  %v7185_v55 = vsel %vm7181_vm5, %v7152_v10, %v6905_v2  ;;  %v5006_v2 = vcombine.high %v4998_v34, %v4998_v34 }
 0x2e8   : > { %6729 = vrot.lane.b32.xlu1 %v11093_v24, %s8404_s30  ;;  %6874 = vrot.lane.b32.xlu0 %v11158_v36, %s8396_s19  ;;  %v7282_v24 = vsel %vm7280_vm8, %v7249_v29, %v7016_v40  ;;  %v7218_v20 = vsel %vm7214_vm6, %v7185_v55, %v6941_v13 }
 0x2e9   : > { %v7251_v12 = vsel %vm7247_vm7, %v7218_v20, %v6974_v38  ;;  %v6050_v49 = vcombine.low %v4998_v34, %v5006_v2 }
 0x2ea   : > { %v6718_v11 = vpop.permute.xlu1 %6717  ;;  %v7284_v1 = vsel %vm7280_vm8, %v7251_v12, %v7018_v15 }
 0x2eb   : > { %v7052_v48 = vpop.permute.xlu0 %7051 }
 0x2ec   : > { %v7315_v14 = vsel %vm7313_vm9, %v7282_v24, %v7052_v48  ;;  %6731 = vrot.lane.b32.xlu1 %v6640_v21, %s8404_s30  ;;  %6918 = vrot.lane.b32.xlu0 %v6640_v21, %s8406_s12  ;;  %v6064_v21 = vrot.slane %v6050_v49, %v9888_v50  ;;  %v7089_v48 = vsel %vm7083_vm3, %v10355_v61, %v6718_v11 }
 0x2ed   : > { %8108 = vmatprep.mubr.msk.bf16.mxu1 %vm7389_vm10, %v7315_v14 }
 0x2ee   : > { %v6720_v54 = vpop.permute.xlu1 %6719  ;;  %v6065_v10 = vcombine.low %v6057_v17, %v6064_v21 }
 0x2ef   : > { %v7054_v28 = vpop.permute.xlu0 %7053  ;;  %v7091_v61 = vsel %vm7083_vm3, %v10510_v8, %v6720_v54 }
 0x2f0   : > { %v7317_v31 = vsel %vm7313_vm9, %v7284_v1, %v7054_v28  ;;  %6843 = vrot.lane.b32.xlu1 %v6806_v51, %s8405_s8  ;;  %6954 = vrot.lane.b32.xlu0 %v6806_v51, %s8407_s15  ;;  %v5007_v51 = vcombine.high %v5005_v45, %v5005_v45 }
 0x2f1   : > { %8109 = vmatmul.mubr.msk.bf16.vlgmr.msra.gmra.mxu1 %vm7389_vm10, %v7317_v31  ;;  %v6461_v31 = vsel %vm5369_vm14, %v6065_v10, 0.0 }
 0x2f2   : > { %v6832_v27 = vpop.permute.xlu1 %6831  ;;  %v6066_v15 = vcombine.low %v5005_v45, %v5007_v51 }
 0x2f3   : > { %v6830_v53 = vpop.permute.xlu0 %6829 }
 0x2f4   : > { %v6074_v24 = vrot.slane %v6066_v15, %v9888_v50  ;;  %v7122_v14 = vsel %vm7116_vm4, %v7089_v48, %v6830_v53  ;;  %v7124_v53 = vsel %vm7116_vm4, %v7091_v61, %v6832_v27 }
 0x2f6   : > { %v6865_v35 = vpop.permute.xlu1 %6864 }
 0x2f7   : > { %v6863_v18 = vpop.permute.xlu0 %6862 }
 0x2f8   : > { %v7154_v12 = vsel %vm1987_vm12, %v7122_v14, %v6863_v18  ;;  %v7156_v18 = vsel %vm1987_vm12, %v7124_v53, %v6865_v35 }
 0x2fa   : > { %v6909_v16 = vpop.permute.xlu1 %6908  ;;  %v4448_v9 = vpop.f32.mrf.mxu0 }
 0x2fb   : > { %v4449_v3 = vadd.f32 %v11122_v43, %v4448_v9  ;;  %v6907_v13 = vpop.permute.xlu0 %6906  ;;  %v7189_v5 = vsel %vm7181_vm5, %v7156_v18, %v6909_v16 }
 0x2fc   : > { %v8064_v33 = vpop.f32.mrf.mxu0  ;;  %v7187_v59 = vsel %vm7181_vm5, %v7154_v12, %v6907_v13 }
 0x2fd   : > { %v4542_v30 = vmax.f32 %v4449_v3, 0.0 }
 0x2fe   : > { %v6945_v6 = vpop.permute.xlu1 %6944  ;;  %v11209_v39 = vpop.f32.mrf.mxu0 }
 0x2ff   : > { %v5008_v42 = vcombine.high %v4542_v30, %v4542_v30  ;;  %v5015_v38 = vrot.slane %v4542_v30, %v9888_v50  ;;  %v6943_v58 = vpop.permute.xlu0 %6942  ;;  %v7222_v9 = vsel %vm7214_vm6, %v7189_v5, %v6945_v6 }
 0x300   : > { %v8065_v4 = vpop.f32.mrf.mxu0  ;;  %v7220_v34 = vsel %vm7214_vm6, %v7187_v59, %v6943_v58 }
 0x301   : > { %v11214_v22 = vrot.slane %v5008_v42, %v9888_v50  ;;  %v5023_v40 = vcombine.high %v5015_v38, %v5015_v38 }
 0x302   : > { %v6978_v63 = vpop.permute.xlu1 %6977 }
 0x303   : > { %v6067_v60 = vcombine.low %v5015_v38, %v5023_v40  ;;  %v6089_v56 = vrot.slane %v11214_v22, %v9888_v50  ;;  %v6976_v29 = vpop.permute.xlu0 %6975  ;;  %v7255_v13 = vsel %vm7247_vm7, %v7222_v9, %v6978_v63 }
 0x304   : > { %v7253_v46 = vsel %vm7247_vm7, %v7220_v34, %v6976_v29  ;;  %v4452_v29 = vadd.f32 %v11122_v43, %v11209_v39 }
 0x305   : > { %v6081_v23 = vrot.slane %v6067_v60, %v9888_v50  ;;  %v6463_v55 = vsel %vm5470_vm15, %v6089_v56, 0.0 }
 0x306   : > { %v7022_v20 = vpop.permute.xlu1 %7021  ;;  %v6506_v28 = vpack.c.bf16 %v6463_v55, %v6463_v55  ;;  %v4543_v55 = vmax.f32 %v4452_v29, 0.0 }
 0x307   : > { %v6082_v1 = vcombine.low %v6074_v24, %v6081_v23  ;;  %v7020_v41 = vpop.permute.xlu0 %7019  ;;  %v7288_v33 = vsel %vm7280_vm8, %v7255_v13, %v7022_v20 }
 0x308   : > { %v7286_v2 = vsel %vm7280_vm8, %v7253_v46, %v7020_v41  ;;  %v6649_v54 = vshll.u32 %v6506_v28, 16  ;;  %v6808_v21 = vrot.slane %v6506_v28, 1  ;;  %v5025_v61 = vcombine.high %v4543_v55, %v4543_v55 }
 0x309   : > { %v11232_v11 = vpack.c.bf16 %v6082_v1, %v6461_v31  ;;  %v5032_v34 = vrot.slane %v4543_v55, %v9888_v50 }
 0x30a   : > { %v6722_v26 = vpop.permute.xlu1 %6721  ;;  %v6651_v52 = vrot.slane %v6649_v54, 1 }
 0x30b   : > { %v7056_v45 = vpop.permute.xlu0 %7055  ;;  %6876 = vrot.lane.b32.xlu1 %v11232_v11, %s8396_s19  ;;  %6987 = vrot.lane.b32.xlu0 %v11232_v11, %s8408_s18  ;;  %v6644_v8 = vshll.u32 %v11232_v11, 16  ;;  %v6642_v35 = vshrl.u32 %v11232_v11, 16  ;;  %v6807_v6 = vrot.slane %v11232_v11, 1  ;;  %v7093_v48 = vsel %vm7083_vm3, %v10626_v57, %v6722_v26 }
 0x30c   : > { %v7319_v27 = vsel %vm7313_vm9, %v7286_v2, %v7056_v45  ;;  %v5040_v13 = vcombine.high %v5032_v34, %v5032_v34 }
 0x30d   : > { %8112 = vmatprep.mubr.msk.bf16.mxu1 %vm7389_vm10, %v7319_v27  ;;  %v6646_v3 = vrot.slane %v6644_v8, 1  ;;  %v11262_v4 = vsel %vm865_vm1, %v6807_v6, %v6808_v21  ;;  %v5024_v21 = vcombine.high %v11214_v22, %v11214_v22 }
 0x30e   : > { %v6724_v49 = vpop.permute.xlu1 %6723 }
 0x30f   : > { %v7058_v51 = vpop.permute.xlu0 %7057  ;;  %v6647_v30 = vor.u32 %v6646_v3, %v6642_v35  ;;  %v7095_v1 = vsel %vm7083_vm3, %v10732_v37, %v6724_v49  ;;  %v5039_v3 = vrot.slane %v5025_v61, %v9888_v50 }
 0x310   : > { %v7321_v42 = vsel %vm7313_vm9, %v7288_v33, %v7058_v51 }
 0x311   : > { %8113 = vmatmul.mubr.msk.bf16.gmra.mxu1 %vm7389_vm10, %v7321_v42  ;;  %v11254_v16 = vsel %vm522_vm0, %v6647_v30, %v6651_v52  ;;  %v6091_v29 = vcombine.low %v5040_v13, %v5039_v3 }
 0x312   : > { %v6836_v38 = vpop.permute.xlu1 %6835  ;;  %6920 = vrot.lane.b32.xlu1 %v11254_v16, %s8406_s12  ;;  %7031 = vrot.lane.b32.xlu0 %v11254_v16, %s8409_s22 }
 0x313   : > { %v6834_v58 = vpop.permute.xlu0 %6833  ;;  %v7128_v39 = vsel %vm7116_vm4, %v7095_v1, %v6836_v38 }
 0x314   : > { %v7126_v23 = vsel %vm7116_vm4, %v7093_v48, %v6834_v58 }
 0x316   : > { %v6869_v15 = vpop.permute.xlu1 %6868  ;;  %6956 = vrot.lane.b32.xlu1 %v11262_v4, %s8407_s15  ;;  %7067 = vrot.lane.b32.xlu0 %v11262_v4, %s8410_s9 }
 0x317   : > { %v6867_v40 = vpop.permute.xlu0 %6866  ;;  %v7160_v53 = vsel %vm1987_vm12, %v7128_v39, %v6869_v15  ;;  %v6105_v39 = vrot.slane %v6091_v29, %v9888_v50 }
 0x318   : > { %v7158_v14 = vsel %vm1987_vm12, %v7126_v23, %v6867_v40  ;;  %v6090_v23 = vcombine.low %v5024_v21, %v5032_v34 }
 0x31a   : > { %v6913_v17 = vpop.permute.xlu1 %6912  ;;  %v6098_v34 = vrot.slane %v6090_v23, %v9888_v50 }
 0x31b   : > { %v6911_v63 = vpop.permute.xlu0 %6910  ;;  %v7193_v37 = vsel %vm7181_vm5, %v7160_v53, %v6913_v17 }
 0x31c   : > { %v7191_v12 = vsel %vm7181_vm5, %v7158_v14, %v6911_v63 }
 0x31e   : > { %v6949_v60 = vpop.permute.xlu1 %6948 }
 0x31f   : > { %v6947_v56 = vpop.permute.xlu0 %6946  ;;  %v7226_v8 = vsel %vm7214_vm6, %v7193_v37, %v6949_v60 }
 0x320   : > { %v7224_v28 = vsel %vm7214_vm6, %v7191_v12, %v6947_v56 }
 0x322   : > { %v6982_v24 = vpop.permute.xlu1 %6981 }
 0x323   : > { %v6980_v10 = vpop.permute.xlu0 %6979  ;;  %v7259_v5 = vsel %vm7247_vm7, %v7226_v8, %v6982_v24 }
 0x324   : > { %v7257_v31 = vsel %vm7247_vm7, %v7224_v28, %v6980_v10 }
 0x326   : > { %v7026_v59 = vpop.permute.xlu1 %7025 }
 0x327   : > { %v7024_v20 = vpop.permute.xlu0 %7023  ;;  %v7292_v49 = vsel %vm7280_vm8, %v7259_v5, %v7026_v59 }
 0x328   : > { %v4472_v41 = vpop.f32.mrf.mxu1  ;;  %v7290_v46 = vsel %vm7280_vm8, %v7257_v31, %v7024_v20  ;;  %v5041_v20 = vcombine.high %v5039_v3, %v5039_v3 }
 0x329   : > { %v4473_v57 = vadd.f32 %v11122_v43, %v4472_v41 }
 0x32a   : > { %v8076_v26 = vpop.f32.mrf.mxu1  ;;  %v6726_v42 = vpop.permute.xlu1 %6725 }
 0x32b   : > { %v7060_v18 = vpop.permute.xlu0 %7059  ;;  %v4548_v2 = vmax.f32 %v4473_v57, 0.0 }
 0x32c   : > { %v7323_v45 = vsel %vm7313_vm9, %v7290_v46, %v7060_v18  ;;  %v4475_v54 = vpop.f32.mrf.mxu1  ;;  %v6106_v18 = vcombine.low %v6098_v34, %v6105_v39 }
 0x32d   : > { %8116 = vmatprep.mubr.msk.bf16.mxu1 %vm7389_vm10, %v7323_v45  ;;  %v5110_v27 = vcombine.high %v4548_v2, %v4548_v2  ;;  %v11290_v9 = vrot.slane %v4548_v2, %v9888_v50  ;;  %v4476_v35 = vadd.f32 %v11122_v43, %v4475_v54 }
 0x32e   : > { %v8077_v33 = vpop.f32.mrf.mxu1  ;;  %v6728_v14 = vpop.permute.xlu1 %6727 }
 0x32f   : > { %v7062_v51 = vpop.permute.xlu0 %7061  ;;  %v5124_v30 = vrot.slane %v5110_v27, %v9888_v50  ;;  %v5125_v52 = vcombine.high %v11290_v9, %v11290_v9  ;;  %v11298_v6 = vmax.f32 %v4476_v35, 0.0  ;;  %v6464_v35 = vsel %vm5369_vm14, %v6106_v18, 0.0 }
 0x330   : > { %v7325_v38 = vsel %vm7313_vm9, %v7292_v49, %v7062_v51 }
 0x331   : > { %8117 = vmatmul.mubr.msk.bf16.gmra.mxu1 %vm7389_vm10, %v7325_v38  ;;  %v6189_v15 = vcombine.low %v5125_v52, %v5124_v30  ;;  %v5126_v40 = vcombine.high %v5124_v30, %v5124_v30  ;;  %v11306_v17 = vrot.slane %v11298_v6, %v9888_v50 }
 0x332   : > { %v4456_v58 = vpop.f32.mrf.mxu0  ;;  %v6840_v37 = vpop.permute.xlu1 %6839 }
 0x333   : > { %v4457_v63 = vadd.f32 %v11122_v43, %v4456_v58  ;;  %v6838_v56 = vpop.permute.xlu0 %6837  ;;  %v6190_v10 = vcombine.low %v5126_v40, %v11306_v17  ;;  %v6197_v55 = vrot.slane %v6189_v15, %v9888_v50  ;;  %v7097_v58 = vsel %vm7083_vm3, %v10870_v25, %v6726_v42 }
 0x334   : > { %v8068_v60 = vpop.f32.mrf.mxu0 }
 0x335   : > { %v4544_v24 = vmax.f32 %v4457_v63, 0.0  ;;  %v6204_v22 = vrot.slane %v6190_v10, %v9888_v50  ;;  %v7130_v63 = vsel %vm7116_vm4, %v7097_v58, %v6838_v56 }
 0x336   : > { %v4459_v48 = vpop.f32.mrf.mxu0  ;;  %v6873_v49 = vpop.permute.xlu1 %6872 }
 0x337   : > { %v5042_v12 = vcombine.high %v4544_v24, %v4544_v24  ;;  %v5049_v1 = vrot.slane %v4544_v24, %v9888_v50  ;;  %v6871_v41 = vpop.permute.xlu0 %6870  ;;  %v11314_v31 = vcombine.low %v6197_v55, %v6204_v22  ;;  %v4460_v56 = vadd.f32 %v11122_v43, %v4459_v48 }
 0x338   : > { %v8069_v28 = vpop.f32.mrf.mxu0  ;;  %v7162_v60 = vsel %vm1987_vm12, %v7130_v63, %v6871_v41 }
 0x339   : > { %v5056_v59 = vrot.slane %v5042_v12, %v9888_v50  ;;  %v5057_v57 = vcombine.high %v5049_v1, %v5049_v1  ;;  %v6107_v61 = vcombine.low %v5041_v20, %v5049_v1  ;;  %v4545_v41 = vmax.f32 %v4460_v56, 0.0 }
 0x33a   : > { %v6917_v23 = vpop.permute.xlu1 %6916 }
 0x33b   : > { %v5058_v53 = vcombine.high %v5056_v59, %v5056_v59  ;;  %v6108_v46 = vcombine.low %v5057_v57, %v5056_v59  ;;  %v6915_v26 = vpop.permute.xlu0 %6914  ;;  %v6115_v2 = vrot.slane %v6107_v61, %v9888_v50  ;;  %v5059_v59 = vcombine.high %v4545_v41, %v4545_v41 }
 0x33c   : > { %v7195_v55 = vsel %vm7181_vm5, %v7162_v60, %v6915_v26 }
 0x33d   : > { %v6122_v45 = vrot.slane %v6108_v46, %v9888_v50  ;;  %v6130_v8 = vrot.slane %v5058_v53, %v9888_v50 }
 0x33e   : > { %v6953_v28 = vpop.permute.xlu1 %6952 }
 0x33f   : > { %v6123_v54 = vcombine.low %v6115_v2, %v6122_v45  ;;  %v6951_v5 = vpop.permute.xlu0 %6950  ;;  %v6466_v27 = vsel %vm5470_vm15, %v6130_v8, 0.0  ;;  %v5066_v2 = vrot.slane %v4545_v41, %v9888_v50 }
 0x340   : > { %v6508_v3 = vpack.c.bf16 %v6466_v27, %v6466_v27  ;;  %v7228_v22 = vsel %vm7214_vm6, %v7195_v55, %v6951_v5 }
 0x341   : > { %v11325_v13 = vpack.c.bf16 %v6123_v54, %v6464_v35  ;;  %v5074_v27 = vcombine.high %v5066_v2, %v5066_v2 }
 0x342   : > { %v6811_v33 = vrot.slane %v6508_v3, 1  ;;  %v6661_v38 = vshll.u32 %v6508_v3, 16 }
 0x343   : > { %6989 = vrot.lane.b32.xlu1 %v11325_v13, %s8408_s18  ;;  %v6810_v51 = vrot.slane %v11325_v13, 1  ;;  %v6984_v30 = vpop.permute.xlu0 %6983  ;;  %v6656_v52 = vshll.u32 %v11325_v13, 16  ;;  %v6654_v15 = vshrl.u32 %v11325_v13, 16 }
 0x344   : > { %v6663_v10 = vrot.slane %v6661_v38, 1  ;;  %v7261_v42 = vsel %vm7247_vm7, %v7228_v22, %v6984_v30  ;;  %v6131_v30 = vcombine.low %v5066_v2, %v5074_v27 }
 0x345   : > { %v6812_v21 = vsel %vm865_vm1, %v6810_v51, %v6811_v33  ;;  %v6658_v40 = vrot.slane %v6656_v52, 1 }
 0x346   : > { %7069 = vrot.lane.b32.xlu0 %v6812_v21, %s8410_s9 }
 0x347   : > { %v6659_v29 = vor.u32 %v6658_v40, %v6654_v15  ;;  %v7028_v24 = vpop.permute.xlu0 %7027 }
 0x348   : > { %v7294_v20 = vsel %vm7280_vm8, %v7261_v42, %v7028_v24 }
 0x349   : > { %v6664_v25 = vsel %vm522_vm0, %v6659_v29, %v6663_v10  ;;  %v6139_v29 = vrot.slane %v6131_v30, %v9888_v50 }
 0x34a   : > { %7033 = vrot.lane.b32.xlu1 %v6664_v25, %s8409_s22  ;;  %6845 = vrot.lane.b32.xlu0 %v11262_v4, %s8405_s8  ;;  %v7099_v4 = vsel %vm7083_vm3, %v10945_v47, %v6728_v14  ;;  %v5073_v14 = vrot.slane %v5059_v59, %v9888_v50 }
 0x34b   : > { %v7064_v12 = vpop.permute.xlu0 %7063  ;;  %v7132_v48 = vsel %vm7116_vm4, %v7099_v4, %v6840_v37 }
 0x34c   : > { %v7327_v1 = vsel %vm7313_vm9, %v7294_v20, %v7064_v12  ;;  %v7164_v57 = vsel %vm1987_vm12, %v7132_v48, %v6873_v49  ;;  %v5075_v8 = vcombine.high %v5073_v14, %v5073_v14 }
 0x34d   : > { %8120 = vmatprep.mubr.msk.bf16.mxu1 %vm7389_vm10, %v7327_v1  ;;  %v7197_v61 = vsel %vm7181_vm5, %v7164_v57, %v6917_v23  ;;  %v5142_v57 = vcombine.high %v11306_v17, %v11306_v17  ;;  %v5127_v17 = vcombine.high %v11298_v6, %v11298_v6 }
 0x34e   : > { %6733 = vrot.lane.b32.xlu1 %v11254_v16, %s8404_s30  ;;  %6878 = vrot.lane.b32.xlu0 %v11325_v13, %s8396_s19  ;;  %v7230_v16 = vsel %vm7214_vm6, %v7197_v61, %v6953_v28  ;;  %v6132_v49 = vcombine.low %v5073_v14, %v5075_v8 }
 0x34f   : > { %v6986_v39 = vpop.permute.xlu1 %6985 }
 0x350   : > { %v7263_v34 = vsel %vm7247_vm7, %v7230_v16, %v6986_v39  ;;  %v6146_v15 = vrot.slane %v6132_v49, %v9888_v50 }
 0x352   : > { %6735 = vrot.lane.b32.xlu1 %v6664_v25, %s8404_s30  ;;  %6922 = vrot.lane.b32.xlu0 %v6664_v25, %s8406_s12  ;;  %v7066_v46 = vpop.permute.xlu0 %7065  ;;  %v6147_v22 = vcombine.low %v6139_v29, %v6146_v15 }
 0x354   : > { %v6467_v16 = vsel %vm5369_vm14, %v6147_v22, 0.0 }
 0x355   : > { %v4480_v53 = vpop.f32.mrf.mxu1 }
 0x356   : > { %6847 = vrot.lane.b32.xlu1 %v6812_v21, %s8405_s8  ;;  %6958 = vrot.lane.b32.xlu0 %v6812_v21, %s8407_s15  ;;  %v7030_v47 = vpop.permute.xlu1 %7029  ;;  %v4481_v42 = vadd.f32 %v11122_v43, %v4480_v53  ;;  %v11382_v4 = vpop.permute.xlu0 %6841 }
 0x357   : > { %v7296_v26 = vsel %vm7280_vm8, %v7263_v34, %v7030_v47  ;;  %v8080_v18 = vpop.f32.mrf.mxu1 }
 0x358   : > { %v7329_v37 = vsel %vm7313_vm9, %v7296_v26, %v7066_v46  ;;  %v4550_v34 = vmax.f32 %v4481_v42, 0.0 }
 0x359   : > { %8121 = vmatmul.mubr.msk.bf16.gmra.mxu1 %vm7389_vm10, %v7329_v37  ;;  %v4483_v45 = vpop.f32.mrf.mxu1 }
 0x35a   : > { %v4484_v41 = vadd.f32 %v11122_v43, %v4483_v45  ;;  %v6212_v45 = vrot.slane %v5142_v57, %v9888_v50  ;;  %v5144_v8 = vcombine.high %v4550_v34, %v4550_v34 }
 0x35b   : > { %v4464_v54 = vpop.f32.mrf.mxu0  ;;  %v8081_v5 = vpop.f32.mrf.mxu1 }
 0x35c   : > { %v4465_v35 = vadd.f32 %v11122_v43, %v4464_v54  ;;  %v11393_v26 = vmax.f32 %v4484_v41, 0.0  ;;  %v11405_v5 = vpop.permute.xlu0 %6874 }
 0x35d   : > { %v8072_v3 = vpop.f32.mrf.mxu0 }
 0x35e   : > { %v4546_v33 = vmax.f32 %v4465_v35, 0.0  ;;  %v5151_v3 = vrot.slane %v4550_v34, %v9888_v50  ;;  %v5168_v6 = vrot.slane %v11393_v26, %v9888_v50 }
 0x35f   : > { %v4467_v51 = vpop.f32.mrf.mxu0 }
 0x360   : > { %v5076_v52 = vcombine.high %v4546_v33, %v4546_v33  ;;  %v5083_v38 = vrot.slane %v4546_v33, %v9888_v50  ;;  %v4468_v58 = vadd.f32 %v11122_v43, %v4467_v51  ;;  %v5176_v29 = vcombine.high %v5168_v6, %v5168_v6 }
 0x361   : > { %v8073_v21 = vpop.f32.mrf.mxu0 }
 0x362   : > { %v5090_v40 = vrot.slane %v5076_v52, %v9888_v50  ;;  %v5091_v63 = vcombine.high %v5083_v38, %v5083_v38  ;;  %v4547_v60 = vmax.f32 %v4468_v58, 0.0  ;;  %v5141_v52 = vrot.slane %v5127_v17, %v9888_v50 }
 0x363   : > { %v5158_v21 = vrot.slane %v5144_v8, %v9888_v50  ;;  %v6231_v41 = vcombine.low %v5168_v6, %v5176_v29 }
 0x364   : > { %v5092_v10 = vcombine.high %v5090_v40, %v5090_v40  ;;  %v6148_v24 = vcombine.low %v5083_v38, %v5091_v63  ;;  %v5093_v23 = vcombine.high %v4547_v60, %v4547_v60  ;;  %v5100_v55 = vrot.slane %v4547_v60, %v9888_v50 }
 0x365   : > { %v6472_v38 = vsel %vm5470_vm15, %v6212_v45, 0.0  ;;  %v5159_v60 = vcombine.high %v5151_v3, %v5151_v3  ;;  %v6245_v8 = vrot.slane %v6231_v41, %v9888_v50 }
 0x366   : > { %v6149_v25 = vcombine.low %v5090_v40, %v5092_v10  ;;  %v5107_v56 = vrot.slane %v5093_v23, %v9888_v50  ;;  %v5108_v20 = vcombine.high %v5100_v55, %v5100_v55  ;;  %v6171_v12 = vrot.slane %v5100_v55, %v9888_v50  ;;  %v6730_v10 = vpop.permute.xlu1 %6729 }
 0x367   : > { %v6156_v1 = vrot.slane %v6148_v24, %v9888_v50  ;;  %v6919_v24 = vpop.permute.xlu0 %6918 }
 0x368   : > { %v6163_v28 = vrot.slane %v6149_v25, %v9888_v50  ;;  %v5109_v48 = vcombine.high %v5107_v56, %v5107_v56  ;;  %v6172_v39 = vcombine.low %v5108_v20, %v5107_v56  ;;  %v6469_v59 = vsel %vm5470_vm15, %v6171_v12, 0.0 }
 0x369   : > { %v6510_v47 = vpack.c.bf16 %v6469_v59, %v6469_v59  ;;  %v5143_v25 = vcombine.high %v5141_v52, %v5141_v52  ;;  %v5160_v20 = vcombine.high %v5158_v21, %v5158_v21 }
 0x36a   : > { %v6164_v61 = vcombine.low %v6156_v1, %v6163_v28  ;;  %v6173_v53 = vcombine.low %v5109_v48, %v11290_v9  ;;  %v6180_v18 = vrot.slane %v6172_v39, %v9888_v50  ;;  %v6214_v28 = vcombine.low %v5151_v3, %v5159_v60 }
 0x36b   : > { %v4488_v14 = vpop.f32.mrf.mxu1  ;;  %v6673_v35 = vshll.u32 %v6510_v47, 16  ;;  %v6814_v1 = vrot.slane %v6510_v47, 1  ;;  %v7101_v48 = vsel %vm7083_vm3, %v11031_v62, %v6730_v10  ;;  %v6213_v34 = vcombine.low %v5141_v52, %v5143_v25  ;;  %v6955_v62 = vpop.permute.xlu0 %6954 }
 0x36c   : > { %v11391_v46 = vpack.c.bf16 %v6164_v61, %v6467_v16  ;;  %v6187_v37 = vrot.slane %v6173_v53, %v9888_v50  ;;  %v4489_v15 = vadd.f32 %v11122_v43, %v4488_v14  ;;  %v6228_v45 = vrot.slane %v6214_v28, %v9888_v50 }
 0x36d   : > { %v8084_v2 = vpop.f32.mrf.mxu1  ;;  %v6675_v63 = vrot.slane %v6673_v35, 1 }
 0x36e   : > { %6880 = vrot.lane.b32.xlu1 %v11391_v46, %s8396_s19  ;;  %6991 = vrot.lane.b32.xlu0 %v11391_v46, %s8408_s18  ;;  %v6668_v9 = vshll.u32 %v11391_v46, 16  ;;  %v6188_v54 = vcombine.low %v6180_v18, %v6187_v37  ;;  %v6666_v51 = vshrl.u32 %v11391_v46, 16  ;;  %v6813_v22 = vrot.slane %v11391_v46, 1 }
 0x36f   : > { %v4491_v27 = vpop.f32.mrf.mxu1  ;;  %v4552_v12 = vmax.f32 %v4489_v15, 0.0  ;;  %v6230_v18 = vcombine.low %v5158_v21, %v5160_v20  ;;  %v7134_v37 = vsel %vm7116_vm4, %v7101_v48, %v11382_v4 }
 0x370   : > { %v6670_v49 = vrot.slane %v6668_v9, 1  ;;  %v6470_v33 = vsel %vm5369_vm14, %v6188_v54, 0.0  ;;  %v4492_v23 = vadd.f32 %v11122_v43, %v4491_v27  ;;  %v6815_v57 = vsel %vm865_vm1, %v6813_v22, %v6814_v1 }
 0x371   : > { %v8085_v30 = vpop.f32.mrf.mxu1  ;;  %v11417_v58 = vpack.c.bf16 %v11314_v31, %v6470_v33  ;;  %v6512_v31 = vpack.c.bf16 %v6472_v38, %v6472_v38  ;;  %v5178_v2 = vcombine.high %v4552_v12, %v4552_v12  ;;  %v5161_v9 = vcombine.high %v11393_v26, %v11393_v26 }
 0x372   : > { %v6671_v40 = vor.u32 %v6670_v49, %v6666_v51  ;;  %v4553_v59 = vmax.f32 %v4492_v23, 0.0  ;;  %v5185_v54 = vrot.slane %v4552_v12, %v9888_v50  ;;  %v6221_v49 = vrot.slane %v6213_v34, %v9888_v50 }
 0x373   : > { %v6680_v56 = vshll.u32 %v11417_v58, 16  ;;  %v6816_v61 = vrot.slane %v11417_v58, 1  ;;  %v6817_v53 = vrot.slane %v6512_v31, 1  ;;  %v6685_v47 = vshll.u32 %v6512_v31, 16 }
 0x374   : > { %v11423_v55 = vsel %vm522_vm0, %v6671_v40, %v6675_v63  ;;  %v6678_v17 = vshrl.u32 %v11417_v58, 16  ;;  %v5195_v35 = vcombine.high %v4553_v59, %v4553_v59  ;;  %v5202_v3 = vrot.slane %v4553_v59, %v9888_v50 }
 0x375   : > { %6924 = vrot.lane.b32.xlu1 %v11423_v55, %s8406_s12  ;;  %7035 = vrot.lane.b32.xlu0 %v11423_v55, %s8409_s22  ;;  %v6682_v16 = vrot.slane %v6680_v56, 1  ;;  %v6818_v6 = vsel %vm865_vm1, %v6816_v61, %v6817_v53  ;;  %v6238_v26 = vrot.slane %v6230_v18, %v9888_v50  ;;  %v5192_v33 = vrot.slane %v5178_v2, %v9888_v50 }
 0x376   : > { %v6687_v51 = vrot.slane %v6685_v47, 1  ;;  %v6229_v52 = vcombine.low %v6221_v49, %v6228_v45  ;;  %v5175_v38 = vrot.slane %v5161_v9, %v9888_v50  ;;  %v7166_v21 = vsel %vm1987_vm12, %v7134_v37, %v11405_v5 }
 0x377   : > { %v4496_v42 = vpop.f32.mrf.mxu1  ;;  %v6683_v4 = vor.u32 %v6682_v16, %v6678_v17  ;;  %v5193_v15 = vcombine.high %v5185_v54, %v5185_v54  ;;  %v6246_v40 = vcombine.low %v6238_v26, %v6245_v8  ;;  %v5209_v63 = vrot.slane %v5195_v35, %v9888_v50 }
 0x378   : > { %v5210_v60 = vcombine.high %v5202_v3, %v5202_v3  ;;  %v7199_v10 = vsel %vm7181_vm5, %v7166_v21, %v6919_v24  ;;  %v5194_v23 = vcombine.high %v5192_v33, %v5192_v33  ;;  %v6473_v25 = vsel %vm5369_vm14, %v6229_v52, 0.0 }
 0x379   : > { %v8088_v39 = vpop.f32.mrf.mxu1  ;;  %6960 = vrot.lane.b32.xlu1 %v6815_v57, %s8407_s15  ;;  %7071 = vrot.lane.b32.xlu0 %v6815_v57, %s8410_s9  ;;  %v6688_v29 = vsel %vm522_vm0, %v6683_v4, %v6687_v51  ;;  %v6253_v5 = vrot.slane %v5175_v38, %v9888_v50  ;;  %v5177_v31 = vcombine.high %v5175_v38, %v5175_v38 }
 0x37a   : > { %v6255_v56 = vcombine.low %v5193_v15, %v5192_v33  ;;  %v11464_v20 = vpack.c.bf16 %v6246_v40, %v6473_v25  ;;  %v7232_v12 = vsel %vm7214_vm6, %v7199_v10, %v6955_v62  ;;  %v6272_v1 = vcombine.low %v5210_v60, %v5209_v63 }
 0x37b   : > { %v4499_v14 = vpop.f32.mrf.mxu1  ;;  %v6254_v28 = vcombine.low %v5177_v31, %v5185_v54  ;;  %v4497_v41 = vadd.f32 %v11122_v43, %v4496_v42  ;;  %v6271_v24 = vcombine.low %v5194_v23, %v5202_v3  ;;  %v6475_v61 = vsel %vm5470_vm15, %v6253_v5, 0.0 }
 0x37c   : > { %v4500_v39 = vadd.f32 %v11122_v43, %v4499_v14  ;;  %v6269_v16 = vrot.slane %v6255_v56, %v9888_v50  ;;  %v6286_v34 = vrot.slane %v6272_v1, %v9888_v50  ;;  %v5211_v47 = vcombine.high %v5209_v63, %v5209_v63 }
 0x37d   : > { %v8089_v27 = vpop.f32.mrf.mxu1  ;;  %6993 = vrot.lane.b32.xlu1 %v11417_v58, %s8408_s18  ;;  %7073 = vrot.lane.b32.xlu0 %v6818_v6, %s8410_s9  ;;  %v6988_v30 = vpop.permute.xlu0 %6987  ;;  %v6262_v53 = vrot.slane %v6254_v28, %v9888_v50  ;;  %v4554_v43 = vmax.f32 %v4497_v41, 0.0  ;;  %v6514_v14 = vpack.c.bf16 %v6475_v61, %v6475_v61  ;;  %v6279_v18 = vrot.slane %v6271_v24, %v9888_v50 }
 0x37e   : > { %v7265_v48 = vsel %vm7247_vm7, %v7232_v12, %v6988_v30  ;;  %v4555_v37 = vmax.f32 %v4500_v39, 0.0  ;;  %v6294_v45 = vrot.slane %v5211_v47, %v9888_v50  ;;  %v6690_v54 = vshrl.u32 %v11464_v20, 16 }
 0x37f   : > { %v6270_v62 = vcombine.low %v6262_v53, %v6269_v16  ;;  %v6287_v2 = vcombine.low %v6279_v18, %v6286_v34  ;;  %v5212_v9 = vcombine.high %v4554_v43, %v4554_v43  ;;  %v6697_v27 = vshll.u32 %v6514_v14, 16  ;;  %v6732_v18 = vpop.permute.xlu1 %6731 }
 0x380   : > { %v5229_v8 = vcombine.high %v4555_v37, %v4555_v37  ;;  %v5219_v30 = vrot.slane %v4554_v43, %v9888_v50  ;;  %v6819_v38 = vrot.slane %v11464_v20, 1  ;;  %v5236_v21 = vrot.slane %v4555_v37, %v9888_v50 }
 0x381   : > { %7037 = vrot.lane.b32.xlu1 %v6688_v29, %s8409_s22  ;;  %6849 = vrot.lane.b32.xlu0 %v6815_v57, %s8405_s8  ;;  %v6476_v35 = vsel %vm5369_vm14, %v6270_v62, 0.0  ;;  %v5226_v49 = vrot.slane %v5212_v9, %v9888_v50  ;;  %v6699_v51 = vrot.slane %v6697_v27, 1 }
 0x382   : > { %v11492_v3 = vpack.c.bf16 %v6287_v2, %v6476_v35  ;;  %v5243_v33 = vrot.slane %v5229_v8, %v9888_v50  ;;  %v5227_v5 = vcombine.high %v5219_v30, %v5219_v30  ;;  %v5244_v12 = vcombine.high %v5236_v21, %v5236_v21 }
 0x383   : > { %v5228_v60 = vcombine.high %v5226_v49, %v5226_v49  ;;  %v6844_v35 = vpop.permute.xlu1 %6843 }
 0x384   : > { %v7032_v22 = vpop.permute.xlu0 %7031  ;;  %v6704_v63 = vshll.u32 %v11492_v3, 16  ;;  %v5245_v25 = vcombine.high %v5243_v33, %v5243_v33  ;;  %v6822_v1 = vrot.slane %v11492_v3, 1  ;;  %v6295_v16 = vcombine.low %v5219_v30, %v5227_v5 }
 0x385   : > { %6737 = vrot.lane.b32.xlu1 %v11423_v55, %s8404_s30  ;;  %6882 = vrot.lane.b32.xlu0 %v11417_v58, %s8396_s19  ;;  %v7298_v59 = vsel %vm7280_vm8, %v7265_v48, %v7032_v22  ;;  %v6692_v55 = vshll.u32 %v11464_v20, 16  ;;  %v6820_v22 = vrot.slane %v6514_v14, 1  ;;  %v6296_v48 = vcombine.low %v5226_v49, %v5228_v60 }
 0x386   : > { %v6706_v41 = vrot.slane %v6704_v63, 1  ;;  %v6312_v34 = vcombine.low %v5236_v21, %v5244_v12  ;;  %v6303_v2 = vrot.slane %v6295_v16, %v9888_v50  ;;  %v7103_v63 = vsel %vm7083_vm3, %v11158_v36, %v6732_v18 }
 0x387   : > { %v6694_v17 = vrot.slane %v6692_v55, 1  ;;  %v6821_v31 = vsel %vm865_vm1, %v6819_v38, %v6820_v22  ;;  %v6310_v47 = vrot.slane %v6296_v48, %v9888_v50  ;;  %v7136_v60 = vsel %vm7116_vm4, %v7103_v63, %v6844_v35 }
 0x388   : > { %v7068_v57 = vpop.permute.xlu0 %7067 }
 0x389   : > { %v7331_v42 = vsel %vm7313_vm9, %v7298_v59, %v7068_v57  ;;  %6739 = vrot.lane.b32.xlu1 %v6688_v29, %s8404_s30  ;;  %6926 = vrot.lane.b32.xlu0 %v6688_v29, %s8406_s12  ;;  %v6695_v4 = vor.u32 %v6694_v17, %v6690_v54  ;;  %v8335_v29 = vld [vmem:[%s11747_s2] ss:$0 sm:$0xff]  ;;  %v6313_v59 = vcombine.low %v5243_v33, %v5245_v25  ;;  %v6702_v57 = vshrl.u32 %v11492_v3, 16 }
 0x38a   : > { %8124 = vmatprep.mubr.msk.bf16.mxu1 %vm7389_vm10, %v7331_v42  ;;  %v6311_v8 = vcombine.low %v6303_v2, %v6310_v47 }
 0x38b   : > { %v6700_v15 = vsel %vm522_vm0, %v6695_v4, %v6699_v51  ;;  %v6707_v53 = vor.u32 %v6706_v41, %v6702_v57  ;;  %v6327_v37 = vrot.slane %v6313_v59, %v9888_v50 }
 0x38c   : > { %v6479_v4 = vsel %vm5369_vm14, %v6311_v8, 0.0 }
 0x38d   : > { %6851 = vrot.lane.b32.xlu1 %v6818_v6, %s8405_s8  ;;  %6962 = vrot.lane.b32.xlu0 %v6818_v6, %s8407_s15  ;;  %v6478_v6 = vsel %vm5470_vm15, %v6294_v45, 0.0  ;;  %v6320_v45 = vrot.slane %v6312_v34, %v9888_v50 }
 0x38e   : > { %v6516_v40 = vpack.c.bf16 %v6478_v6, %v6478_v6  ;;  %v6877_v6 = vpop.permute.xlu1 %6876 }
 0x38f   : > { %v6328_v27 = vcombine.low %v6320_v45, %v6327_v37 }
 0x390   : > { %v6823_v28 = vrot.slane %v6516_v40, 1  ;;  %v6709_v61 = vshll.u32 %v6516_v40, 16 }
 0x391   : > { %6884 = vrot.lane.b32.xlu1 %v11464_v20, %s8396_s19  ;;  %6995 = vrot.lane.b32.xlu0 %v11464_v20, %s8408_s18  ;;  %v4504_v26 = vpop.f32.mrf.mxu1 }
 0x392   : > { %v4505_v10 = vadd.f32 %v8335_v29, %v4504_v26  ;;  %v6824_v55 = vsel %vm865_vm1, %v6822_v1, %v6823_v28  ;;  %v6711_v62 = vrot.slane %v6709_v61, 1  ;;  %v6517_v26 = vpack.c.bf16 %v6328_v27, %v6479_v4  ;;  %v6921_v51 = vpop.permute.xlu1 %6920 }
 0x393   : > { %v8092_v52 = vpop.f32.mrf.mxu1  ;;  %v11887_v28 = vmov 0.0|0.0  }
 0x394   : > { %v4556_v24 = vmax.f32 %v4505_v10, 0.0  ;;  %v6712_v9 = vsel %vm522_vm0, %v6707_v53, %v6711_v62  ;;  %v6893_v33 = vshll.u32 %v6517_v26, 16  ;;  %v6891_v7 = vshrl.u32 %v6517_v26, 16 }
 0x395   : > { %6928 = vrot.lane.b32.xlu1 %v6700_v15, %s8406_s12  ;;  %7039 = vrot.lane.b32.xlu0 %v6700_v15, %s8409_s22  ;;  %v4507_v23 = vpop.f32.mrf.mxu1  ;;  %v6935_v10 = vrot.slane %v6517_v26, 1 }
 0x396   : > { %v5253_v43 = vrot.slane %v4556_v24, %v9888_v50  ;;  %v6895_v19 = vrot.slane %v6893_v33, 1  ;;  %v6957_v38 = vpop.permute.xlu1 %6956  ;;  %v7168_v23 = vsel %vm1987_vm12, %v7136_v60, %v6877_v6 }
 0x397   : > { %v8093_v56 = vpop.f32.mrf.mxu1  ;;  %v7201_v22 = vsel %vm7181_vm5, %v7168_v23, %v6921_v51 }
 0x398   : > { %v6335_v54 = vrot.slane %v5253_v43, %v9888_v50  ;;  %v6896_v21 = vor.u32 %v6895_v19, %v6891_v7  ;;  %v7234_v5 = vsel %vm7214_vm6, %v7201_v22, %v6957_v38 }
 0x399   : > { %6964 = vrot.lane.b32.xlu1 %v6821_v31, %s8407_s15  ;;  %7075 = vrot.lane.b32.xlu0 %v6821_v31, %s8410_s9  ;;  %v4512_v39 = vpop.f32.mrf.mxu1 }
 0x39a   : > { %v6481_v49 = vsel %vm5470_vm15, %v6335_v54, 0.0 }
 0x39b   : > { %v8096_v42 = vpop.f32.mrf.mxu1  ;;  %v6518_v50 = vpack.c.bf16 %v6481_v49, %v6481_v49 }
 0x39d   : > { %6997 = vrot.lane.b32.xlu1 %v11492_v3, %s8408_s18  ;;  %7077 = vrot.lane.b32.xlu0 %v6824_v55, %s8410_s9  ;;  %v4515_v14 = vpop.f32.mrf.mxu1  ;;  %v6898_v30 = vshll.u32 %v6518_v50, 16  ;;  %v6936_v40 = vrot.slane %v6518_v50, 1 }
 0x39f   : > { %v8097_v17 = vpop.f32.mrf.mxu1  ;;  %v6900_v52 = vrot.slane %v6898_v30, 1  ;;  %v6937_v25 = vsel %vm865_vm1, %v6935_v10, %v6936_v40  ;;  %vm8412_vm1 = vmmov (%p7665_p6), 0  }
 0x3a1   : > { %7041 = vrot.lane.b32.xlu1 %v6712_v9, %s8409_s22  ;;  %6853 = vrot.lane.b32.xlu0 %v6821_v31, %s8405_s8 }
 0x3a5   : > { %6741 = vrot.lane.b32.xlu1 %v6700_v15, %s8404_s30  ;;  %6886 = vrot.lane.b32.xlu0 %v11492_v3, %s8396_s19  ;;  %v6901_v15 = vsel %vm522_vm0, %v6896_v21, %v6900_v52 }
 0x3a9   : > { %6743 = vrot.lane.b32.xlu1 %v6712_v9, %s8404_s30  ;;  %6930 = vrot.lane.b32.xlu0 %v6712_v9, %s8406_s12 }
 0x3ad   : > { %6855 = vrot.lane.b32.xlu1 %v6824_v55, %s8405_s8  ;;  %6966 = vrot.lane.b32.xlu0 %v6824_v55, %s8407_s15 }
 0x3b1   : > { %6888 = vrot.lane.b32.xlu1 %v6517_v26, %s8396_s19  ;;  %6999 = vrot.lane.b32.xlu0 %v6517_v26, %s8408_s18 }
 0x3b5   : > { %6932 = vrot.lane.b32.xlu1 %v6901_v15, %s8406_s12  ;;  %7043 = vrot.lane.b32.xlu0 %v6901_v15, %s8409_s22  ;;  %v6990_v29 = vpop.permute.xlu1 %6989 }
 0x3b6   : > { %v7267_v36 = vsel %vm7247_vm7, %v7234_v5, %v6990_v29 }
 0x3b8   : > { %v7070_v56 = vpop.permute.xlu0 %7069 }
 0x3b9   : > { %6968 = vrot.lane.b32.xlu1 %v6937_v25, %s8407_s15  ;;  %7079 = vrot.lane.b32.xlu0 %v6937_v25, %s8410_s9 }
 0x3bc   : > { %v7034_v31 = vpop.permute.xlu1 %7033  ;;  %v6846_v41 = vpop.permute.xlu0 %6845 }
 0x3bd   : > { %v7300_v12 = vsel %vm7280_vm8, %v7267_v36, %v7034_v31  ;;  %7001 = vrot.lane.b32.xlu1 %v11887_v28, %s8408_s18 }
 0x3be   : > { %v7333_v1 = vsel %vm7313_vm9, %v7300_v12, %v7070_v56 }
 0x3bf   : > { %8125 = vmatmul.mubr.msk.bf16.gmra.mxu1 %vm7389_vm10, %v7333_v1 }
 0x3c0   : > { %v6734_v48 = vpop.permute.xlu1 %6733  ;;  %v6879_v24 = vpop.permute.xlu0 %6878 }
 0x3c1   : > { %7045 = vrot.lane.b32.xlu1 %v10317_v32, %s8409_s22  ;;  %v7105_v57 = vsel %vm7083_vm3, %v11232_v11, %v6734_v48 }
 0x3c2   : > { %v7138_v42 = vsel %vm7116_vm4, %v7105_v57, %v6846_v41 }
 0x3c3   : > { %v7170_v53 = vsel %vm1987_vm12, %v7138_v42, %v6879_v24 }
 0x3c4   : > { %v6736_v39 = vpop.permute.xlu1 %6735  ;;  %v6923_v59 = vpop.permute.xlu0 %6922 }
 0x3c5   : > { %7081 = vrot.lane.b32.xlu1 %v10320_v0, %s8410_s9  ;;  %v7203_v0 = vsel %vm7181_vm5, %v7170_v53, %v6923_v59  ;;  %v7107_v2 = vsel %vm7083_vm3, %v11325_v13, %v6736_v39 }
 0x3c8   : > { %v6848_v61 = vpop.permute.xlu1 %6847  ;;  %v6959_v16 = vpop.permute.xlu0 %6958 }
 0x3c9   : > { %v7236_v43 = vsel %vm7214_vm6, %v7203_v0, %v6959_v16  ;;  %v7140_v17 = vsel %vm7116_vm4, %v7107_v2, %v6848_v61 }
 0x3e0   : > { %v6881_v34 = vpop.permute.xlu1 %6880  ;;  %v6992_v55 = vpop.permute.xlu0 %6991 }
 0x3e1   : > { %v7269_v14 = vsel %vm7247_vm7, %v7236_v43, %v6992_v55  ;;  %v7172_v8 = vsel %vm1987_vm12, %v7140_v17, %v6881_v34 }
 0x3e7   : > { %v6925_v32 = vpop.permute.xlu1 %6924  ;;  %v7036_v47 = vpop.permute.xlu0 %7035 }
 0x3e8   : > { %v7302_v18 = vsel %vm7280_vm8, %v7269_v14, %v7036_v47  ;;  %v7205_v54 = vsel %vm7181_vm5, %v7172_v8, %v6925_v32 }
 0x3eb   : > { %v6961_v37 = vpop.permute.xlu1 %6960  ;;  %v7072_v11 = vpop.permute.xlu0 %7071 }
 0x3ec   : > { %v7335_v62 = vsel %vm7313_vm9, %v7302_v18, %v7072_v11  ;;  %v7238_v27 = vsel %vm7214_vm6, %v7205_v54, %v6961_v37 }
 0x3ed   : > { %8128 = vmatprep.mubr.msk.bf16.mxu1 %vm7389_vm10, %v7335_v62 }
 0x3ef   : > { %v6994_v45 = vpop.permute.xlu1 %6993  ;;  %v7074_v9 = vpop.permute.xlu0 %7073 }
 0x3f0   : > { %v7271_v35 = vsel %vm7247_vm7, %v7238_v27, %v6994_v45 }
 0x3f3   : > { %v7038_v4 = vpop.permute.xlu1 %7037  ;;  %v6850_v49 = vpop.permute.xlu0 %6849 }
 0x3f4   : > { %v7304_v26 = vsel %vm7280_vm8, %v7271_v35, %v7038_v4 }
 0x3f5   : > { %v7337_v6 = vsel %vm7313_vm9, %v7304_v26, %v7074_v9 }
 0x3f6   : > { %8129 = vmatmul.mubr.msk.bf16.gmra.mxu1 %vm7389_vm10, %v7337_v6 }
 0x3f7   : > { %v6738_v13 = vpop.permute.xlu1 %6737  ;;  %v6883_v50 = vpop.permute.xlu0 %6882 }
 0x3f8   : > { %v7109_v30 = vsel %vm7083_vm3, %v11391_v46, %v6738_v13 }
 0x3f9   : > { %v7142_v52 = vsel %vm7116_vm4, %v7109_v30, %v6850_v49 }
 0x3fa   : > { %v7174_v15 = vsel %vm1987_vm12, %v7142_v52, %v6883_v50  ;;  %v11629_v52 = vld [vmem:[%s11749_s4] ss:$0 sm:$0xff] }
 0x3fb   : > { %v6740_v33 = vpop.permute.xlu1 %6739  ;;  %v6927_v51 = vpop.permute.xlu0 %6926 }
 0x3fc   : > { %v7207_v60 = vsel %vm7181_vm5, %v7174_v15, %v6927_v51  ;;  %v7111_v5 = vsel %vm7083_vm3, %v11417_v58, %v6740_v33 }
 0x3ff   : > { %v6852_v19 = vpop.permute.xlu1 %6851  ;;  %v6963_v7 = vpop.permute.xlu0 %6962 }
 0x400   : > { %v7240_v29 = vsel %vm7214_vm6, %v7207_v60, %v6963_v7  ;;  %v7144_v36 = vsel %vm7116_vm4, %v7111_v5, %v6852_v19 }
 0x403   : > { %v6885_v38 = vpop.permute.xlu1 %6884  ;;  %v6996_v21 = vpop.permute.xlu0 %6995 }
 0x404   : > { %v7273_v10 = vsel %vm7247_vm7, %v7240_v29, %v6996_v21  ;;  %v7176_v12 = vsel %vm1987_vm12, %v7144_v36, %v6885_v38 }
 0x407   : > { %v6929_v40 = vpop.permute.xlu1 %6928  ;;  %v7040_v63 = vpop.permute.xlu0 %7039 }
 0x408   : > { %v7306_v23 = vsel %vm7280_vm8, %v7273_v10, %v7040_v63  ;;  %v7209_v1 = vsel %vm7181_vm5, %v7176_v12, %v6929_v40 }
 0x40b   : > { %v6965_v22 = vpop.permute.xlu1 %6964  ;;  %v7076_v46 = vpop.permute.xlu0 %7075 }
 0x40c   : > { %v7339_v25 = vsel %vm7313_vm9, %v7306_v23, %v7076_v46  ;;  %v7242_v28 = vsel %vm7214_vm6, %v7209_v1, %v6965_v22 }
 0x40d   : > { %8132 = vmatprep.mubr.msk.bf16.mxu1 %vm7389_vm10, %v7339_v25 }
 0x40f   : > { %v6998_v31 = vpop.permute.xlu1 %6997  ;;  %v7078_v56 = vpop.permute.xlu0 %7077 }
 0x410   : > { %v7275_v41 = vsel %vm7247_vm7, %v7242_v28, %v6998_v31 }
 0x413   : > { %v7042_v48 = vpop.permute.xlu1 %7041  ;;  %v6854_v24 = vpop.permute.xlu0 %6853 }
 0x414   : > { %v7308_v39 = vsel %vm7280_vm8, %v7275_v41, %v7042_v48 }
 0x415   : > { %v7341_v59 = vsel %vm7313_vm9, %v7308_v39, %v7078_v56 }
 0x416   : > { %8133 = vmatmul.mubr.msk.bf16.gmra.mxu1 %vm7389_vm10, %v7341_v59 }
 0x417   : > { %v6742_v58 = vpop.permute.xlu1 %6741  ;;  %v6887_v57 = vpop.permute.xlu0 %6886 }
 0x418   : > { %v7113_v42 = vsel %vm7083_vm3, %v11464_v20, %v6742_v58 }
 0x419   : > { %v7146_v53 = vsel %vm7116_vm4, %v7113_v42, %v6854_v24 }
 0x41a   : > { %v7178_v0 = vsel %vm1987_vm12, %v7146_v53, %v6887_v57 }
 0x41b   : > { %v6744_v61 = vpop.permute.xlu1 %6743  ;;  %v6931_v16 = vpop.permute.xlu0 %6930 }
 0x41c   : > { %v7211_v18 = vsel %vm7181_vm5, %v7178_v0, %v6931_v16  ;;  %v7115_v9 = vsel %vm7083_vm3, %v11492_v3, %v6744_v61  ;;  %v8110_v3 = vpop.f32.mrf.mxu1 }
 0x41d   : > { %v7469_v29 = vadd.f32 %v8110_v3, %v11629_v52 }
 0x41e   : > { %v7460_v50 = vpop.f32.mrf.mxu1 }
 0x41f   : > { %v6856_v34 = vpop.permute.xlu1 %6855  ;;  %v6967_v55 = vpop.permute.xlu0 %6966  ;;  %v7461_v40 = vadd.f32 %v11629_v52, %v7460_v50  ;;  %v7589_v46 = vmax.f32 %v7469_v29, 0.0 }
 0x420   : > { %v7244_v37 = vsel %vm7214_vm6, %v7211_v18, %v6967_v55  ;;  %v7148_v8 = vsel %vm7116_vm4, %v7115_v9, %v6856_v34  ;;  %v8111_v33 = vpop.f32.mrf.mxu1 }
 0x421   : > { %v7587_v10 = vmax.f32 %v7461_v40, 0.0  ;;  %v7472_v25 = vadd.f32 %v8111_v33, %v11629_v52 }
 0x422   : > { %v7463_v51 = vpop.f32.mrf.mxu1 }
 0x423   : > { %v6889_v32 = vpop.permute.xlu1 %6888  ;;  %v7000_v47 = vpop.permute.xlu0 %6999  ;;  %v7464_v21 = vadd.f32 %v11629_v52, %v7463_v51  ;;  %v7590_v12 = vmax.f32 %v7472_v25, 0.0 }
 0x424   : > { %v7277_v11 = vsel %vm7247_vm7, %v7244_v37, %v7000_v47  ;;  %v7180_v54 = vsel %vm1987_vm12, %v7148_v8, %v6889_v32  ;;  %v8114_v30 = vpop.f32.mrf.mxu1 }
 0x425   : > { %v7588_v63 = vmax.f32 %v7464_v21, 0.0  ;;  %v7485_v24 = vadd.f32 %v8114_v30, %v11629_v52 }
 0x426   : > { %v7476_v19 = vpop.f32.mrf.mxu1 }
 0x427   : > { %v6933_v43 = vpop.permute.xlu1 %6932  ;;  %v7044_v14 = vpop.permute.xlu0 %7043  ;;  %v7619_v23 = vadd.f32 %v7588_v63, %v7587_v10  ;;  %v7477_v5 = vadd.f32 %v11629_v52, %v7476_v19  ;;  %v7593_v57 = vmax.f32 %v7485_v24, 0.0 }
 0x428   : > { %v7310_v62 = vsel %vm7280_vm8, %v7277_v11, %v7044_v14  ;;  %v7213_v35 = vsel %vm7181_vm5, %v7180_v54, %v6933_v43  ;;  %v8115_v7 = vpop.f32.mrf.mxu1 }
 0x429   : > { %v7620_v36 = vadd.f32 %v7619_v23, %v7589_v46  ;;  %v7591_v1 = vmax.f32 %v7477_v5, 0.0  ;;  %v7488_v61 = vadd.f32 %v8115_v7, %v11629_v52 }
 0x42a   : > { %v7479_v38 = vpop.f32.mrf.mxu1 }
 0x42b   : > { %v6969_v2 = vpop.permute.xlu1 %6968  ;;  %v7080_v20 = vpop.permute.xlu0 %7079  ;;  %v7480_v31 = vadd.f32 %v11629_v52, %v7479_v38  ;;  %v7621_v41 = vadd.f32 %v7620_v36, %v7590_v12  ;;  %v7594_v53 = vmax.f32 %v7488_v61, 0.0 }
 0x42c   : > { %v7343_v17 = vsel %vm7313_vm9, %v7310_v62, %v7080_v20  ;;  %v7246_v4 = vsel %vm7214_vm6, %v7213_v35, %v6969_v2  ;;  %v8118_v15 = vpop.f32.mrf.mxu1 }
 0x42d   : > { %8136 = vmatprep.mubr.msk.bf16.mxu1 %vm7389_vm10, %v7343_v17  ;;  %v7592_v48 = vmax.f32 %v7480_v31, 0.0  ;;  %v7622_v39 = vadd.f32 %v7621_v41, %v7591_v1  ;;  %v7501_v18 = vadd.f32 %v8118_v15, %v11629_v52 }
 0x42e   : > { %v7492_v60 = vpop.f32.mrf.mxu1 }
 0x42f   : > { %v7002_v45 = vpop.permute.xlu1 %7001  ;;  %v7623_v58 = vadd.f32 %v7622_v39, %v7592_v48  ;;  %v7493_v16 = vadd.f32 %v11629_v52, %v7492_v60  ;;  %v7597_v2 = vmax.f32 %v7501_v18, 0.0 }
 0x430   : > { %v7279_v49 = vsel %vm7247_vm7, %v7246_v4, %v7002_v45  ;;  %v8119_v22 = vpop.f32.mrf.mxu1 }
 0x431   : > { %v7624_v34 = vadd.f32 %v7623_v58, %v7593_v57  ;;  %v7595_v32 = vmax.f32 %v7493_v16, 0.0  ;;  %v7504_v20 = vadd.f32 %v8119_v22, %v11629_v52 }
 0x432   : > { %v7495_v56 = vpop.f32.mrf.mxu1 }
 0x433   : > { %v7046_v27 = vpop.permute.xlu1 %7045  ;;  %v7496_v55 = vadd.f32 %v11629_v52, %v7495_v56  ;;  %v7625_v0 = vadd.f32 %v7624_v34, %v7594_v53  ;;  %v7598_v54 = vmax.f32 %v7504_v20, 0.0 }
 0x434   : > { %v7312_v26 = vsel %vm7280_vm8, %v7279_v49, %v7046_v27  ;;  %v8122_v28 = vpop.f32.mrf.mxu1 }
 0x435   : > { %v7596_v43 = vmax.f32 %v7496_v55, 0.0  ;;  %v7626_v37 = vadd.f32 %v7625_v0, %v7595_v32 }
 0x436   : > { %v7508_v59 = vpop.f32.mrf.mxu1 }
 0x437   : > { %v7082_v6 = vpop.permute.xlu1 %7081  ;;  %v7627_v11 = vadd.f32 %v7626_v37, %v7596_v43  ;;  %v7509_v17 = vadd.f32 %v11629_v52, %v7508_v59 }
 0x438   : > { %v7345_v13 = vsel %vm7313_vm9, %v7312_v26, %v7082_v6  ;;  %v8123_v42 = vpop.f32.mrf.mxu1  ;;  %v7517_v26 = vadd.f32 %v8122_v28, %v11629_v52 }
 0x439   : > { %8137 = vmatmul.mubr.msk.bf16.gmra.mxu1 %vm7389_vm10, %v7345_v13  ;;  %v7628_v45 = vadd.f32 %v7627_v11, %v7597_v2  ;;  %v7599_v27 = vmax.f32 %v7509_v17, 0.0  ;;  %v7520_v33 = vadd.f32 %v8123_v42, %v11629_v52 }
 0x43a   : > { %v7511_v47 = vpop.f32.mrf.mxu1  ;;  %v7601_v50 = vmax.f32 %v7517_v26, 0.0 }
 0x43b   : > { %v7512_v9 = vadd.f32 %v11629_v52, %v7511_v47  ;;  %v7629_v35 = vadd.f32 %v7628_v45, %v7598_v54  ;;  %v7602_v38 = vmax.f32 %v7520_v33, 0.0 }
 0x43d   : > { %v7600_v4 = vmax.f32 %v7512_v9, 0.0  ;;  %v7630_v6 = vadd.f32 %v7629_v35, %v7599_v27 }
 0x43f   : > { %v7631_v3 = vadd.f32 %v7630_v6, %v7600_v4 }
 0x441   : > { %v7632_v19 = vadd.f32 %v7631_v3, %v7601_v50 }
 0x443   : > { %v7633_v40 = vadd.f32 %v7632_v19, %v7602_v38 }
 0x47f   : > { %v8126_v14 = vpop.f32.mrf.mxu1 }
 0x480   : > { %v7533_v60 = vadd.f32 %v8126_v14, %v11629_v52 }
 0x481   : > { %v7524_v62 = vpop.f32.mrf.mxu1 }
 0x482   : > { %v7525_v51 = vadd.f32 %v11629_v52, %v7524_v62  ;;  %v7605_v46 = vmax.f32 %v7533_v60, 0.0 }
 0x483   : > { %v8127_v8 = vpop.f32.mrf.mxu1 }
 0x484   : > { %v7603_v21 = vmax.f32 %v7525_v51, 0.0  ;;  %v7536_v25 = vadd.f32 %v8127_v8, %v11629_v52 }
 0x485   : > { %v7527_v49 = vpop.f32.mrf.mxu1 }
 0x486   : > { %v7528_v7 = vadd.f32 %v11629_v52, %v7527_v49  ;;  %v7634_v29 = vadd.f32 %v7633_v40, %v7603_v21  ;;  %v7606_v12 = vmax.f32 %v7536_v25, 0.0  ;;  %v7683_v25 = vld [vmem:[%s11750_s5 + $0x60] sm:$0xff] (%p7665_p6) }
 0x488   : > { %v7604_v63 = vmax.f32 %v7528_v7, 0.0  ;;  %v7657_v7 = vstv %s8378_s24 }
 0x48a   : > { %v7635_v23 = vadd.f32 %v7634_v29, %v7604_v63  ;;  %v7661_v29 = vld [vmem:[#allocation2] sm:$0xff] }
 0x48c   : > { %v7636_v36 = vadd.f32 %v7635_v23, %v7605_v46  ;;  %v7686_v23 = vld [vmem:[%s11750_s5 + $0x78] sm:$0xff] (%p7665_p6)  ;;  %v7685_v46 = vld [vmem:[%s11750_s5 + $0x70] sm:$0xff] (%p7665_p6) }
 0x48e   : > { %v7637_v28 = vadd.f32 %v7636_v36, %v7606_v12  ;;  %v7681_v36 = vld [vmem:[%s11750_s5 + $0x50] sm:$0xff] (%p7665_p6)  ;;  %v7678_v12 = vld [vmem:[%s11750_s5 + $0x38] sm:$0xff] (%p7665_p6) }
 0x4b6   : > { %v8130_v13 = vpop.f32.mrf.mxu1 }
 0x4b7   : > { %v7549_v24 = vadd.f32 %v8130_v13, %v11629_v52 }
 0x4b8   : > { %v7540_v30 = vpop.f32.mrf.mxu1 }
 0x4b9   : > { %v7541_v5 = vadd.f32 %v11629_v52, %v7540_v30  ;;  %v7609_v57 = vmax.f32 %v7549_v24, 0.0  ;;  %v7673_v24 = vld [vmem:[%s11750_s5 + $0x10] sm:$0xff] (%p7665_p6) }
 0x4ba   : > { %v8131_v15 = vpop.f32.mrf.mxu1 }
 0x4bb   : > { %v7607_v1 = vmax.f32 %v7541_v5, 0.0  ;;  %v7552_v61 = vadd.f32 %v8131_v15, %v11629_v52  ;;  %v11888_v15 = vld [vmem:[#allocation46_spill] sm:$0xff]  ;;  %v7682_v5 = vld [vmem:[%s11750_s5 + $0x58] sm:$0xff] (%p7665_p6) }
 0x4bc   : > { %v7543_v10 = vpop.f32.mrf.mxu1  ;;  %vm7658_vm0 = vcmp.eq.s32.totalorder %v11888_v15, %v7657_v7 }
 0x4bd   : > { %v7544_v31 = vadd.f32 %v11629_v52, %v7543_v10  ;;  %v7638_v39 = vadd.f32 %v7637_v28, %v7607_v1  ;;  %v7610_v55 = vmax.f32 %v7552_v61, 0.0  ;;  %v7940_v63 = vsel %vm7658_vm0, 1.0, %v11826_v44  ;;  %v7684_v44 = vld [vmem:[%s11750_s5 + $0x68] sm:$0xff] (%p7665_p6)  ;;  %v7677_v1 = vld [vmem:[%s11750_s5 + $0x30] sm:$0xff] (%p7665_p6) }
 0x4be   : > { %v7676_v28 = vld [vmem:[%s11750_s5 + $0x28] sm:$0xff] (%p7665_p6) }
 0x4bf   : > { %v7608_v41 = vmax.f32 %v7544_v31, 0.0  ;;  %v7680_v31 = vld [vmem:[%s11750_s5 + $0x48] sm:$0xff] (%p7665_p6) }
 0x4c1   : > { %v7639_v59 = vadd.f32 %v7638_v39, %v7608_v41  ;;  %v7675_v41 = vld [vmem:[%s11750_s5 + $0x20] sm:$0xff] (%p7665_p6)  ;;  %v7672_v39 = vld [vmem:[%s11750_s5 + $0x8] sm:$0xff] (%p7665_p6) }
 0x4c3   : > { %v7640_v42 = vadd.f32 %v7639_v59, %v7609_v57  ;;  %v7671_v59 = vld [vmem:[%s11750_s5] sm:$0xff] (%p7665_p6) }
 0x4c4   : > { %v7942_v57 = vld [vmem:[%s11751_s6] ss:$0 sm:$0xff] (%p7665_p6) }
 0x4c5   : > { %v7641_v32 = vadd.f32 %v7640_v42, %v7610_v55 }
 0x4d6   : > { %v8134_v22 = vpop.f32.mrf.mxu1 }
 0x4d7   : > { %v7565_v0 = vadd.f32 %v8134_v22, %v11629_v52  ;;  %v8411_v22 = vmov (%p7665_p6), 0.0  }
 0x4d8   : > { %v7556_v56 = vpop.f32.mrf.mxu1  ;;  %8140 = vmatprep.subr.mxu0 (%p7665_p6), %v8411_v22  ;;  %8172 = vmatprep.mubr.msk.f32.mxu0 (%p7665_p6), %vm8412_vm1, %v8411_v22 }
 0x4d9   : > { %v7557_v16 = vadd.f32 %v11629_v52, %v7556_v56  ;;  %v7613_v37 = vmax.f32 %v7565_v0, 0.0  ;;  %8141 = vmatpush3.msra.mxu0 (%p7665_p6), %v7686_v23  ;;  %v7679_v56 = vld [vmem:[%s11750_s5 + $0x40] sm:$0xff] (%p7665_p6) }
 0x4da   : > { %v8135_v48 = vpop.f32.mrf.mxu1  ;;  %8142 = vmatprep.subr.mxu0 (%p7665_p6), %v8411_v22 }
 0x4db   : > { %v7611_v53 = vmax.f32 %v7557_v16, 0.0  ;;  %v7568_v11 = vadd.f32 %v8135_v48, %v11629_v52  ;;  %8143 = vmatpush3.msra.mxu0 (%p7665_p6), %v7685_v46  ;;  %v7674_v48 = vld [vmem:[%s11750_s5 + $0x18] sm:$0xff] (%p7665_p6) }
 0x4dc   : > { %v7559_v58 = vpop.f32.mrf.mxu1  ;;  %8144 = vmatprep.subr.mxu0 (%p7665_p6), %v8411_v22 }
 0x4dd   : > { %v7560_v34 = vadd.f32 %v11629_v52, %v7559_v58  ;;  %v7642_v43 = vadd.f32 %v7641_v32, %v7611_v53  ;;  %v7614_v45 = vmax.f32 %v7568_v11, 0.0  ;;  %8145 = vmatpush3.msra.mxu0 (%p7665_p6), %v7684_v44 }
 0x4de   : > { %8146 = vmatprep.subr.mxu0 (%p7665_p6), %v8411_v22 }
 0x4df   : > { %v7612_v47 = vmax.f32 %v7560_v34, 0.0  ;;  %8147 = vmatpush3.msra.mxu0 (%p7665_p6), %v7683_v25 }
 0x4e0   : > { %8148 = vmatprep.subr.mxu0 (%p7665_p6), %v8411_v22 }
 0x4e1   : > { %v7643_v14 = vadd.f32 %v7642_v43, %v7612_v47  ;;  %8149 = vmatpush3.msra.mxu0 (%p7665_p6), %v7682_v5 }
 0x4e2   : > { %8150 = vmatprep.subr.mxu0 (%p7665_p6), %v8411_v22 }
 0x4e3   : > { %v7644_v2 = vadd.f32 %v7643_v14, %v7613_v37  ;;  %8151 = vmatpush3.msra.mxu0 (%p7665_p6), %v7681_v36 }
 0x4e4   : > { %8152 = vmatprep.subr.mxu0 (%p7665_p6), %v8411_v22 }
 0x4e5   : > { %v7645_v27 = vadd.f32 %v7644_v2, %v7614_v45  ;;  %8153 = vmatpush3.msra.mxu0 (%p7665_p6), %v7680_v31 }
 0x4e6   : > { %8154 = vmatprep.subr.mxu0 (%p7665_p6), %v8411_v22 }
 0x4e7   : > { %8155 = vmatpush3.msra.mxu0 (%p7665_p6), %v7679_v56 }
 0x4e8   : > { %8156 = vmatprep.subr.mxu0 (%p7665_p6), %v8411_v22 }
 0x4e9   : > { %8157 = vmatpush3.msra.mxu0 (%p7665_p6), %v7678_v12 }
 0x4ea   : > { %8158 = vmatprep.subr.mxu0 (%p7665_p6), %v8411_v22 }
 0x4eb   : > { %8159 = vmatpush3.msra.mxu0 (%p7665_p6), %v7677_v1 }
 0x4ec   : > { %8160 = vmatprep.subr.mxu0 (%p7665_p6), %v8411_v22 }
 0x4ed   : > { %8161 = vmatpush3.msra.mxu0 (%p7665_p6), %v7676_v28 }
 0x4ee   : > { %8162 = vmatprep.subr.mxu0 (%p7665_p6), %v8411_v22 }
 0x4ef   : > { %8163 = vmatpush3.msra.mxu0 (%p7665_p6), %v7675_v41 }
 0x4f0   : > { %8164 = vmatprep.subr.mxu0 (%p7665_p6), %v8411_v22 }
 0x4f1   : > { %8165 = vmatpush3.msra.mxu0 (%p7665_p6), %v7674_v48 }
 0x4f2   : > { %8166 = vmatprep.subr.mxu0 (%p7665_p6), %v8411_v22 }
 0x4f3   : > { %8167 = vmatpush3.msra.mxu0 (%p7665_p6), %v7673_v24 }
 0x4f4   : > { %8168 = vmatprep.subr.mxu0 (%p7665_p6), %v8411_v22 }
 0x4f5   : > { %8169 = vmatpush3.msra.mxu0 (%p7665_p6), %v7672_v39 }
 0x4f6   : > { %8170 = vmatprep.subr.mxu0 (%p7665_p6), %v8411_v22 }
 0x4f7   : > { %8171 = vmatpush3.msra.mxu0 (%p7665_p6), %v7671_v59 }
 0x4f9   : > { %v8138_v18 = vpop.f32.mrf.mxu1 }
 0x4fa   : > { %v7581_v54 = vadd.f32 %v8138_v18, %v11629_v52 }
 0x4fb   : > { %v7572_v62 = vpop.f32.mrf.mxu1 }
 0x4fc   : > { %v7573_v20 = vadd.f32 %v11629_v52, %v7572_v62  ;;  %v7617_v6 = vmax.f32 %v7581_v54, 0.0 }
 0x4fd   : > { %v8139_v17 = vpop.f32.mrf.mxu1 }
 0x4fe   : > { %v7615_v9 = vmax.f32 %v7573_v20, 0.0  ;;  %v7584_v49 = vadd.f32 %v8139_v17, %v11629_v52 }
 0x4ff   : > { %v7575_v8 = vpop.f32.mrf.mxu1 }
 0x500   : > { %v7576_v35 = vadd.f32 %v11629_v52, %v7575_v8  ;;  %v7646_v4 = vadd.f32 %v7645_v27, %v7615_v9  ;;  %v7618_v3 = vmax.f32 %v7584_v49, 0.0 }
 0x502   : > { %v7616_v26 = vmax.f32 %v7576_v35, 0.0 }
 0x504   : > { %v7647_v13 = vadd.f32 %v7646_v4, %v7616_v26 }
 0x506   : > { %v7648_v50 = vadd.f32 %v7647_v13, %v7617_v6 }
 0x508   : > { %v7649_v33 = vadd.f32 %v7648_v50, %v7618_v3 }
 0x50a   : > { %v7650_v51 = vrot.slane %v7649_v33, 4 }
 0x50c   : > { %v7651_v30 = vadd.f32 %v7650_v51, %v7649_v33 }
 0x50e   : > { %v7652_v19 = vrot.slane %v7651_v30, 2 }
 0x510   : > { %v7653_v38 = vadd.f32 %v7652_v19, %v7651_v30 }
 0x512   : > { %v7654_v21 = vrot.slane %v7653_v38, 1 }
 0x514   : > { %v7655_v40 = vadd.f32 %v7654_v21, %v7653_v38 }
 0x516   : > { %v7656_v60 = vmul.f32 0.00390625, %v7655_v40 }
 0x518   : > { %v7662_v52 = vmul.f32 %v7940_v63, %v7656_v60  ;;  %7669 = sbr.rel (!%p7665_p6) target bundleno = 1512 (0x5e8), region = 56 }
 0x51a   : > { %v7663_v10 = vadd.f32 %v7662_v52, %v7661_v29 }
 0x51c   : > { %7664 = vst [vmem:[#allocation2] sm:$0xff] %v7663_v10 }
 0x523   : > { %v7670_v58 = vld [vmem:[#allocation2] sm:$0xff] }
 0x524   : > { %8173 = vmatmul.mubr.f32.vlgmr.msra.gmra.mxu0 %v7670_v58 }
 0x5e4   : > { %v7760_v61 = vpop.f32.mrf.mxu0 }
 0x5e5   : > { %v7761_v16 = vadd.f32 %v7942_v57, %v7760_v61 }
 0x5e6   : > { %v8174_v42 = vpop.f32.mrf.mxu0 }
 0x5e7   : > { %7764 = vst [vmem:[#allocation3] sm:$0xff] %v7761_v16 }
 0x5e8 PF: > { %p11721_p7 = scmp.eq.s32.totalorder %s7827_s27, 7  ;;  %s8413_s17 = smov [#allocation3]  }
 0x5e9   : > { %s7774_s19 = sshll.u32 %s8413_s17, 4  ;;  %s7775_s19 = int_to_ptr.vmem [resolvable:$true] %s7774_s19 }
 0x5ea   : > { %s8336_s30 = scalar_lea.vmem %s7775_s19, 128  ;;  %p8343_p11 = scmp.lt.s32.totalorder %s7775_s19, %s7775_s19 }
 0x5eb   : > { %p8337_p8 = scmp.ne.s32.totalorder %s7775_s19, %s8336_s30  ;;  %p8344_p12 = scmp.lt.s32.totalorder %s8336_s30, %s8336_s30 }
 0x5ed   : > { %p8338_p9 = pnand %p8337_p8, %p11721_p7  ;;  %p8345_p13 = por %p8344_p12, %p8343_p11 }
 0x5ef   : > { %p8339_p10 = pneg %p8338_p9 }
 0x5f1   : > { %p8346_p0 = pnand %p8345_p13, %p8339_p10 }
 0x5f3   : > { %8349 = shalt.err (!%p8346_p0)
}
 0x5f4   : > { %8182 = dma.vmem_to_hbm [thread:$0]  (%p11721_p7), %s7775_s19, 128, %s11752_s7, [#allocation4]  }
 0x5f5   : > { %8373 = dma.done.wait (%p11721_p7), [#allocation4], 128  }
 0x5f6   : > { %8375 = vsyncadd (%p11721_p7), [#allocation4], 4294967168 }
 0x5f7 PF: > { %s18_s26 = sadd.s32 1, %s8386_s26   ;;  %s11890_s24 = smov %s8382_s25 }
 0x5f8   : > { %p15_p1 = scmp.ge.s32.totalorder %s18_s26, 10   ;;  %s11891_s25 = smov %s11893_s28 }
 0x5fa   :  { %17 = sbr.rel (!%p15_p1) target bundleno = 2 (0x2), region = 84 }
 0x5ff   :  { %7787 = vsyncpa [#allocation4], 1 }
 0x600   :  { %7789 = vsyncpa [#allocation4 + $0x1], 1 }

</bundles_post_ra>
